<compile_context>
chip_gen: v5e
topology: v5e:2x2
jax: 0.10.0
libtpu: 0.0.40
codegen_flags: <defaults>
</compile_context>

<pallas_src>
import functools

import jax
import jax.numpy as jnp
from jax import lax
from jax.experimental import pallas as pl
from jax.experimental.pallas import tpu as pltpu


# ----------------------------------------------------------------------------
# Kernel 1: t2i cross-attention scores.
# grid = (n_image_blocks, n_caption); each step scores ONE caption against a
# tile of images. The image tile is reused across the inner caption axis.
# ----------------------------------------------------------------------------
def _xattn_t2i_kernel(lens_ref, img_ref, cap_ref, o_ref, *,
                      lambda_softmax, lambda_lse, raw_feature_norm, agg_func,
                      eps=1e-8):
    ci = pl.program_id(1)
    n_word = lens_ref[ci]                                   # int32 scalar (SMEM)

    img = img_ref[...]                                      # (TI, R, D) input dtype
    cap = cap_ref[0]                                        # (W,  D)    input dtype
    ti, nr, nd = img.shape
    nw = cap.shape[0]

    # Zero padded words so they contribute nothing downstream — matches the
    # reference, which slices captions[i, :n_word, :].
    word_col = lax.broadcasted_iota(jnp.int32, (nw, 1), 0)
    cap = jnp.where(word_col < n_word, cap, jnp.zeros_like(cap))

    # attention logits attn[(b,r), w] = <img[b,r,:], cap[w,:]>   (MXU, f32 acc)
    img2 = img.reshape(ti * nr, nd)
    attn = jnp.einsum('nd,wd->nw', img2, cap,
                      preferred_element_type=jnp.float32)   # (TI*R, W) f32

    if raw_feature_norm in ('clipped_l2norm', 'clipped'):
        attn = jnp.where(attn > 0, attn, 0.1 * attn)        # LeakyReLU(0.1)
    if raw_feature_norm in ('clipped_l2norm', 'l2norm'):
        nrm = jnp.sqrt(jnp.sum(attn * attn, axis=1, keepdims=True)) + eps
        attn = attn * pl.reciprocal(nrm, approx=False)      # l2norm over words
    # 'no_norm': leave logits untouched.

    # softmax over regions (smooth = lambda_softmax)
    a = jnp.swapaxes(attn.reshape(ti, nr, nw), 1, 2) * lambda_softmax  # (TI, W, R)
    a = a - jnp.max(a, axis=2, keepdims=True)
    e = jnp.exp(a)
    p = e * pl.reciprocal(jnp.sum(e, axis=2, keepdims=True), approx=False)

    # weighted context wc[b,w,:] = sum_r p[b,w,r] * img[b,r,:]    (MXU, f32 acc)
    wc = jnp.einsum('bwr,brd->bwd', p.astype(img.dtype), img,
                    preferred_element_type=jnp.float32)     # (TI, W, D) f32

    # per-word cosine similarity with the caption (epilogue stays in f32)
    capf = cap.astype(jnp.float32)[None, :, :]              # (1, W, D)
    w12 = jnp.sum(capf * wc, axis=2)                        # (TI, W)
    w1 = jnp.sqrt(jnp.sum(capf * capf, axis=2))             # (1, W)
    w2 = jnp.sqrt(jnp.sum(wc * wc, axis=2))                 # (TI, W)
    sim = w12 * pl.reciprocal(jnp.maximum(w1 * w2, eps), approx=False)

    # aggregate over the valid words of this caption
    valid = lax.broadcasted_iota(jnp.int32, (1, nw), 1) < n_word
    if agg_func == 'LogSumExp':
        ex = jnp.where(valid, jnp.exp(lambda_lse * sim), 0.0)
        res = jnp.log(jnp.sum(ex, axis=1, keepdims=True)) / lambda_lse
    elif agg_func == 'Max':
        res = jnp.max(jnp.where(valid, sim, -jnp.inf), axis=1, keepdims=True)
    elif agg_func == 'Sum':
        res = jnp.sum(jnp.where(valid, sim, 0.0), axis=1, keepdims=True)
    elif agg_func == 'Mean':
        res = (jnp.sum(jnp.where(valid, sim, 0.0), axis=1, keepdims=True)
               / n_word.astype(jnp.float32))
    else:
        raise ValueError('unknown aggfunc: {}'.format(agg_func))

    o_ref[...] = res.reshape(1, ti, 1).astype(o_ref.dtype)  # (1, TI, 1)


def _round_up(x, m):
    return ((x + m - 1) // m) * m


def _pick_image_tile(n_image, n_regions, d, itemsize, max_tile, vmem_budget_bytes):
    """Largest multiple-of-8 image tile whose double-buffered block fits budget."""
    tile = max(8, min(_round_up(n_image, 8), (max_tile // 8) * 8))
    while tile > 8 and 2 * tile * n_regions * d * itemsize > vmem_budget_bytes:
        tile -= 8
    return tile


def xattn_score_t2i_pallas(images, captions, cap_lens, *,
                           lambda_softmax=9.0, lambda_lse=6.0,
                           raw_feature_norm='clipped_l2norm',
                           agg_func='LogSumExp',
                           max_image_tile=256,
                           vmem_budget_bytes=16 * 1024 * 1024,
                           compute_dtype=None):
    """scores[i, j] = t2i cross-attention similarity of image i vs caption j."""
    if raw_feature_norm not in ('clipped_l2norm', 'l2norm', 'clipped', 'no_norm'):
        # TODO(synk): 'softmax' / 'l1norm' / 'clipped_l1norm' raw feature norms.
        raise NotImplementedError(raw_feature_norm)

    n_image, n_regions, d = images.shape
    n_caption, max_words, dc = captions.shape
    assert d == dc
    if compute_dtype is not None:           # e.g. jnp.bfloat16 for the fast MXU path
        images = images.astype(compute_dtype)
        captions = captions.astype(compute_dtype)
    cap_lens = jnp.asarray(cap_lens, dtype=jnp.int32)

    tile = _pick_image_tile(n_image, n_regions, d, images.dtype.itemsize,
                            max_image_tile, vmem_budget_bytes)
    n_pad = _round_up(n_image, tile)
    if n_pad != n_image:
        images = jnp.pad(images, ((0, n_pad - n_image), (0, 0), (0, 0)))

    kernel = functools.partial(
        _xattn_t2i_kernel, lambda_softmax=float(lambda_softmax),
        lambda_lse=float(lambda_lse), raw_feature_norm=raw_feature_norm,
        agg_func=agg_func)

    out = pl.pallas_call(
        kernel,
        out_shape=jax.ShapeDtypeStruct((n_caption, n_pad, 1), jnp.float32),
        grid_spec=pltpu.PrefetchScalarGridSpec(
            num_scalar_prefetch=1,                       # cap_lens -> SMEM
            grid=(n_pad // tile, n_caption),
            in_specs=[
                pl.BlockSpec((tile, n_regions, d), lambda bi, ci, lens: (bi, 0, 0)),
                pl.BlockSpec((1, max_words, d), lambda bi, ci, lens: (ci, 0, 0)),
            ],
            out_specs=pl.BlockSpec((1, tile, 1), lambda bi, ci, lens: (ci, bi, 0)),
        ),
        compiler_params=pltpu.CompilerParams(
            dimension_semantics=("parallel", "arbitrary"),
            vmem_limit_bytes=48 * 1024 * 1024,
        ),
    )(cap_lens, images, captions)

    return out[:, :n_image, 0].T                         # (n_image, n_caption)


# ----------------------------------------------------------------------------
# Kernel 2: contrastive hinge reduction on the (N, N) score matrix.
# ----------------------------------------------------------------------------
def _sum2d(x):
    return jnp.sum(jnp.sum(x, axis=1, keepdims=True), axis=0, keepdims=True)


def _contrastive_loss_kernel(scores_ref, o_ref, *, margin, max_violation):
    s = scores_ref[...].astype(jnp.float32)              # (N, N)
    n = s.shape[0]
    row = lax.broadcasted_iota(jnp.int32, (n, n), 0)
    col = lax.broadcasted_iota(jnp.int32, (n, n), 1)
    eye = row == col
    diag_col = jnp.sum(jnp.where(eye, s, 0.0), axis=1, keepdims=True)   # (N,1)
    diag_row = jnp.sum(jnp.where(eye, s, 0.0), axis=0, keepdims=True)   # (1,N)
    cost_s = jnp.maximum(margin + s - diag_col, 0.0)
    cost_im = jnp.maximum(margin + s - diag_row, 0.0)
    cost_s = jnp.where(eye, 0.0, cost_s)
    cost_im = jnp.where(eye, 0.0, cost_im)
    if max_violation:
        loss = (_sum2d(jnp.max(cost_s, axis=1, keepdims=True))
                + _sum2d(jnp.max(cost_im, axis=0, keepdims=True)))
    else:
        loss = _sum2d(cost_s) + _sum2d(cost_im)
    o_ref[...] = loss.astype(o_ref.dtype)


def contrastive_loss_pallas(scores, *, margin=0.0, max_violation=False):
    n = scores.shape[0]
    assert scores.shape == (n, n), "contrastive loss needs a square score matrix"
    loss = pl.pallas_call(
        functools.partial(_contrastive_loss_kernel, margin=float(margin),
                          max_violation=bool(max_violation)),
        out_shape=jax.ShapeDtypeStruct((1, 1), jnp.float32),
    )(scores.astype(jnp.float32))
    return loss[0, 0]


def contrastive_loss_forward(im, s, s_l, *, margin=0.0, max_violation=False,
                             cross_attn='t2i', **xattn_kwargs):
    """Equivalent of ContrastiveLoss.forward(im, s, s_l)."""
    if cross_attn != 't2i':
        # TODO(synk): 'i2t' cross-attention direction (xattn_score_i2t).
        raise NotImplementedError(cross_attn)
    scores = xattn_score_t2i_pallas(im, s, s_l, **xattn_kwargs)
    return contrastive_loss_pallas(scores, margin=margin, max_violation=max_violation)


# ----------------------------------------------------------------------------
# Pure-JAX reference mirroring the PyTorch module (for verification).
# ----------------------------------------------------------------------------
def _l2norm_ref(x, axis, eps=1e-8):
    return x / (jnp.sqrt(jnp.sum(x * x, axis=axis, keepdims=True)) + eps)


def _func_attention_ref(query, context, smooth, raw_feature_norm):
    hi = jax.lax.Precision.HIGHEST
    attn = jnp.einsum('bsd,bqd->bsq', context, query, precision=hi)   # (B,sL,qL)
    if raw_feature_norm == 'clipped_l2norm':
        attn = jnp.where(attn > 0, attn, 0.1 * attn)
        attn = _l2norm_ref(attn, 2)
    elif raw_feature_norm == 'l2norm':
        attn = _l2norm_ref(attn, 2)
    elif raw_feature_norm == 'clipped':
        attn = jnp.where(attn > 0, attn, 0.1 * attn)
    elif raw_feature_norm == 'no_norm':
        pass
    else:
        raise ValueError(raw_feature_norm)
    attn = jnp.transpose(attn, (0, 2, 1))                             # (B,qL,sL)
    attn = jax.nn.softmax(attn * smooth, axis=-1)
    return jnp.einsum('bqs,bsd->bqd', attn, context, precision=hi)


def _xattn_score_t2i_ref(images, captions, cap_lens, *, lambda_softmax, lambda_lse,
                         raw_feature_norm, agg_func, eps=1e-8):
    n_image = images.shape[0]
    sims = []
    for i in range(captions.shape[0]):
        n_word = int(cap_lens[i])
        cap_i = captions[i:i + 1, :n_word, :]
        cap_i_expand = jnp.tile(cap_i, (n_image, 1, 1))
        wctx = _func_attention_ref(cap_i_expand, images, lambda_softmax,
                                   raw_feature_norm)
        w12 = jnp.sum(cap_i_expand * wctx, axis=2)
        w1 = jnp.sqrt(jnp.sum(cap_i_expand ** 2, axis=2))
        w2 = jnp.sqrt(jnp.sum(wctx ** 2, axis=2))
        row_sim = w12 / jnp.maximum(w1 * w2, eps)
        if agg_func == 'LogSumExp':
            row_sim = jnp.log(jnp.sum(jnp.exp(lambda_lse * row_sim), axis=1,
                                      keepdims=True)) / lambda_lse
        elif agg_func == 'Max':
            row_sim = jnp.max(row_sim, axis=1, keepdims=True)
        elif agg_func == 'Sum':
            row_sim = jnp.sum(row_sim, axis=1, keepdims=True)
        elif agg_func == 'Mean':
            row_sim = jnp.mean(row_sim, axis=1, keepdims=True)
        else:
            raise ValueError(agg_func)
        sims.append(row_sim)
    return jnp.concatenate(sims, axis=1)


def _contrastive_loss_ref(scores, margin, max_violation):
    n = scores.shape[0]
    diag = jnp.diagonal(scores).reshape(n, 1)
    cost_s = jnp.maximum(margin + scores - diag, 0.0)
    cost_im = jnp.maximum(margin + scores - diag.T, 0.0)
    eye = jnp.eye(n, dtype=bool)
    cost_s = jnp.where(eye, 0.0, cost_s)
    cost_im = jnp.where(eye, 0.0, cost_im)
    if max_violation:
        return jnp.sum(jnp.max(cost_s, axis=1)) + jnp.sum(jnp.max(cost_im, axis=0))
    return jnp.sum(cost_s) + jnp.sum(cost_im)


if __name__ == "__main__":
    # Small shapes consistent with the module: im (B, n_regions, D),
    # s (B, max_words, D), s_l (B,) caption lengths.
    B, R, W, D = 8, 16, 12, 32
    LAMBDA_SOFTMAX, LAMBDA_LSE = 9.0, 6.0
    MARGIN = 0.2

    key = jax.random.PRNGKey(0)
    k_im, k_cap, k_len = jax.random.split(key, 3)
    im = jax.random.normal(k_im, (B, R, D), dtype=jnp.float32)
    s = jax.random.normal(k_cap, (B, W, D), dtype=jnp.float32)
    # SCAN feeds l2-normalized features to the loss; also snap inputs to
    # bf16-representable values so MXU precision modes cannot skew the check.
    im = im / (jnp.sqrt(jnp.sum(im * im, axis=-1, keepdims=True)) + 1e-8)
    s = s / (jnp.sqrt(jnp.sum(s * s, axis=-1, keepdims=True)) + 1e-8)
    im = im.astype(jnp.bfloat16).astype(jnp.float32)
    s = s.astype(jnp.bfloat16).astype(jnp.float32)
    s_l = jax.random.randint(k_len, (B,), minval=4, maxval=W + 1, dtype=jnp.int32)

    # Pallas forward (module-equivalent entry point) + extra configs.
    loss = contrastive_loss_forward(
        im, s, s_l, margin=MARGIN, max_violation=False, cross_attn='t2i',
        lambda_softmax=LAMBDA_SOFTMAX, lambda_lse=LAMBDA_LSE,
        raw_feature_norm='clipped_l2norm', agg_func='LogSumExp')
    scores = xattn_score_t2i_pallas(
        im, s, s_l, lambda_softmax=LAMBDA_SOFTMAX, lambda_lse=LAMBDA_LSE,
        raw_feature_norm='clipped_l2norm', agg_func='LogSumExp')
    loss_mv = contrastive_loss_pallas(scores, margin=MARGIN, max_violation=True)
    scores, loss, loss_mv = jax.block_until_ready((scores, loss, loss_mv))

    # Pure-JAX reference mirroring the PyTorch module.
    scores_ref = _xattn_score_t2i_ref(
        im, s, s_l, lambda_softmax=LAMBDA_SOFTMAX, lambda_lse=LAMBDA_LSE,
        raw_feature_norm='clipped_l2norm', agg_func='LogSumExp')
    ref = _contrastive_loss_ref(scores_ref, MARGIN, False)
    ref_mv = _contrastive_loss_ref(scores_ref, MARGIN, True)

    assert scores.shape == (B, B)
    # Tolerances cover MXU pass-precision differences between the Pallas dots
    # and the XLA reference; algorithmic errors would be orders larger.
    assert jnp.allclose(scores, scores_ref, atol=1e-2, rtol=1e-2), "scores mismatch"
    assert jnp.allclose(loss, ref, atol=1e-2, rtol=2e-2), "loss mismatch"
    assert jnp.allclose(loss_mv, ref_mv, atol=1e-2, rtol=2e-2), "max_violation loss mismatch"

    print("KERNEL_OK")
</pallas_src>

<mosaic_0001>
module attributes {stable_mosaic.version = 11 : i64} {
  func.func @_xattn_t2i_kernel(%arg0: i32, %arg1: i32, %arg2: memref<8xi32, #tpu.memory_space<smem>>, %arg3: memref<8x16x32xf32, #tpu.memory_space<vmem>>, %arg4: memref<1x12x32xf32, #tpu.memory_space<vmem>>, %arg5: memref<1x8x1xf32, #tpu.memory_space<vmem>>) attributes {dimension_semantics = [#tpu.dimension_semantics<parallel>, #tpu.dimension_semantics<arbitrary>], iteration_bounds = array<i64: 1, 8>, scalar_prefetch = 1 : i64, scratch_operands = 0 : i64, tpu.core_type = #tpu.core_type<tc>, window_params = [{transform_indices = @transform_0, window_bounds = array<i64: 8, 16, 32>}, {transform_indices = @transform_1, window_bounds = array<i64: 1, 12, 32>}, {transform_indices = @transform_2, window_bounds = array<i64: 1, 8, 1>}]} {
    %0 = arith.index_cast %arg1 : i32 to index
    %1 = memref.load %arg2[%0] : memref<8xi32, #tpu.memory_space<smem>>
    %c0 = arith.constant 0 : index
    %c0_0 = arith.constant 0 : index
    %c0_1 = arith.constant 0 : index
    %2 = vector.load %arg3[%c0, %c0_0, %c0_1] : memref<8x16x32xf32, #tpu.memory_space<vmem>>, vector<8x16x32xf32>
    %c0_2 = arith.constant 0 : index
    %c0_3 = arith.constant 0 : index
    %c0_4 = arith.constant 0 : index
    %3 = vector.load %arg4[%c0_2, %c0_3, %c0_4] : memref<1x12x32xf32, #tpu.memory_space<vmem>>, vector<1x12x32xf32>
    %4 = vector.shape_cast %3 : vector<1x12x32xf32> to vector<12x32xf32>
    %5 = tpu.iota {dimensions = array<i32: 0>} : vector<12x1xi32>
    %6 = vector.broadcast %1 : i32 to vector<12x1xi32>
    %7 = arith.cmpi slt, %5, %6 : vector<12x1xi32>
    %cst = arith.constant 0.000000e+00 : f32
    %8 = vector.broadcast %cst : f32 to vector<12x32xf32>
    %9 = vector.shape_cast %7 : vector<12x1xi1> to vector<12x1xi1>
    %10 = vector.broadcast %9 : vector<12x1xi1> to vector<12x32xi1>
    %11 = arith.select %10, %4, %8 : vector<12x32xi1>, vector<12x32xf32>
    %12 = vector.shape_cast %2 : vector<8x16x32xf32> to vector<128x32xf32>
    "tpu.trace_start"() <{level = 10 : i32, message = "nd,wd->nw"}> : () -> ()
    %cst_5 = arith.constant dense<0.000000e+00> : vector<128x12xf32>
    %13 = tpu.matmul %12, %11, %cst_5 {dimension_numbers = #tpu.dot_dimension_numbers<[1], [1], [0], [0], [0, 0, 1, 0], [], []>} : vector<128x32xf32>, vector<12x32xf32>, vector<128x12xf32> -> vector<128x12xf32>
    %cst_6 = arith.constant 0.000000e+00 : f32
    "tpu.trace_stop"() : () -> ()
    %14 = vector.broadcast %cst_6 : f32 to vector<128x12xf32>
    %15 = arith.cmpf ogt, %13, %14 : vector<128x12xf32>
    %cst_7 = arith.constant 1.000000e-01 : f32
    %16 = vector.broadcast %cst_7 : f32 to vector<128x12xf32>
    %17 = arith.mulf %16, %13 : vector<128x12xf32>
    %18 = arith.select %15, %13, %17 : vector<128x12xi1>, vector<128x12xf32>
    %19 = arith.mulf %18, %18 : vector<128x12xf32>
    %cst_8 = arith.constant dense<0.000000e+00> : vector<128xf32>
    %20 = vector.multi_reduction <add>, %19, %cst_8 [1] : vector<128x12xf32> to vector<128xf32>
    %21 = vector.shape_cast %20 : vector<128xf32> to vector<128x1xf32>
    %22 = math.sqrt %21 : vector<128x1xf32>
    %cst_9 = arith.constant 9.99999993E-9 : f32
    %23 = vector.broadcast %cst_9 : f32 to vector<128x1xf32>
    %24 = arith.addf %22, %23 : vector<128x1xf32>
    %25 = tpu.reciprocal %24 : vector<128x1xf32> -> vector<128x1xf32>
    %26 = vector.broadcast %25 : vector<128x1xf32> to vector<128x12xf32>
    %27 = arith.mulf %18, %26 : vector<128x12xf32>
    %28 = vector.shape_cast %27 : vector<128x12xf32> to vector<8x16x12xf32>
    %29 = tpu.transpose %28, [0, 2, 1] : vector<8x16x12xf32> -> vector<8x12x16xf32>
    %cst_10 = arith.constant 9.000000e+00 : f32
    %30 = vector.broadcast %cst_10 : f32 to vector<8x12x16xf32>
    %31 = arith.mulf %29, %30 : vector<8x12x16xf32>
    %cst_11 = arith.constant dense<0xFF800000> : vector<8x12xf32>
    %32 = vector.multi_reduction <maximumf>, %31, %cst_11 [2] : vector<8x12x16xf32> to vector<8x12xf32>
    %33 = vector.shape_cast %32 : vector<8x12xf32> to vector<8x12x1xf32>
    %34 = vector.broadcast %33 : vector<8x12x1xf32> to vector<8x12x16xf32>
    %35 = arith.subf %31, %34 : vector<8x12x16xf32>
    %36 = math.exp %35 : vector<8x12x16xf32>
    %cst_12 = arith.constant dense<0.000000e+00> : vector<8x12xf32>
    %37 = vector.multi_reduction <add>, %36, %cst_12 [2] : vector<8x12x16xf32> to vector<8x12xf32>
    %38 = vector.shape_cast %37 : vector<8x12xf32> to vector<8x12x1xf32>
    %39 = tpu.reciprocal %38 : vector<8x12x1xf32> -> vector<8x12x1xf32>
    %40 = vector.broadcast %39 : vector<8x12x1xf32> to vector<8x12x16xf32>
    %41 = arith.mulf %36, %40 : vector<8x12x16xf32>
    "tpu.trace_start"() <{level = 10 : i32, message = "bwr,brd->bwd"}> : () -> ()
    %cst_13 = arith.constant dense<0.000000e+00> : vector<8x12x32xf32>
    %42 = tpu.matmul %41, %2, %cst_13 {dimension_numbers = #tpu.dot_dimension_numbers<[2], [1], [1], [2], [0, 0, 0, 1, 1, 2], [0], [0]>} : vector<8x12x16xf32>, vector<8x16x32xf32>, vector<8x12x32xf32> -> vector<8x12x32xf32>
    "tpu.trace_stop"() : () -> ()
    %43 = vector.shape_cast %11 : vector<12x32xf32> to vector<1x12x32xf32>
    %44 = vector.broadcast %43 : vector<1x12x32xf32> to vector<8x12x32xf32>
    %45 = arith.mulf %44, %42 : vector<8x12x32xf32>
    %cst_14 = arith.constant dense<0.000000e+00> : vector<8x12xf32>
    %46 = vector.multi_reduction <add>, %45, %cst_14 [2] : vector<8x12x32xf32> to vector<8x12xf32>
    %47 = arith.mulf %43, %43 : vector<1x12x32xf32>
    %cst_15 = arith.constant dense<0.000000e+00> : vector<1x12xf32>
    %48 = vector.multi_reduction <add>, %47, %cst_15 [2] : vector<1x12x32xf32> to vector<1x12xf32>
    %49 = math.sqrt %48 : vector<1x12xf32>
    %50 = arith.mulf %42, %42 : vector<8x12x32xf32>
    %cst_16 = arith.constant dense<0.000000e+00> : vector<8x12xf32>
    %51 = vector.multi_reduction <add>, %50, %cst_16 [2] : vector<8x12x32xf32> to vector<8x12xf32>
    %52 = math.sqrt %51 : vector<8x12xf32>
    %53 = vector.broadcast %49 : vector<1x12xf32> to vector<8x12xf32>
    %54 = arith.mulf %53, %52 : vector<8x12xf32>
    %cst_17 = arith.constant 9.99999993E-9 : f32
    %55 = vector.broadcast %cst_17 : f32 to vector<8x12xf32>
    %56 = arith.maximumf %54, %55 : vector<8x12xf32>
    %57 = tpu.reciprocal %56 : vector<8x12xf32> -> vector<8x12xf32>
    %58 = arith.mulf %46, %57 : vector<8x12xf32>
    %59 = tpu.iota {dimensions = array<i32: 1>} : vector<1x12xi32>
    %60 = vector.broadcast %1 : i32 to vector<1x12xi32>
    %61 = arith.cmpi slt, %59, %60 : vector<1x12xi32>
    %cst_18 = arith.constant 6.000000e+00 : f32
    %62 = vector.broadcast %cst_18 : f32 to vector<8x12xf32>
    %63 = arith.mulf %62, %58 : vector<8x12xf32>
    %64 = math.exp %63 : vector<8x12xf32>
    %cst_19 = arith.constant 0.000000e+00 : f32
    %65 = vector.shape_cast %61 : vector<1x12xi1> to vector<1x12xi1>
    %66 = vector.broadcast %65 : vector<1x12xi1> to vector<8x12xi1>
    %67 = vector.broadcast %cst_19 : f32 to vector<8x12xf32>
    %68 = arith.select %66, %64, %67 : vector<8x12xi1>, vector<8x12xf32>
    %cst_20 = arith.constant dense<0.000000e+00> : vector<8xf32>
    %69 = vector.multi_reduction <add>, %68, %cst_20 [1] : vector<8x12xf32> to vector<8xf32>
    %70 = vector.shape_cast %69 : vector<8xf32> to vector<8x1xf32>
    %71 = math.log %70 : vector<8x1xf32>
    %cst_21 = arith.constant 6.000000e+00 : f32
    %72 = vector.broadcast %cst_21 : f32 to vector<8x1xf32>
    %73 = arith.divf %71, %72 : vector<8x1xf32>
    %74 = vector.shape_cast %73 : vector<8x1xf32> to vector<1x8x1xf32>
    %c0_22 = arith.constant 0 : index
    %c0_23 = arith.constant 0 : index
    %c0_24 = arith.constant 0 : index
    %75 = vector.load %arg5[%c0_22, %c0_23, %c0_24] : memref<1x8x1xf32, #tpu.memory_space<vmem>>, vector<1x8x1xf32>
    tpu.vector_store %arg5[%c0_22, %c0_23, %c0_24], %74 {strides = array<i32>} : memref<1x8x1xf32, #tpu.memory_space<vmem>>, vector<1x8x1xf32>,
    return
  }
  func.func @transform_0(%arg0: i32, %arg1: i32, %arg2: memref<8xi32, #tpu.memory_space<smem>>) -> (i32, i32, i32) {
    %c0_i32 = arith.constant 0 : i32
    %c0_i32_0 = arith.constant 0 : i32
    %c0_i32_1 = arith.constant 0 : i32
    return %arg0, %c0_i32, %c0_i32_0 : i32, i32, i32
  }
  func.func @transform_1(%arg0: i32, %arg1: i32, %arg2: memref<8xi32, #tpu.memory_space<smem>>) -> (i32, i32, i32) {
    %c0_i32 = arith.constant 0 : i32
    %c0_i32_0 = arith.constant 0 : i32
    %c0_i32_1 = arith.constant 0 : i32
    return %arg1, %c0_i32, %c0_i32_0 : i32, i32, i32
  }
  func.func @transform_2(%arg0: i32, %arg1: i32, %arg2: memref<8xi32, #tpu.memory_space<smem>>) -> (i32, i32, i32) {
    %c0_i32 = arith.constant 0 : i32
    %c0_i32_0 = arith.constant 0 : i32
    return %arg1, %arg0, %c0_i32 : i32, i32, i32
  }
}

</mosaic_0001>

<bundles_post_ra>
// kernel: tpu_custom_call.1
= control target key start
LH: loop header
LB: loop body
LE: loop exit
PB: predicated region body
PF: predicated region fallthrough
CT: control target
= control target key end

     0   :  { %s2989_s15 = smov [#allocation3]   ;;  %s4722_s0 = inlined_call_operand.vmem [shape: s32[8], index: 0, kind: input, shape index: {}]   ;;  %s4723_s1 = inlined_call_operand.vmem [shape: f32[8,16,32], index: 1, kind: input, shape index: {}]   ;;  %s4724_s2 = inlined_call_operand.vmem [shape: f32[8,12,32], index: 2, kind: input, shape index: {}]   ;;  %s4725_s3 = inlined_call_operand.vmem [shape: f32[8,8,1], index: 3, kind: output, shape index: {}]  }
   0x1   :  { %s9_s14 = sshll.u32 %s4722_s0, 4  ;;  %s10_s14 = int_to_ptr.vmem [resolvable:$true] %s9_s14 }
   0x2   :  { %12 = dma.vmem_to_smem %s10_s14, 16, %s2989_s15, [#allocation2] }
   0x3   :  { %2975 = dma.done.wait [#allocation2], 16 }
   0x4   :  { %2976 = vsyncadd [#allocation2], 4294967280 }
   0x5   :  { %15 = sfence }
   0x6   :  { %s3014_s16 = smov 0   ;;  %s3016_s17 = smov 0  }
   0x7   :  { %s3018_s18 = smov 0  }
   0x8 LB: > { %s30_s0 = sadd.s32 1, %s2983_s17  ;;  %p2641_p0 = scmp.ge.s32.totalorder %s2987_s18, 1  ;;  %s2987_s18 = sphi %s3018_s18, %s21_s18   ;;  %s2983_s17 = sphi %s3016_s17, %s4822_s17   ;;  %s2979_s16 = sphi %s3014_s16, %s4821_s16  }
   0x9   : > { %p31_p1 = scmp.ge.s32.totalorder %s30_s0, 8  ;;  %p147_p2 = scmp.lt.s32.totalorder %s2987_s18, 9 }
   0xb   : > { %s4824_s0 = smov (%p31_p1, %s30_s0), 0  ;;  %p148_p3 = pnand %p2641_p0, %p147_p2 }
   0xc   : > { %p184_p4 = scmp.lt.s32.totalorder (!%p148_p3), %s2979_s16, 7  ;;  %s196_s19 = sld [smem:[#allocation3 + %s2979_s16]] (!%p148_p3) }
   0xd   : > { %151 = sbr.rel (%p148_p3) target bundleno = 1488 (0x5d0), region = 28 }
  0x12   : > { %v4726_v0 = vlaneseq  ;;  %s4826_s16 = smov (!%p184_p4, %s2979_s16), 7  ;;  %v3039_v4 = vstv %s196_s19  ;;  %vm4728_vm0 = vcmask 261120   ;;  %v197_v8 = vld [vmem:[%s4723_s1] sm:$0xff]  ;;  %v207_v10 = vld [vmem:[%s4723_s1 + $0x50] sm:$0xff]  ;;  %v198_v12 = vld [vmem:[%s4723_s1 + $0x8] sm:$0xff]  ;;  %vm4727_vm5 = vcmask 97280  }
  0x13   : > { %s2681_s20 = sshll.u32 %s4826_s16, 4  ;;  %v205_v9 = vld [vmem:[%s4723_s1 + $0x40] sm:$0xff]  ;;  %v200_v13 = vld [vmem:[%s4723_s1 + $0x18] sm:$0xff]  ;;  %v199_v14 = vld [vmem:[%s4723_s1 + $0x10] sm:$0xff]  ;;  %s2644_s13 = sshll.u32 %s4826_s16, 3 }
  0x14   : > { %v216_v1 = vshrl.u32 %v4726_v0, 7  ;;  %s188_s23 = scalar_lea.vmem %s4724_s2, %s2681_s20  ;;  %v209_v11 = vld [vmem:[%s4723_s1 + $0x60] sm:$0xff]  ;;  %v202_v15 = vld [vmem:[%s4723_s1 + $0x28] sm:$0xff]  ;;  %v208_v18 = vld [vmem:[%s4723_s1 + $0x58] sm:$0xff]  ;;  %s195_s19 = scalar_lea.vmem %s4725_s3, %s2644_s13 }
  0x15   : > { %v214_v3 = vld [vmem:[%s188_s23 + $0x8] sm:$0xf]  ;;  %v213_v5 = vld [vmem:[%s188_s23] sm:$0xff]  ;;  %v211_v20 = vld [vmem:[%s4723_s1 + $0x70] sm:$0xff] }
  0x16   : > { %v217_v2 = vadd.s32 8, %v216_v1  ;;  %vm219_vm2 = vcmp.lt.s32.totalorder %v216_v1, %v3039_v4  ;;  %v206_v16 = vld [vmem:[%s4723_s1 + $0x48] sm:$0xff]  ;;  %v201_v17 = vld [vmem:[%s4723_s1 + $0x20] sm:$0xff]  ;;  %v204_v21 = vld [vmem:[%s4723_s1 + $0x38] sm:$0xff] }
  0x17   : > { %v3053_v7 = vsel %vm219_vm2, %v213_v5, 0.0  ;;  %v210_v19 = vld [vmem:[%s4723_s1 + $0x68] sm:$0xff]  ;;  %v203_v22 = vld [vmem:[%s4723_s1 + $0x30] sm:$0xff]  ;;  %v212_v23 = vld [vmem:[%s4723_s1 + $0x78] sm:$0xff] }
  0x18   : > { %vm220_vm1 = vcmp.lt.s32.totalorder %v217_v2, %v3039_v4 }
  0x19   : > { %v3043_v6 = vsel %vm220_vm1, %v214_v3, 0.0 }
  0x1a   : > { %2645 = vmatpush.xpose.msk.msra.mxu0 %vm4728_vm0, %v3043_v6  ;;  %2682 = vmatpush.xpose.msk.msra.mxu1 %vm4728_vm0, %v3043_v6 }
  0x1b   : > { %2683 = vmatpush.xpose.msk.msra.mxu2 %vm4728_vm0, %v3043_v6  ;;  %2684 = vmatpush.xpose.msk.msra.mxu3 %vm4728_vm0, %v3043_v6 }
  0x1e   : > { %2646 = vmatpush.xpose.msk.msra.mxu0 %vm4728_vm0, %v3053_v7  ;;  %2685 = vmatpush.xpose.msk.msra.mxu1 %vm4728_vm0, %v3053_v7 }
  0x1f   : > { %2686 = vmatpush.xpose.msk.msra.mxu2 %vm4728_vm0, %v3053_v7  ;;  %2687 = vmatpush.xpose.msk.msra.mxu3 %vm4728_vm0, %v3053_v7 }
  0x21   : > { %2647 = vmatmul.msk.f32.vlgmr.msra.gmra.mxu0 %vm4728_vm0, %v197_v8  ;;  %2655 = vmatmul.msk.f32.vlgmr.msra.gmra.mxu1 %vm4728_vm0, %v205_v9 }
  0x22   : > { %1586 = vmatpush.msrb.mxu1 %v198_v12  ;;  %2657 = vmatmul.msk.f32.vlgmr.msra.gmra.mxu2 %vm4728_vm0, %v207_v10 }
  0x23   : > { %1615 = vmatpush.msrb.mxu2 %v200_v13  ;;  %2659 = vmatmul.msk.f32.vlgmr.msra.gmra.mxu3 %vm4728_vm0, %v209_v11 }
  0x24   : > { %1644 = vmatpush.msrb.mxu3 %v202_v15  ;;  %1587 = vmatpush.msrb.mxu1 %v197_v8 }
  0x25   : > { %1616 = vmatpush.msrb.mxu2 %v199_v14 }
  0x26   : > { %1645 = vmatpush.msrb.mxu3 %v201_v17  ;;  %1673 = vmatpush.msra.mxu1 %v204_v21 }
  0x27   : > { %1702 = vmatpush.msra.mxu2 %v206_v16 }
  0x28   : > { %1731 = vmatpush.msra.mxu3 %v208_v18  ;;  %1674 = vmatpush.msra.mxu1 %v203_v22 }
  0x29   : > { %1703 = vmatpush.msra.mxu2 %v205_v9  ;;  %2648 = vmatmul.msk.f32.gmra.mxu0 %vm4728_vm0, %v198_v12 }
  0x2a   : > { %1732 = vmatpush.msra.mxu3 %v207_v10  ;;  %2656 = vmatmul.msk.f32.gmra.mxu1 %vm4728_vm0, %v206_v16 }
  0x2b   : > { %2658 = vmatmul.msk.f32.gmra.mxu2 %vm4728_vm0, %v208_v18  ;;  %2660 = vmatmul.msk.f32.gmra.mxu3 %vm4728_vm0, %v210_v19 }
  0x31   : > { %2649 = vmatmul.msk.f32.gmra.mxu0 %vm4728_vm0, %v199_v14 }
  0x33   : > { %2661 = vmatmul.msk.f32.gmra.mxu3 %vm4728_vm0, %v211_v20 }
  0x39   : > { %2650 = vmatmul.msk.f32.gmra.mxu0 %vm4728_vm0, %v200_v13 }
  0x3b   : > { %2662 = vmatmul.msk.f32.gmra.mxu3 %vm4728_vm0, %v212_v23 }
  0x41   : > { %2651 = vmatmul.msk.f32.gmra.mxu0 %vm4728_vm0, %v201_v17 }
  0x49   : > { %2652 = vmatmul.msk.f32.gmra.mxu0 %vm4728_vm0, %v202_v15 }
  0x51   : > { %2653 = vmatmul.msk.f32.gmra.mxu0 %vm4728_vm0, %v203_v22 }
  0x59   : > { %2654 = vmatmul.msk.f32.gmra.mxu0 %vm4728_vm0, %v204_v21 }
  0x9e   : > { %v299_v24 = vpop.f32.mrf.mxu0  ;;  %v323_v25 = vpop.f32.mrf.mxu1 }
  0x9f   : > { %vm347_vm3 = vcmp.gt.f32.partialorder %v299_v24, 0.0  ;;  %v363_v26 = vmul.f32 0.1, %v299_v24  ;;  %vm355_vm4 = vcmp.gt.f32.partialorder %v323_v25, 0.0  ;;  %v371_v27 = vmul.f32 0.1, %v323_v25 }
  0xa1   : > { %v3127_v28 = vsel %vm355_vm4, %v323_v25, %v371_v27  ;;  %v3129_v29 = vsel %vm347_vm3, %v299_v24, %v363_v26 }
  0xa2   : > { %v403_v30 = vmul.f32 %v3127_v28, %v3127_v28  ;;  %v395_v31 = vmul.f32 %v3129_v29, %v3129_v29 }
  0xa4   : > { %v436_v32 = vsel %vm4727_vm5, %v403_v30, 0.0  ;;  %v412_v33 = vsel %vm4727_vm5, %v395_v31, 0.0 }
  0xa5   : > { %v329_v34 = vpop.f32.mrf.mxu2  ;;  %437 = vadd.xlane.f32.xlu2 %v436_v32  ;;  %413 = vadd.xlane.f32.xlu1 %v412_v33 }
  0xa6   : > { %v335_v35 = vpop.f32.mrf.mxu3  ;;  %vm357_vm6 = vcmp.gt.f32.partialorder %v329_v34, 0.0  ;;  %v373_v36 = vmul.f32 0.1, %v329_v34  ;;  %v302_v38 = vpop.f32.mrf.mxu0 }
  0xa7   : > { %vm359_vm7 = vcmp.gt.f32.partialorder %v335_v35, 0.0  ;;  %v375_v37 = vmul.f32 0.1, %v335_v35  ;;  %v364_v39 = vmul.f32 0.1, %v302_v38  ;;  %vm348_vm8 = vcmp.gt.f32.partialorder %v302_v38, 0.0  ;;  %v326_v47 = vpop.f32.mrf.mxu1 }
  0xa8   : > { %v3139_v41 = vsel %vm357_vm6, %v329_v34, %v373_v36  ;;  %v372_v53 = vmul.f32 0.1, %v326_v47  ;;  %vm356_vm10 = vcmp.gt.f32.partialorder %v326_v47, 0.0 }
  0xa9   : > { %v3137_v40 = vsel %vm359_vm7, %v335_v35, %v375_v37  ;;  %v405_v43 = vmul.f32 %v3139_v41, %v3139_v41  ;;  %v3146_v45 = vsel %vm348_vm8, %v302_v38, %v364_v39 }
  0xaa   : > { %v407_v42 = vmul.f32 %v3137_v40, %v3137_v40  ;;  %v396_v52 = vmul.f32 %v3146_v45, %v3146_v45  ;;  %v3157_v59 = vsel %vm356_vm10, %v326_v47, %v372_v53 }
  0xab   : > { %v442_v46 = vsel %vm4727_vm5, %v405_v43, 0.0  ;;  %v404_v1 = vmul.f32 %v3157_v59, %v3157_v59 }
  0xac   : > { %v448_v44 = vsel %vm4727_vm5, %v407_v42, 0.0  ;;  %v415_v57 = vsel %vm4727_vm5, %v396_v52, 0.0 }
  0xad   : > { %449 = vadd.xlane.f32.xlu2 %v448_v44  ;;  %443 = vadd.xlane.f32.xlu1 %v442_v46  ;;  %v439_v9 = vsel %vm4727_vm5, %v404_v1, 0.0 }
  0xae   : > { %v332_v48 = vpop.f32.mrf.mxu2  ;;  %v338_v49 = vpop.f32.mrf.mxu3 }
  0xaf   : > { %vm358_vm9 = vcmp.gt.f32.partialorder %v332_v48, 0.0  ;;  %v374_v50 = vmul.f32 0.1, %v332_v48  ;;  %v305_v51 = vpop.f32.mrf.mxu0  ;;  %v376_v54 = vmul.f32 0.1, %v338_v49  ;;  %vm360_vm11 = vcmp.gt.f32.partialorder %v338_v49, 0.0 }
  0xb0   : > { %v365_v3 = vmul.f32 0.1, %v305_v51  ;;  %vm349_vm13 = vcmp.gt.f32.partialorder %v305_v51, 0.0 }
  0xb1   : > { %v3151_v55 = vsel %vm358_vm9, %v332_v48, %v374_v50  ;;  %v3159_v60 = vsel %vm360_vm11, %v338_v49, %v376_v54 }
  0xb2   : > { %v406_v56 = vmul.f32 %v3151_v55, %v3151_v55  ;;  %v408_v2 = vmul.f32 %v3159_v60, %v3159_v60  ;;  %v3172_v12 = vsel %vm349_vm13, %v305_v51, %v365_v3 }
  0xb3   : > { %v397_v17 = vmul.f32 %v3172_v12, %v3172_v12 }
  0xb4   : > { %v445_v58 = vsel %vm4727_vm5, %v406_v56, 0.0  ;;  %v451_v10 = vsel %vm4727_vm5, %v408_v2, 0.0 }
  0xb5   : > { %446 = vadd.xlane.f32.xlu0 %v445_v58  ;;  %416 = vadd.xlane.f32.xlu1 %v415_v57  ;;  %v418_v23 = vsel %vm4727_vm5, %v397_v17, 0.0 }
  0xb6   : > { %v341_v61 = vpop.f32.mrf.mxu3 }
  0xb7   : > { %vm361_vm12 = vcmp.gt.f32.partialorder %v341_v61, 0.0  ;;  %v377_v62 = vmul.f32 0.1, %v341_v61  ;;  %v308_v63 = vpop.f32.mrf.mxu0 }
  0xb8   : > { %v366_v18 = vmul.f32 0.1, %v308_v63  ;;  %vm350_vm1 = vcmp.gt.f32.partialorder %v308_v63, 0.0 }
  0xb9   : > { %v3165_v5 = vsel %vm361_vm12, %v341_v61, %v377_v62 }
  0xba   : > { %v409_v8 = vmul.f32 %v3165_v5, %v3165_v5  ;;  %v3187_v26 = vsel %vm350_vm1, %v308_v63, %v366_v18 }
  0xbb   : > { %v398_v31 = vmul.f32 %v3187_v26, %v3187_v26 }
  0xbc   : > { %v454_v11 = vsel %vm4727_vm5, %v409_v8, 0.0 }
  0xbd   : > { %452 = vadd.xlane.f32.xlu0 %v451_v10  ;;  %455 = vadd.xlane.f32.xlu2 %v454_v11  ;;  %v421_v33 = vsel %vm4727_vm5, %v398_v31, 0.0 }
  0xbe   : > { %440 = vadd.xlane.f32.xlu1 %v439_v9  ;;  %v344_v13 = vpop.f32.mrf.mxu3 }
  0xbf   : > { %v311_v14 = vpop.f32.mrf.mxu0  ;;  %vm362_vm14 = vcmp.gt.f32.partialorder %v344_v13, 0.0  ;;  %v378_v15 = vmul.f32 0.1, %v344_v13 }
  0xc0   : > { %vm351_vm15 = vcmp.gt.f32.partialorder %v311_v14, 0.0  ;;  %v367_v16 = vmul.f32 0.1, %v311_v14 }
  0xc1   : > { %v3176_v19 = vsel %vm362_vm14, %v344_v13, %v378_v15 }
  0xc2   : > { %v410_v20 = vmul.f32 %v3176_v19, %v3176_v19  ;;  %v3180_v21 = vsel %vm351_vm15, %v311_v14, %v367_v16 }
  0xc3   : > { %v399_v22 = vmul.f32 %v3180_v21, %v3180_v21 }
  0xc4   : > { %v457_v24 = vsel %vm4727_vm5, %v410_v20, 0.0 }
  0xc5   : > { %419 = vadd.xlane.f32.xlu0 %v418_v23  ;;  %v424_v25 = vsel %vm4727_vm5, %v399_v22, 0.0 }
  0xc6   : > { %458 = vadd.xlane.f32.xlu1 %v457_v24  ;;  %425 = vadd.xlane.f32.xlu2 %v424_v25 }
  0xc7   : > { %v314_v27 = vpop.f32.mrf.mxu0 }
  0xc8   : > { %vm352_vm2 = vcmp.gt.f32.partialorder %v314_v27, 0.0  ;;  %v368_v30 = vmul.f32 0.1, %v314_v27 }
  0xca   : > { %v3191_v32 = vsel %vm352_vm2, %v314_v27, %v368_v30 }
  0xcb   : > { %v400_v34 = vmul.f32 %v3191_v32, %v3191_v32 }
  0xcd   : > { %422 = vadd.xlane.f32.xlu0 %v421_v33  ;;  %v427_v37 = vsel %vm4727_vm5, %v400_v34, 0.0 }
  0xcf   : > { %v317_v35 = vpop.f32.mrf.mxu0 }
  0xd0   : > { %vm353_vm3 = vcmp.gt.f32.partialorder %v317_v35, 0.0  ;;  %v369_v36 = vmul.f32 0.1, %v317_v35 }
  0xd2   : > { %v3197_v38 = vsel %vm353_vm3, %v317_v35, %v369_v36 }
  0xd3   : > { %v401_v39 = vmul.f32 %v3197_v38, %v3197_v38 }
  0xd5   : > { %428 = vadd.xlane.f32.xlu0 %v427_v37  ;;  %v430_v42 = vsel %vm4727_vm5, %v401_v39, 0.0 }
  0xd6   : > { %431 = vadd.xlane.f32.xlu2 %v430_v42 }
  0xd7   : > { %v320_v43 = vpop.f32.mrf.mxu0 }
  0xd8   : > { %vm354_vm4 = vcmp.gt.f32.partialorder %v320_v43, 0.0  ;;  %v370_v44 = vmul.f32 0.1, %v320_v43 }
  0xda   : > { %v3202_v46 = vsel %vm354_vm4, %v320_v43, %v370_v44 }
  0xdb   : > { %v402_v47 = vmul.f32 %v3202_v46, %v3202_v46 }
  0xdd   : > { %v433_v48 = vsel %vm4727_vm5, %v402_v47, 0.0 }
  0xde   : > { %434 = vadd.xlane.f32.xlu0 %v433_v48 }
 0x118   : > { %v3207_v49 = vpop.xlane.xlu2 %437  ;;  %v414_v50 = vpop.xlane.xlu1 %413 }
 0x119   : > { %2715 = vrsqrt.f32 %v414_v50  ;;  %vm467_vm6 = vcmp.eq.f32.partialorder %v414_v50, inf  ;;  %v470_v30 = vand.u32 2147483648, %v414_v50  ;;  %vm469_vm7 = vcmp.eq.f32.partialorder %v414_v50, 0.0 }
 0x11a   : > { %2717 = vrsqrt.f32 %v3207_v49  ;;  %vm563_vm8 = vcmp.eq.f32.partialorder %v3207_v49, inf  ;;  %vm565_vm9 = vcmp.eq.f32.partialorder %v3207_v49, 0.0 }
 0x11f   : > { %v2716_v51 = vpop.eup %2715 }
 0x120   : > { %v3210_v52 = vpop.xlane.xlu1 %443  ;;  %v2718_v53 = vpop.eup %2717  ;;  %v461_v54 = vmul.f32 %v2716_v51, %v414_v50 }
 0x121   : > { %v3212_v57 = vpop.xlane.xlu2 %449  ;;  %v557_v58 = vmul.f32 %v2718_v53, %v3207_v49  ;;  %vm587_vm13 = vcmp.eq.f32.partialorder %v3210_v52, inf  ;;  %vm589_vm1 = vcmp.eq.f32.partialorder %v3210_v52, 0.0 }
 0x122   : > { %v462_v56 = vmul.f32 %v2716_v51, %v461_v54  ;;  %2719 = vrsqrt.f32 %v3212_v57  ;;  %vm611_vm12 = vcmp.eq.f32.partialorder %v3212_v57, inf }
 0x123   : > { %2721 = vrsqrt.f32 %v3210_v52  ;;  %v558_v1 = vmul.f32 %v2718_v53, %v557_v58 }
 0x124   : > { %v463_v61 = vmul.f32 0.5, %v462_v56 }
 0x125   : > { %v559_v9 = vmul.f32 0.5, %v558_v1 }
 0x126   : > { %v464_v62 = vsub.f32 1.5, %v463_v61 }
 0x127   : > { %v560_v18 = vsub.f32 1.5, %v559_v9 }
 0x128   : > { %v3217_v63 = vpop.xlane.xlu0 %446  ;;  %v3220_v2 = vpop.xlane.xlu1 %416  ;;  %v465_v3 = vmul.f32 %v2716_v51, %v464_v62  ;;  %v566_v62 = vand.u32 2147483648, %v3207_v49 }
 0x129   : > { %2723 = vrsqrt.f32 %v3217_v63  ;;  %v2720_v8 = vpop.eup %2719  ;;  %v561_v36 = vmul.f32 %v2718_v53, %v560_v18  ;;  %v590_v18 = vand.u32 2147483648, %v3210_v52  ;;  %vm599_vm10 = vcmp.eq.f32.partialorder %v3217_v63, inf }
 0x12a   : > { %2725 = vrsqrt.f32 %v3220_v2  ;;  %v3223_v10 = vpop.eup %2721  ;;  %v466_v11 = vmul.f32 %v465_v3, %v414_v50  ;;  %v605_v14 = vmul.f32 %v2720_v8, %v3212_v57  ;;  %vm601_vm11 = vcmp.eq.f32.partialorder %v3217_v63, 0.0 }
 0x12b   : > { %v581_v22 = vmul.f32 %v3223_v10, %v3210_v52  ;;  %v562_v48 = vmul.f32 %v561_v36, %v3207_v49  ;;  %vm479_vm14 = vcmp.eq.f32.partialorder %v3220_v2, inf  ;;  %vm481_vm15 = vcmp.eq.f32.partialorder %v3220_v2, 0.0 }
 0x12c   : > { %v468_v20 = vsel %vm467_vm6, %v414_v50, %v466_v11  ;;  %v606_v31 = vmul.f32 %v2720_v8, %v605_v14 }
 0x12d   : > { %v471_v35 = vsel %vm469_vm7, %v470_v30, %v468_v20  ;;  %v582_v37 = vmul.f32 %v3223_v10, %v581_v22  ;;  %v564_v3 = vsel %vm563_vm8, %v3207_v49, %v562_v48 }
 0x12e   : > { %v607_v43 = vmul.f32 0.5, %v606_v31  ;;  %v3241_v47 = vadd.f32 1e-08, %v471_v35 }
 0x12f   : > { %v2724_v13 = vpop.eup %2723  ;;  %v583_v50 = vmul.f32 0.5, %v582_v37  ;;  %v482_v37 = vand.u32 2147483648, %v3220_v2 }
 0x130   : > { %v593_v15 = vmul.f32 %v2724_v13, %v3217_v63  ;;  %v3227_v16 = vpop.xlane.xlu0 %452  ;;  %v2726_v17 = vpop.eup %2725  ;;  %v608_v58 = vsub.f32 1.5, %v607_v43  ;;  %vm673_vm4 = vweird.f32 %v3241_v47 }
 0x131   : > { %v473_v24 = vmul.f32 %v2726_v17, %v3220_v2  ;;  %v3232_v25 = vpop.xlane.xlu2 %455  ;;  %v3234_v27 = vpop.xlane.xlu1 %440  ;;  %v584_v9 = vsub.f32 1.5, %v583_v50 }
 0x132   : > { %v594_v23 = vmul.f32 %v2724_v13, %v593_v15  ;;  %2727 = vrsqrt.f32 %v3234_v27  ;;  %v609_v22 = vmul.f32 %v2720_v8, %v608_v58  ;;  %vm575_vm2 = vcmp.eq.f32.partialorder %v3234_v27, inf }
 0x133   : > { %v474_v34 = vmul.f32 %v2726_v17, %v473_v24  ;;  %2729 = vrsqrt.f32 %v3227_v16  ;;  %vm577_vm3 = vcmp.eq.f32.partialorder %v3234_v27, 0.0 }
 0x134   : > { %v595_v33 = vmul.f32 0.5, %v594_v23  ;;  %v602_v23 = vand.u32 2147483648, %v3217_v63  ;;  %v610_v43 = vmul.f32 %v609_v22, %v3212_v57 }
 0x135   : > { %v475_v42 = vmul.f32 0.5, %v474_v34  ;;  %v585_v34 = vmul.f32 %v3223_v10, %v584_v9 }
 0x136   : > { %v596_v39 = vsub.f32 1.5, %v595_v33 }
 0x137   : > { %v476_v54 = vsub.f32 1.5, %v475_v42 }
 0x138   : > { %v3239_v44 = vpop.xlane.xlu0 %419  ;;  %v597_v51 = vmul.f32 %v2724_v13, %v596_v39  ;;  %v2728_v53 = vpop.eup %2727 }
 0x139   : > { %2731 = vrsqrt.f32 %v3239_v44  ;;  %v3245_v56 = vpop.xlane.xlu2 %425  ;;  %v3249_v61 = vpop.eup %2729  ;;  %v569_v1 = vmul.f32 %v2728_v53, %v3234_v27  ;;  %v477_v13 = vmul.f32 %v2726_v17, %v476_v54  ;;  %v567_v17 = vsel %vm565_vm9, %v566_v62, %v564_v3 }
 0x13a   : > { %2733 = vrcp.f32 %v3241_v47  ;;  %v598_v11 = vmul.f32 %v597_v51, %v3217_v63  ;;  %v617_v24 = vmul.f32 %v3249_v61, %v3227_v16  ;;  %v3284_v50 = vadd.f32 1e-08, %v567_v17 }
 0x13b   : > { %2735 = vrsqrt.f32 %v3245_v56  ;;  %v570_v20 = vmul.f32 %v2728_v53, %v569_v1  ;;  %v478_v36 = vmul.f32 %v477_v13, %v3220_v2  ;;  %v586_v1 = vmul.f32 %v585_v34, %v3210_v52 }
 0x13c   : > { %v600_v35 = vsel %vm599_vm10, %v3217_v63, %v598_v11  ;;  %v618_v48 = vmul.f32 %v3249_v61, %v617_v24  ;;  %v578_v63 = vand.u32 2147483648, %v3234_v27  ;;  %vm491_vm8 = vcmp.eq.f32.partialorder %v3239_v44, inf }
 0x13d   : > { %v571_v31 = vmul.f32 0.5, %v570_v20  ;;  %v603_v51 = vsel %vm601_vm11, %v602_v23, %v600_v35  ;;  %v480_v3 = vsel %vm479_vm14, %v3220_v2, %v478_v36  ;;  %v3310_v36 = vsel %vm611_vm12, %v3212_v57, %v610_v43 }
 0x13e   : > { %v3297_v22 = vadd.f32 1e-08, %v603_v51  ;;  %v619_v23 = vmul.f32 0.5, %v618_v48  ;;  %v483_v17 = vsel %vm481_vm15, %v482_v37, %v480_v3  ;;  %v677_v43 = vand.u32 2147483647, %v3241_v47 }
 0x13f   : > { %v2732_v14 = vpop.eup %2731  ;;  %v572_v39 = vsub.f32 1.5, %v571_v31  ;;  %vm493_vm9 = vcmp.eq.f32.partialorder %v3239_v44, 0.0  ;;  %vm515_vm11 = vcmp.eq.f32.partialorder %v3245_v56, inf }
 0x140   : > { %v3264_v30 = vpop.xlane.xlu0 %422  ;;  %v485_v33 = vmul.f32 %v2732_v14, %v3239_v44  ;;  %v3272_v8 = vpop.eup %2733  ;;  %v620_v51 = vsub.f32 1.5, %v619_v23  ;;  %vm678_vm10 = vcmp.eq.f32.partialorder %v677_v43, 8.507059e+37 }
 0x141   : > { %2737 = vrsqrt.f32 %v3264_v30  ;;  %v2736_v49 = vpop.eup %2735  ;;  %v573_v54 = vmul.f32 %v2728_v53, %v572_v39  ;;  %v669_v62 = vmul.f32 %v3272_v8, %v3241_v47  ;;  %v588_v39 = vsel %vm587_vm13, %v3210_v52, %v586_v1 }
 0x142   : > { %v486_v42 = vmul.f32 %v2732_v14, %v485_v33  ;;  %v509_v10 = vmul.f32 %v2736_v49, %v3245_v56  ;;  %vm674_vm6 = vweird.f32 %v3272_v8  ;;  %2739 = vrcp.f32 %v3297_v22 }
 0x143   : > { %v574_v13 = vmul.f32 %v573_v54, %v3234_v27  ;;  %v670_v53 = vsub.f32 1.0, %v669_v62  ;;  %v591_v54 = vsel %vm589_vm1, %v590_v18, %v588_v39  ;;  %vm3326_vm7 = vmor %vm673_vm4, %vm674_vm6  ;;  %v679_v62 = vand.u32 2147483648, %v3241_v47 }
 0x144   : > { %v487_v58 = vmul.f32 0.5, %v486_v42  ;;  %v510_v9 = vmul.f32 %v2736_v49, %v509_v10  ;;  %v3317_v10 = vadd.f32 1e-08, %v483_v17  ;;  %vm503_vm12 = vcmp.eq.f32.partialorder %v3264_v30, inf }
 0x145   : > { %v576_v31 = vsel %vm575_vm2, %v3234_v27, %v574_v13  ;;  %v671_v34 = vmul.f32 %v3272_v8, %v670_v53  ;;  %v680_v13 = vor.u32 1.1754944e-38, %v679_v62  ;;  %v506_v39 = vand.u32 2147483648, %v3264_v30 }
 0x146   : > { %v488_v20 = vsub.f32 1.5, %v487_v58  ;;  %v511_v24 = vmul.f32 0.5, %v510_v9  ;;  %v579_v2 = vsel %vm577_vm3, %v578_v63, %v576_v31  ;;  %v621_v63 = vmul.f32 %v3249_v61, %v620_v51 }
 0x147   : > { %v2738_v11 = vpop.eup %2737  ;;  %v672_v48 = vadd.f32 %v3272_v8, %v671_v34  ;;  %v3331_v1 = vadd.f32 1e-08, %v579_v2  ;;  %v518_v61 = vand.u32 2147483648, %v3245_v56  ;;  %vm505_vm13 = vcmp.eq.f32.partialorder %v3264_v30, 0.0 }
 0x148   : > { %v497_v33 = vmul.f32 %v2738_v11, %v3264_v30  ;;  %v3305_v35 = vpop.xlane.xlu0 %428  ;;  %v489_v42 = vmul.f32 %v2732_v14, %v488_v20  ;;  %v512_v27 = vsub.f32 1.5, %v511_v24  ;;  %v494_v20 = vand.u32 2147483648, %v3239_v44  ;;  %v3354_v17 = vpop.eup %2739 }
 0x149   : > { %v676_v52 = vsel %vm3326_vm7, %v3272_v8, %v672_v48  ;;  %2741 = vrsqrt.f32 %v3305_v35  ;;  %v3342_v47 = vpop.xlane.xlu2 %431  ;;  %v3362_v34 = vmul.f32 %v621_v63, %v3227_v16  ;;  %v823_v43 = vmul.f32 %v3354_v17, %v3297_v22 }
 0x14a   : > { %v498_v37 = vmul.f32 %v2738_v11, %v497_v33  ;;  %v490_v3 = vmul.f32 %v489_v42, %v3239_v44  ;;  %v513_v18 = vmul.f32 %v2736_v49, %v512_v27  ;;  %2743 = vrcp.f32 %v3317_v10 }
 0x14b   : > { %v681_v8 = vsel %vm678_vm10, %v680_v13, %v676_v52  ;;  %2745 = vrcp.f32 %v3331_v1  ;;  %vm527_vm14 = vcmp.eq.f32.partialorder %v3305_v35, inf  ;;  %vm529_vm15 = vcmp.eq.f32.partialorder %v3305_v35, 0.0 }
 0x14c   : > { %v499_v14 = vmul.f32 0.5, %v498_v37  ;;  %v492_v23 = vsel %vm491_vm8, %v3239_v44, %v490_v3  ;;  %v892_v24 = vmul.f32 %v681_v8, %v3129_v29  ;;  %v514_v31 = vmul.f32 %v513_v18, %v3245_v56 }
 0x14d   : > { %2747 = vrsqrt.f32 %v3342_v47  ;;  %v3369_v42 = vsel %vm493_vm9, %v494_v20, %v492_v23  ;;  %v824_v52 = vsub.f32 1.0, %v823_v43  ;;  %vm827_vm1 = vweird.f32 %v3297_v22 }
 0x14e   : > { %v500_v9 = vsub.f32 1.5, %v499_v14  ;;  %908 = vxpose.xlu2.b32.start [1/2] (short) (narrow) %v892_v24, 16  ;;  %v3383_v44 = vsel %vm515_vm11, %v3245_v56, %v514_v31  ;;  %vm828_vm2 = vweird.f32 %v3354_v17  ;;  %v831_v23 = vand.u32 2147483647, %v3297_v22 }
 0x14f   : > { %v2742_v29 = vpop.eup %2741  ;;  %v825_v8 = vmul.f32 %v3354_v17, %v824_v52  ;;  %vm539_vm4 = vcmp.eq.f32.partialorder %v3342_v47, inf  ;;  %vm517_vm9 = vcmp.eq.f32.partialorder %v3245_v56, 0.0  ;;  %vm623_vm11 = vcmp.eq.f32.partialorder %v3227_v16, inf }
 0x150   : > { %v501_v53 = vmul.f32 %v2738_v11, %v500_v9  ;;  %v3359_v11 = vadd.f32 1e-08, %v591_v54  ;;  %v3374_v27 = vpop.eup %2743  ;;  %v521_v48 = vmul.f32 %v2742_v29, %v3305_v35  ;;  %v693_v0 = vand.u32 2147483648, %v3317_v10 }
 0x151   : > { %v3346_v49 = vpop.xlane.xlu0 %434  ;;  %v3389_v14 = vpop.eup %2745  ;;  %v683_v13 = vmul.f32 %v3374_v27, %v3317_v10  ;;  %vm688_vm8 = vweird.f32 %v3374_v27  ;;  %vm687_vm5 = vweird.f32 %v3317_v10 }
 0x152   : > { %v502_v33 = vmul.f32 %v501_v53, %v3264_v30  ;;  %2749 = vrsqrt.f32 %v3346_v49  ;;  %v819_v51 = vand.u32 2147483648, %v3359_v11  ;;  %v522_v58 = vmul.f32 %v2742_v29, %v521_v48  ;;  %vm689_vm0 = vmor %vm687_vm5, %vm688_vm8 }
 0x153   : > { %2751 = vrcp.f32 %v3359_v11  ;;  %v817_v62 = vand.u32 2147483647, %v3359_v11  ;;  %v554_v3 = vand.u32 2147483648, %v3346_v49  ;;  %v2748_v18 = vpop.eup %2747  ;;  %vm813_vm3 = vweird.f32 %v3359_v11 }
 0x154   : > { %v504_v2 = vsel %vm503_vm12, %v3264_v30, %v502_v33  ;;  %v530_v30 = vand.u32 2147483648, %v3305_v35  ;;  %v3394_v9 = vor.u32 1.1754944e-38, %v819_v51  ;;  %v523_v20 = vmul.f32 0.5, %v522_v58 }
 0x155   : > { %v507_v37 = vsel %vm505_vm13, %v506_v39, %v504_v2  ;;  %v533_v53 = vmul.f32 %v2748_v18, %v3342_v47  ;;  %v833_v33 = vand.u32 2147483648, %v3297_v22  ;;  %v684_v39 = vsub.f32 1.0, %v683_v13  ;;  %vm3426_vm13 = vmor %vm827_vm1, %vm828_vm2 }
 0x156   : > { %v3385_v54 = vadd.f32 1e-08, %v507_v37  ;;  %v524_v2 = vsub.f32 1.5, %v523_v20  ;;  %vm3409_vm6 = vcmp.eq.f32.partialorder %v817_v62, 8.507059e+37  ;;  %vm551_vm7 = vcmp.eq.f32.partialorder %v3346_v49, inf }
 0x157   : > { %v534_v37 = vmul.f32 %v2748_v18, %v533_v53  ;;  %vm553_vm10 = vcmp.eq.f32.partialorder %v3346_v49, 0.0  ;;  %v826_v58 = vadd.f32 %v3354_v17, %v825_v8  ;;  %v685_v52 = vmul.f32 %v3374_v27, %v684_v39 }
 0x158   : > { %v2750_v63 = vpop.eup %2749  ;;  %2753 = vrcp.f32 %v3385_v54  ;;  %v691_v13 = vand.u32 2147483647, %v3317_v10  ;;  %v525_v62 = vmul.f32 %v2742_v29, %v524_v2 }
 0x159   : > { %v2752_v24 = vpop.eup %2751  ;;  %v545_v31 = vmul.f32 %v2750_v63, %v3346_v49  ;;  %v535_v20 = vmul.f32 0.5, %v534_v37  ;;  %v686_v8 = vadd.f32 %v3374_v27, %v685_v52  ;;  %v830_v37 = vsel %vm3426_vm13, %v3354_v17, %v826_v58 }
 0x15a   : > { %v809_v48 = vmul.f32 %v2752_v24, %v3359_v11  ;;  %vm814_vm12 = vweird.f32 %v2752_v24  ;;  %v526_v29 = vmul.f32 %v525_v62, %v3305_v35  ;;  %vm692_vm1 = vcmp.eq.f32.partialorder %v691_v13, 8.507059e+37 }
 0x15b   : > { %v546_v43 = vmul.f32 %v2750_v63, %v545_v31  ;;  %v536_v39 = vsub.f32 1.5, %v535_v20  ;;  %v694_v52 = vor.u32 1.1754944e-38, %v693_v0  ;;  %2755 = vrcp.f32 %v3284_v50  ;;  %vm815_vm5 = vmor %vm813_vm3, %vm814_vm12 }
 0x15c   : > { %v810_v53 = vsub.f32 1.0, %v809_v48  ;;  %v528_v10 = vsel %vm527_vm14, %v3305_v35, %v526_v29  ;;  %v834_v58 = vor.u32 1.1754944e-38, %v833_v33  ;;  %v542_v11 = vand.u32 2147483648, %v3342_v47 }
 0x15d   : > { %v547_v15 = vmul.f32 0.5, %v546_v43  ;;  %v690_v43 = vsel %vm689_vm0, %v3374_v27, %v686_v8  ;;  %v537_v62 = vmul.f32 %v2748_v18, %v536_v39  ;;  %v531_v17 = vsel %vm529_vm15, %v530_v30, %v528_v10 }
 0x15e   : > { %v811_v2 = vmul.f32 %v2752_v24, %v810_v53  ;;  %v3438_v22 = vpop.eup %2753  ;;  %v695_v27 = vsel %vm692_vm1, %v694_v52, %v690_v43  ;;  %vm832_vm0 = vcmp.eq.f32.partialorder %v831_v23, 8.507059e+37  ;;  %v3452_v18 = vadd.f32 1e-08, %v531_v17 }
 0x15f   : > { %v548_v48 = vsub.f32 1.5, %v547_v15  ;;  %v538_v0 = vmul.f32 %v537_v62, %v3342_v47  ;;  %v893_v53 = vmul.f32 %v695_v27, %v3146_v45  ;;  %v835_v31 = vsel %vm832_vm0, %v834_v58, %v830_v37 }
 0x160   : > { %v812_v20 = vadd.f32 %v2752_v24, %v811_v2  ;;  %v789_v33 = vand.u32 2147483647, %v3284_v50  ;;  %v3462_v23 = vadd.f32 1e-08, %v3369_v42  ;;  %v3468_v45 = vsel %vm623_vm11, %v3227_v16, %v3362_v34 }
 0x161   : > { %v549_v15 = vmul.f32 %v2750_v63, %v548_v48  ;;  %909 = vxpose.xlu2.b32.end [2/2] (short) (narrow) %v893_v53, 16  ;;  %vm541_vm14 = vcmp.eq.f32.partialorder %v3342_v47, 0.0  ;;  %v519_v42 = vsel %vm517_vm9, %v518_v61, %v3383_v44  ;;  %v903_v51 = vmul.f32 %v835_v31, %v3151_v55 }
 0x162   : > { %v816_v13 = vsel %vm815_vm5, %v2752_v24, %v812_v20  ;;  %v2756_v24 = vpop.eup %2755  ;;  %2757 = vrcp.f32 %v3462_v23  ;;  %vm785_vm15 = vweird.f32 %v3284_v50  ;;  %v791_v8 = vand.u32 2147483648, %v3284_v50 }
 0x163   : > { %v821_v35 = vsel %vm3409_vm6, %v3394_v9, %v816_v13  ;;  %v550_v30 = vmul.f32 %v549_v15, %v3346_v49  ;;  %v540_v9 = vsel %vm539_vm4, %v3342_v47, %v538_v0  ;;  %2759 = vrcp.f32 %v3452_v18 }
 0x164   : > { %v902_v63 = vmul.f32 %v821_v35, %v3139_v41  ;;  %v781_v47 = vmul.f32 %v2756_v24, %v3284_v50  ;;  %v3492_v56 = vsel %vm541_vm14, %v542_v11, %v540_v9  ;;  %vm3494_vm2 = vcmp.eq.f32.partialorder %v789_v33, 8.507059e+37  ;;  %v459_v35 = vpop.xlane.xlu1 %458 }
 0x165   : > { %v552_v41 = vsel %vm551_vm7, %v3346_v49, %v550_v30  ;;  %v705_v49 = vand.u32 2147483647, %v3462_v23  ;;  %v795_v55 = vmul.f32 %v3389_v14, %v3331_v1  ;;  %vm786_vm3 = vweird.f32 %v2756_v24 }
 0x166   : > { %1068 = vxpose.xlu1.b32.start [1/2] (short) (narrow) %v902_v63, 16  ;;  %v555_v34 = vsel %vm553_vm10, %v554_v3, %v552_v41  ;;  %v782_v3 = vsub.f32 1.0, %v781_v47  ;;  %v707_v29 = vand.u32 2147483648, %v3462_v23  ;;  %v803_v2 = vand.u32 2147483647, %v3331_v1  ;;  %vm3514_vm7 = vmor %vm785_vm15, %vm786_vm3 }
 0x167   : > { %v3501_v44 = vadd.f32 1e-08, %v555_v34  ;;  %v796_v39 = vsub.f32 1.0, %v795_v55  ;;  %v3505_v37 = vadd.f32 1e-08, %v519_v42  ;;  %v711_v48 = vmul.f32 %v3438_v22, %v3385_v54 }
 0x168   : > { %v783_v43 = vmul.f32 %v2756_v24, %v782_v3  ;;  %vm799_vm4 = vweird.f32 %v3331_v1  ;;  %vm800_vm6 = vweird.f32 %v3389_v14  ;;  %v805_v52 = vand.u32 2147483648, %v3331_v1  ;;  %v2758_v10 = vpop.eup %2757 }
 0x169   : > { %v792_v20 = vor.u32 1.1754944e-38, %v791_v8  ;;  %vm701_vm8 = vweird.f32 %v3462_v23  ;;  %v797_v17 = vmul.f32 %v3389_v14, %v796_v39  ;;  %2761 = vrcp.f32 %v3505_v37  ;;  %v3521_v15 = vpop.eup %2759  ;;  %vm3534_vm10 = vmor %vm799_vm4, %vm800_vm6 }
 0x16a   : > { %2763 = vrcp.f32 %v3501_v44  ;;  %v784_v58 = vadd.f32 %v2756_v24, %v783_v43  ;;  %v697_v27 = vmul.f32 %v2758_v10, %v3462_v23  ;;  %vm3525_vm9 = vcmp.eq.f32.partialorder %v705_v49, 8.507059e+37 }
 0x16b   : > { %v708_v0 = vor.u32 1.1754944e-38, %v707_v29  ;;  %v798_v13 = vadd.f32 %v3389_v14, %v797_v17  ;;  %vm3538_vm11 = vcmp.eq.f32.partialorder %v803_v2, 8.507059e+37  ;;  %v712_v30 = vsub.f32 1.0, %v711_v48 }
 0x16c   : > { %v788_v31 = vsel %vm3514_vm7, %v2756_v24, %v784_v58  ;;  %v698_v11 = vsub.f32 1.0, %v697_v27  ;;  %vm702_vm12 = vweird.f32 %v2758_v10  ;;  %v806_v63 = vor.u32 1.1754944e-38, %v805_v52 }
 0x16d   : > { %v793_v33 = vsel %vm3494_vm2, %v792_v20, %v788_v31  ;;  %v733_v1 = vand.u32 2147483647, %v3505_v37  ;;  %v735_v9 = vand.u32 2147483648, %v3505_v37  ;;  %v713_v41 = vmul.f32 %v3438_v22, %v712_v30  ;;  %vm703_vm14 = vmor %vm701_vm8, %vm702_vm12 }
 0x16e   : > { %1069 = vxpose.xlu1.b32.end [2/2] (short) (narrow) %v903_v51, 16  ;;  %vm613_vm13 = vcmp.eq.f32.partialorder %v3212_v57, 0.0  ;;  %v900_v42 = vmul.f32 %v793_v33, %v3127_v28  ;;  %v699_v34 = vmul.f32 %v2758_v10, %v698_v11  ;;  %v802_v24 = vsel %vm3534_vm10, %v3389_v14, %v798_v13 }
 0x16f   : > { %v721_v51 = vand.u32 2147483648, %v3385_v54  ;;  %v2762_v47 = vpop.eup %2761  ;;  %v714_v8 = vadd.f32 %v3438_v22, %v713_v41  ;;  %vm715_vm1 = vweird.f32 %v3385_v54  ;;  %vm716_vm5 = vweird.f32 %v3438_v22 }
 0x170   : > { %v739_v61 = vmul.f32 %v3521_v15, %v3452_v18  ;;  %v3560_v49 = vpop.eup %2763  ;;  %1036 = vxpose.xlu2.b32.start [1/2] (short) (narrow) %v900_v42, 16  ;;  %v700_v28 = vadd.f32 %v2758_v10, %v699_v34  ;;  %v725_v55 = vmul.f32 %v2762_v47, %v3505_v37  ;;  %vm729_vm0 = vweird.f32 %v3505_v37  ;;  %vm3578_vm3 = vmor %vm715_vm1, %vm716_vm5 }
 0x171   : > { %v719_v14 = vand.u32 2147483647, %v3385_v54  ;;  %v807_v3 = vsel %vm3538_vm11, %v806_v63, %v802_v24  ;;  %vm3570_vm15 = vcmp.eq.f32.partialorder %v733_v1, 8.507059e+37  ;;  %v736_v39 = vor.u32 1.1754944e-38, %v735_v9 }
 0x172   : > { %v740_v2 = vsub.f32 1.0, %v739_v61  ;;  %v704_v48 = vsel %vm703_vm14, %v2758_v10, %v700_v28  ;;  %v726_v43 = vsub.f32 1.0, %v725_v55  ;;  %vm730_vm2 = vweird.f32 %v2762_v47 }
 0x173   : > { %v722_v23 = vor.u32 1.1754944e-38, %v721_v51  ;;  %v709_v62 = vsel %vm3525_vm9, %v708_v0, %v704_v48  ;;  %v718_v20 = vsel %vm3578_vm3, %v3438_v22, %v714_v8  ;;  %vm743_vm4 = vweird.f32 %v3452_v18  ;;  %vm3595_vm7 = vmor %vm729_vm0, %vm730_vm2 }
 0x174   : > { %v741_v10 = vmul.f32 %v3521_v15, %v740_v2  ;;  %v894_v17 = vmul.f32 %v709_v62, %v3172_v12  ;;  %v727_v58 = vmul.f32 %v2762_v47, %v726_v43  ;;  %vm744_vm6 = vweird.f32 %v3521_v15 }
 0x175   : > { %v658_v54 = vadd.f32 1e-08, %v3492_v56  ;;  %v901_v27 = vmul.f32 %v807_v3, %v3157_v59  ;;  %vm720_vm8 = vcmp.eq.f32.partialorder %v719_v14, 8.507059e+37  ;;  %v747_v22 = vand.u32 2147483647, %v3452_v18  ;;  %vm3610_vm9 = vmor %vm743_vm4, %vm744_vm6 }
 0x176   : > { %v749_v0 = vand.u32 2147483648, %v3452_v18  ;;  %940 = vxpose.xlu1.b32.start [1/2] (short) (narrow) %v894_v17, 16  ;;  %v728_v12 = vadd.f32 %v2762_v47, %v727_v58  ;;  %v723_v13 = vsel %vm720_vm8, %v722_v23, %v718_v20  ;;  %v742_v53 = vadd.f32 %v3521_v15, %v741_v10 }
 0x177   : > { %2765 = vrcp.f32 %v658_v54  ;;  %v4751_v59 = vand.u32 2147483648, %v3212_v57  ;;  %v626_v37 = vand.u32 2147483648, %v3227_v16  ;;  %v767_v30 = vmul.f32 %v3560_v49, %v3501_v44 }
 0x178   : > { %vm625_vm10 = vcmp.eq.f32.partialorder %v3227_v16, 0.0  ;;  %1037 = vxpose.xlu2.b32.end [2/2] (short) (narrow) %v901_v27, 16  ;;  %v732_v31 = vsel %vm3595_vm7, %v2762_v47, %v728_v12  ;;  %v895_v18 = vmul.f32 %v723_v13, %v3187_v26  ;;  %v750_v11 = vor.u32 1.1754944e-38, %v749_v0 }
 0x179   : > { %v615_v56 = vsel %vm613_vm13, %v4751_v59, %v3310_v36  ;;  %v627_v57 = vsel %vm625_vm10, %v626_v37, %v3468_v45  ;;  %v737_v36 = vsel %vm3570_vm15, %v736_v39, %v732_v31  ;;  %v746_v33 = vsel %vm3610_vm9, %v3521_v15, %v742_v53 }
 0x17a   : > { %v896_v63 = vmul.f32 %v737_v36, %v3180_v21  ;;  %vm748_vm11 = vcmp.eq.f32.partialorder %v747_v22, 8.507059e+37  ;;  %v664_v16 = vadd.f32 1e-08, %v615_v56  ;;  %v768_v1 = vsub.f32 1.0, %v767_v30 }
 0x17b   : > { %v3627_v41 = vadd.f32 1e-08, %v627_v57  ;;  %v751_v45 = vsel %vm748_vm11, %v750_v11, %v746_v33  ;;  %vm757_vm12 = vweird.f32 %v658_v54  ;;  %v763_v26 = vand.u32 2147483648, %v658_v54 }
 0x17c   : > { %972 = vxpose.xlu0.b32.start [1/2] (short) (narrow) %v896_v63, 16  ;;  %2767 = vrcp.f32 %v664_v16  ;;  %v761_v21 = vand.u32 2147483647, %v658_v54  ;;  %v769_v24 = vmul.f32 %v3560_v49, %v768_v1  ;;  %v897_v15 = vmul.f32 %v751_v45, %v3191_v32 }
 0x17d   : > { %v2766_v9 = vpop.eup %2765  ;;  %2769 = vrcp.f32 %v3627_v41  ;;  %vm771_vm1 = vweird.f32 %v3501_v44  ;;  %vm772_vm5 = vweird.f32 %v3560_v49  ;;  %v764_v8 = vor.u32 1.1754944e-38, %v763_v26 }
 0x17e   : > { %v753_v42 = vmul.f32 %v2766_v9, %v658_v54  ;;  %941 = vxpose.xlu1.b32.end [2/2] (short) (narrow) %v895_v18, 16  ;;  %vm758_vm13 = vweird.f32 %v2766_v9  ;;  %v775_v61 = vand.u32 2147483647, %v3501_v44  ;;  %v777_v28 = vand.u32 2147483648, %v3501_v44  ;;  %vm773_vm15 = vmor %vm771_vm1, %vm772_vm5 }
 0x17f   : > { %vm759_vm0 = vmor %vm757_vm12, %vm758_vm13  ;;  %vm762_vm14 = vcmp.eq.f32.partialorder %v761_v21, 8.507059e+37  ;;  %v770_v14 = vadd.f32 %v3560_v49, %v769_v24  ;;  %v847_v58 = vand.u32 2147483648, %v664_v16  ;;  %vm841_vm4 = vweird.f32 %v664_v16 }
 0x180   : > { %v754_v34 = vsub.f32 1.0, %v753_v42  ;;  %v778_v48 = vor.u32 1.1754944e-38, %v777_v28  ;;  %vm776_vm2 = vcmp.eq.f32.partialorder %v775_v61, 8.507059e+37  ;;  %v845_v54 = vand.u32 2147483647, %v664_v16 }
 0x181   : > { %v774_v52 = vsel %vm773_vm15, %v3560_v49, %v770_v14  ;;  %v848_v50 = vor.u32 1.1754944e-38, %v847_v58  ;;  %v861_v0 = vand.u32 2147483648, %v3627_v41  ;;  %vm855_vm9 = vweird.f32 %v3627_v41 }
 0x182   : > { %v755_v51 = vmul.f32 %v2766_v9, %v754_v34  ;;  %v2768_v47 = vpop.eup %2767  ;;  %v779_v62 = vsel %vm776_vm2, %v778_v48, %v774_v52  ;;  %vm846_vm7 = vcmp.eq.f32.partialorder %v845_v54, 8.507059e+37  ;;  %2771 = vrsqrt.f32 %v3232_v25 }
 0x183   : > { %v837_v3 = vmul.f32 %v2768_v47, %v664_v16  ;;  %v2770_v39 = vpop.eup %2769  ;;  %v899_v20 = vmul.f32 %v779_v62, %v3202_v46  ;;  %vm842_vm3 = vweird.f32 %v2768_v47  ;;  %v859_v46 = vand.u32 2147483647, %v3627_v41 }
 0x184   : > { %v756_v55 = vadd.f32 %v2766_v9, %v755_v51  ;;  %973 = vxpose.xlu0.b32.end [2/2] (short) (narrow) %v897_v15, 16  ;;  %v851_v44 = vmul.f32 %v2770_v39, %v3627_v41  ;;  %vm843_vm6 = vmor %vm841_vm4, %vm842_vm3  ;;  %vm856_vm8 = vweird.f32 %v2770_v39  ;;  %v862_v53 = vor.u32 1.1754944e-38, %v861_v0 }
 0x185   : > { %v838_v29 = vsub.f32 1.0, %v837_v3  ;;  %vm857_vm10 = vmor %vm855_vm9, %vm856_vm8  ;;  %vm860_vm11 = vcmp.eq.f32.partialorder %v859_v46, 8.507059e+37  ;;  %2773 = vrsqrt.f32 %v459_v35  ;;  %vm1184_vm12 = vcmask 125952  }
 0x186   : > { %v760_v32 = vsel %vm759_vm0, %v2766_v9, %v756_v55  ;;  %v852_v17 = vsub.f32 1.0, %v851_v44  ;;  %vm635_vm13 = vcmp.eq.f32.partialorder %v3232_v25, inf  ;;  %v638_v21 = vand.u32 2147483648, %v3232_v25 }
 0x187   : > { %v765_v2 = vsel %vm762_vm14, %v764_v8, %v760_v32  ;;  %v839_v23 = vmul.f32 %v2768_v47, %v838_v29  ;;  %vm637_vm1 = vcmp.eq.f32.partialorder %v3232_v25, 0.0  ;;  %vm1180_vm5 = vcmask 130048  }
 0x188   : > { %v898_v43 = vmul.f32 %v765_v2, %v3197_v38  ;;  %v853_v38 = vmul.f32 %v2770_v39, %v852_v17  ;;  %v2772_v30 = vpop.eup %2771  ;;  %vm647_vm0 = vcmp.eq.f32.partialorder %v459_v35, inf  ;;  %v650_v14 = vand.u32 2147483648, %v459_v35 }
 0x189   : > { %v840_v10 = vadd.f32 %v2768_v47, %v839_v23  ;;  %vm649_vm14 = vcmp.eq.f32.partialorder %v459_v35, 0.0 }
 0x18a   : > { %1004 = vxpose.xlu2.b32.start [1/2] (short) (narrow) %v898_v43, 16  ;;  %v854_v22 = vadd.f32 %v2770_v39, %v853_v38 }
 0x18b   : > { %v844_v27 = vsel %vm843_vm6, %v2768_v47, %v840_v10  ;;  %v2774_v18 = vpop.eup %2773 }
 0x18c   : > { %v849_v49 = vsel %vm846_vm7, %v848_v50, %v844_v27  ;;  %v858_v13 = vsel %vm857_vm10, %v2770_v39, %v854_v22  ;;  %v641_v33 = vmul.f32 %v2774_v18, %v459_v35 }
 0x18d   : > { %v904_v12 = vmul.f32 %v849_v49, %v3137_v40  ;;  %v863_v59 = vsel %vm860_vm11, %v862_v53, %v858_v13  ;;  %v629_v40 = vmul.f32 %v2772_v30, %v3232_v25 }
 0x18e   : > { %v905_v56 = vmul.f32 %v863_v59, %v3159_v60  ;;  %v642_v1 = vmul.f32 %v2774_v18, %v641_v33 }
 0x18f   : > { %v630_v57 = vmul.f32 %v2772_v30, %v629_v40 }
 0x190   : > { %v643_v45 = vmul.f32 0.5, %v642_v1 }
 0x191   : > { %v631_v63 = vmul.f32 0.5, %v630_v57 }
 0x192   : > { %1005 = vxpose.xlu2.b32.end [2/2] (short) (narrow) %v899_v20, 16  ;;  %v644_v26 = vsub.f32 1.5, %v643_v45 }
 0x193   : > { %v632_v16 = vsub.f32 1.5, %v631_v63 }
 0x194   : > { %v645_v51 = vmul.f32 %v2774_v18, %v644_v26 }
 0x195   : > { %v633_v41 = vmul.f32 %v2772_v30, %v632_v16 }
 0x196   : > { %v646_v61 = vmul.f32 %v645_v51, %v459_v35 }
 0x197   : > { %v634_v42 = vmul.f32 %v633_v41, %v3232_v25 }
 0x198   : > { %v648_v29 = vsel %vm647_vm0, %v459_v35, %v646_v61 }
 0x199   : > { %v636_v15 = vsel %vm635_vm13, %v3232_v25, %v634_v42  ;;  %v651_v2 = vsel %vm649_vm14, %v650_v14, %v648_v29 }
 0x19a   : > { %1100 = vxpose.xlu2.b32.start [1/2] (short) (narrow) %v904_v12, 16  ;;  %v639_v8 = vsel %vm637_vm1, %v638_v21, %v636_v15  ;;  %v667_v52 = vadd.f32 1e-08, %v651_v2 }
 0x19b   : > { %v666_v28 = vadd.f32 1e-08, %v639_v8 }
 0x19c   : > { %vm883_vm6 = vweird.f32 %v667_v52  ;;  %v889_v57 = vand.u32 2147483648, %v667_v52  ;;  %v887_v18 = vand.u32 2147483647, %v667_v52 }
 0x19d   : > { %2775 = vrcp.f32 %v666_v28  ;;  %vm869_vm15 = vweird.f32 %v666_v28  ;;  %v875_v46 = vand.u32 2147483648, %v666_v28  ;;  %v873_v59 = vand.u32 2147483647, %v666_v28 }
 0x19e   : > { %2777 = vrcp.f32 %v667_v52  ;;  %v890_v33 = vor.u32 1.1754944e-38, %v889_v57  ;;  %vm888_vm9 = vcmp.eq.f32.partialorder %v887_v18, 8.507059e+37 }
 0x19f   : > { %vm874_vm4 = vcmp.eq.f32.partialorder %v873_v59, 8.507059e+37 }
 0x1a2   : > { %1101 = vxpose.xlu2.b32.end [2/2] (short) (narrow) %v905_v56, 16 }
 0x1a3   : > { %v2776_v62 = vpop.eup %2775 }
 0x1a4   : > { %v865_v10 = vmul.f32 %v2776_v62, %v666_v28  ;;  %v2778_v50 = vpop.eup %2777  ;;  %vm870_vm2 = vweird.f32 %v2776_v62 }
 0x1a5   : > { %v879_v12 = vmul.f32 %v2778_v50, %v667_v52  ;;  %vm871_vm3 = vmor %vm869_vm15, %vm870_vm2  ;;  %vm884_vm7 = vweird.f32 %v2778_v50 }
 0x1a6   : > { %v866_v38 = vsub.f32 1.0, %v865_v10  ;;  %vm885_vm8 = vmor %vm883_vm6, %vm884_vm7 }
 0x1a7   : > { %v880_v56 = vsub.f32 1.0, %v879_v12 }
 0x1a8   : > { %v867_v0 = vmul.f32 %v2776_v62, %v866_v38 }
 0x1a9   : > { %v881_v30 = vmul.f32 %v2778_v50, %v880_v56 }
 0x1aa   : > { %v868_v53 = vadd.f32 %v2776_v62, %v867_v0 }
 0x1ac   : > { %v872_v35 = vsel %vm871_vm3, %v2776_v62, %v868_v53 }
 0x1f2   : > { %v924_v37 = vpop.trf.xlu2 }
 0x1f3   : > { %v3665_v3 = vmul.f32 9.0, %v924_v37  ;;  %v876_v37 = vor.u32 1.1754944e-38, %v875_v46 }
 0x1f5   : > { %v1181_v43 = vsel %vm1180_vm5, %v3665_v3, -inf  ;;  %v877_v40 = vsel %vm874_vm4, %v876_v37, %v872_v35 }
 0x1f6   : > { %1182 = vmax.xlane.f32.xlu1 %v1181_v43  ;;  %v906_v63 = vmul.f32 %v877_v40, %v3165_v5 }
 0x1fa   : > { %v925_v36 = vpop.trf.xlu2 }
 0x1fb   : > { %v3650_v11 = vmul.f32 9.0, %v925_v36  ;;  %v882_v36 = vadd.f32 %v2778_v50, %v881_v30 }
 0x1fd   : > { %v1185_v60 = vsel %vm1184_vm12, %v3650_v11, -inf }
 0x209   : > { %v1052_v23 = vpop.trf.xlu2 }
 0x20a   : > { %v3648_v31 = vpop.trf.xlu1  ;;  %v3677_v20 = vmul.f32 9.0, %v1052_v23 }
 0x20b   : > { %v3699_v14 = vmul.f32 9.0, %v3648_v31 }
 0x20c   : > { %v1206_v27 = vsel %vm1180_vm5, %v3677_v20, -inf }
 0x20d   : > { %v1212_v29 = vsel %vm1180_vm5, %v3699_v14, -inf }
 0x211   : > { %v1053_v49 = vpop.trf.xlu2 }
 0x212   : > { %v3654_v9 = vpop.trf.xlu1  ;;  %v1173_v22 = vmul.f32 9.0, %v1053_v49 }
 0x213   : > { %1186 = vmax.xlane.f32.xlu2 %v1185_v60  ;;  %v886_v60 = vsel %vm885_vm8, %v2778_v50, %v882_v36  ;;  %v3722_v49 = vmul.f32 9.0, %v3654_v9 }
 0x214   : > { %v1209_v13 = vsel %vm1184_vm12, %v1173_v22, -inf  ;;  %v891_v16 = vsel %vm888_vm9, %v890_v33, %v886_v60 }
 0x215   : > { %v907_v1 = vmul.f32 %v891_v16, %v3176_v19 }
 0x21a   : > { %v956_v34 = vpop.trf.xlu1 }
 0x21b   : > { %v3659_v24 = vmul.f32 9.0, %v956_v34 }
 0x21d   : > { %v1188_v47 = vsel %vm1180_vm5, %v3659_v24, -inf }
 0x21e   : > { %1189 = vmax.xlane.f32.xlu0 %v1188_v47 }
 0x220   : > { %v988_v39 = vpop.trf.xlu0 }
 0x221   : > { %v3671_v48 = vmul.f32 9.0, %v988_v39 }
 0x222   : > { %v957_v55 = vpop.trf.xlu1 }
 0x223   : > { %v3667_v32 = vmul.f32 9.0, %v957_v55  ;;  %v1194_v44 = vsel %vm1180_vm5, %v3671_v48, -inf  ;;  %v1020_v41 = vpop.trf.xlu2 }
 0x224   : > { %v3690_v61 = vmul.f32 9.0, %v1020_v41 }
 0x225   : > { %v1191_v25 = vsel %vm1184_vm12, %v3667_v32, -inf }
 0x226   : > { %1192 = vmax.xlane.f32.xlu2 %v1191_v25  ;;  %v1200_v55 = vsel %vm1180_vm5, %v3690_v61, -inf }
 0x228   : > { %v989_v17 = vpop.trf.xlu0 }
 0x229   : > { %v3679_v58 = vmul.f32 9.0, %v989_v17 }
 0x22b   : > { %v1197_v54 = vsel %vm1184_vm12, %v3679_v58, -inf  ;;  %v1021_v45 = vpop.trf.xlu2 }
 0x22c   : > { %1198 = vmax.xlane.f32.xlu1 %v1197_v54 }
 0x22e   : > { %1195 = vmax.xlane.f32.xlu2 %v1194_v44  ;;  %v3712_v44 = vmul.f32 9.0, %v1021_v45 }
 0x230   : > { %v1203_v54 = vsel %vm1184_vm12, %v3712_v44, -inf }
 0x233   : > { %v1116_v42 = vpop.trf.xlu2 }
 0x234   : > { %v3703_v39 = vmul.f32 9.0, %v1116_v42 }
 0x236   : > { %1207 = vmax.xlane.f32.xlu2 %v1206_v27  ;;  %v1218_v25 = vsel %vm1180_vm5, %v3703_v39, -inf }
 0x23b   : > { %v1117_v26 = vpop.trf.xlu2 }
 0x23e   : > { %1210 = vmax.xlane.f32.xlu2 %v1209_v13  ;;  %v3732_v13 = vmul.f32 9.0, %v1117_v26 }
 0x247   : > { %1132 = vxpose.xlu0.b32.start [1/2] (short) (narrow) %v906_v63, 16 }
 0x24f   : > { %1133 = vxpose.xlu0.b32.end [2/2] (short) (narrow) %v907_v1, 16 }
 0x269   : > { %v1183_v50 = vpop.xlane.xlu1 %1182 }
 0x26a   : > { %v1230_v0 = vsub.f32 %v3665_v3, %v1183_v50  ;;  %v1221_v3 = vsel %vm1184_vm12, %v3732_v13, -inf }
 0x26c   : > { %v1246_v53 = vmul.f32 1.442695, %v1230_v0 }
 0x286   : > { %v1187_v34 = vpop.xlane.xlu2 %1186 }
 0x291   : > { %v1190_v2 = vpop.xlane.xlu0 %1189 }
 0x292   : > { %v1232_v23 = vsub.f32 %v3659_v24, %v1190_v2 }
 0x294   : > { %v1250_v62 = vmul.f32 1.442695, %v1232_v23 }
 0x299   : > { %v1193_v21 = vpop.xlane.xlu2 %1192 }
 0x29a   : > { %v1233_v27 = vsub.f32 %v3667_v32, %v1193_v21  ;;  %v1215_v32 = vsel %vm1184_vm12, %v3722_v49, -inf }
 0x29c   : > { %v1252_v24 = vmul.f32 1.442695, %v1233_v27 }
 0x29f   : > { %v1199_v18 = vpop.xlane.xlu1 %1198 }
 0x2a0   : > { %v1235_v33 = vsub.f32 %v3679_v58, %v1199_v18 }
 0x2a1   : > { %v1196_v15 = vpop.xlane.xlu2 %1195 }
 0x2a2   : > { %v1234_v12 = vsub.f32 %v3671_v48, %v1196_v15  ;;  %v1231_v48 = vsub.f32 %v3650_v11, %v1187_v34 }
 0x2a4   : > { %v1254_v9 = vmul.f32 1.442695, %v1234_v12  ;;  %v1248_v37 = vmul.f32 1.442695, %v1231_v48 }
 0x2a9   : > { %v3688_v51 = vpop.xlane.xlu2 %1207 }
 0x2aa   : > { %v1238_v40 = vsub.f32 %v3677_v20, %v3688_v51  ;;  %v1256_v20 = vmul.f32 1.442695, %v1235_v33 }
 0x2ac   : > { %v1262_v36 = vmul.f32 1.442695, %v1238_v40 }
 0x2b1   : > { %v1211_v47 = vpop.xlane.xlu2 %1210 }
 0x2b2   : > { %v1239_v8 = vsub.f32 %v1173_v22, %v1211_v47 }
 0x2b4   : > { %v1264_v5 = vmul.f32 1.442695, %v1239_v8 }
 0x2b6   : > { %2779 = vpow2.f32 %v1264_v5 }
 0x2b7   : > { %2781 = vpow2.f32 %v1250_v62 }
 0x2b8   : > { %2783 = vpow2.f32 %v1252_v24 }
 0x2b9   : > { %2785 = vpow2.f32 %v1246_v53 }
 0x2ba   : > { %2787 = vpow2.f32 %v1254_v9 }
 0x2bb   : > { %2789 = vpow2.f32 %v1248_v37 }
 0x2bc   : > { %v3692_v28 = vpop.eup %2779  ;;  %2791 = vpow2.f32 %v1262_v36 }
 0x2bd   : > { %v1305_v19 = vsel %vm1184_vm12, %v3692_v28, 0.0  ;;  %v3724_v22 = vpop.eup %2781  ;;  %2793 = vpow2.f32 %v1256_v20 }
 0x2be   : > { %1306 = vadd.xlane.f32.xlu2 %v1305_v19  ;;  %v1284_v46 = vsel %vm1180_vm5, %v3724_v22, 0.0  ;;  %v3734_v59 = vpop.eup %2783 }
 0x2bf   : > { %v1287_v56 = vsel %vm1184_vm12, %v3734_v59, 0.0  ;;  %v3741_v35 = vpop.eup %2785 }
 0x2c0   : > { %1201 = vmax.xlane.f32.xlu0 %v1200_v55  ;;  %v3743_v30 = vpop.eup %2787  ;;  %v1278_v57 = vsel %vm1180_vm5, %v3741_v35, 0.0 }
 0x2c1   : > { %v1290_v11 = vsel %vm1180_vm5, %v3743_v30, 0.0  ;;  %v3751_v63 = vpop.eup %2789 }
 0x2c2   : > { %v1281_v60 = vsel %vm1184_vm12, %v3751_v63, 0.0  ;;  %v3756_v16 = vpop.eup %2791 }
 0x2c3   : > { %v1302_v1 = vsel %vm1180_vm5, %v3756_v16, 0.0  ;;  %v3760_v41 = vpop.eup %2793 }
 0x2c4   : > { %v1293_v45 = vsel %vm1184_vm12, %v3760_v41, 0.0 }
 0x2c8   : > { %1213 = vmax.xlane.f32.xlu0 %v1212_v29 }
 0x2d0   : > { %1219 = vmax.xlane.f32.xlu0 %v1218_v25 }
 0x2eb   : > { %v1148_v43 = vpop.trf.xlu0 }
 0x2ec   : > { %v3707_v52 = vmul.f32 9.0, %v1148_v43 }
 0x2ee   : > { %v1224_v31 = vsel %vm1180_vm5, %v3707_v52, -inf }
 0x2ef   : > { %1225 = vmax.xlane.f32.xlu1 %v1224_v31 }
 0x2f3   : > { %v1149_v10 = vpop.trf.xlu0 }
 0x2f4   : > { %v3714_v17 = vmul.f32 9.0, %v1149_v10 }
 0x2f6   : > { %v1227_v38 = vsel %vm1184_vm12, %v3714_v17, -inf }
 0x2f7   : > { %1204 = vmax.xlane.f32.xlu1 %v1203_v54  ;;  %1228 = vmax.xlane.f32.xlu0 %v1227_v38 }
 0x2ff   : > { %1216 = vmax.xlane.f32.xlu1 %v1215_v32  ;;  %1285 = vadd.xlane.f32.xlu0 %v1284_v46 }
 0x307   : > { %1222 = vmax.xlane.f32.xlu1 %v1221_v3  ;;  %1288 = vadd.xlane.f32.xlu0 %v1287_v56 }
 0x30f   : > { %1279 = vadd.xlane.f32.xlu1 %v1278_v57  ;;  %1291 = vadd.xlane.f32.xlu0 %v1290_v11 }
 0x317   : > { %1282 = vadd.xlane.f32.xlu1 %v1281_v60 }
 0x31f   : > { %1303 = vadd.xlane.f32.xlu1 %v1302_v1 }
 0x327   : > { %1294 = vadd.xlane.f32.xlu1 %v1293_v45 }
 0x333   : > { %v1202_v42 = vpop.xlane.xlu0 %1201 }
 0x334   : > { %v1236_v58 = vsub.f32 %v3690_v61, %v1202_v42 }
 0x336   : > { %v1258_v26 = vmul.f32 1.442695, %v1236_v58 }
 0x338   : > { %2795 = vpow2.f32 %v1258_v26 }
 0x33b   : > { %v1214_v34 = vpop.xlane.xlu0 %1213 }
 0x33c   : > { %v1240_v21 = vsub.f32 %v3699_v14, %v1214_v34 }
 0x33e   : > { %v3766_v15 = vpop.eup %2795  ;;  %v1266_v51 = vmul.f32 1.442695, %v1240_v21 }
 0x33f   : > { %v1296_v47 = vsel %vm1180_vm5, %v3766_v15, 0.0 }
 0x340   : > { %2797 = vpow2.f32 %v1266_v51  ;;  %1297 = vadd.xlane.f32.xlu0 %v1296_v47 }
 0x343   : > { %v1220_v61 = vpop.xlane.xlu0 %1219 }
 0x344   : > { %v1242_v31 = vsub.f32 %v3703_v39, %v1220_v61 }
 0x346   : > { %v3770_v8 = vpop.eup %2797 }
 0x347   : > { %v1308_v5 = vsel %vm1180_vm5, %v3770_v8, 0.0 }
 0x348   : > { %1309 = vadd.xlane.f32.xlu1 %v1308_v5 }
 0x362   : > { %v1226_v19 = vpop.xlane.xlu1 %1225 }
 0x363   : > { %v1244_v55 = vsub.f32 %v3707_v52, %v1226_v19  ;;  %v1270_v52 = vmul.f32 1.442695, %v1242_v31 }
 0x365   : > { %v1274_v29 = vmul.f32 1.442695, %v1244_v55  ;;  %v3809_v55 = vpop.xlane.xlu2 %1306 }
 0x367   : > { %2799 = vpow2.f32 %v1274_v29 }
 0x36a   : > { %v1205_v14 = vpop.xlane.xlu1 %1204  ;;  %v1229_v25 = vpop.xlane.xlu0 %1228 }
 0x36b   : > { %v1237_v2 = vsub.f32 %v3712_v44, %v1205_v14  ;;  %v1245_v43 = vsub.f32 %v3714_v17, %v1229_v25 }
 0x36d   : > { %v3777_v23 = vpop.eup %2799  ;;  %v1260_v62 = vmul.f32 1.442695, %v1237_v2  ;;  %v1276_v10 = vmul.f32 1.442695, %v1245_v43 }
 0x36e   : > { %v1320_v54 = vsel %vm1180_vm5, %v3777_v23, 0.0 }
 0x36f   : > { %2801 = vpow2.f32 %v1260_v62  ;;  %1321 = vadd.xlane.f32.xlu2 %v1320_v54 }
 0x370   : > { %2803 = vpow2.f32 %v1276_v10  ;;  %v2948_v10 = vld [vmem:[%s4723_s1 + $0x70] sm:$0xff] }
 0x372   : > { %v1217_v27 = vpop.xlane.xlu1 %1216  ;;  %v1286_v38 = vpop.xlane.xlu0 %1285 }
 0x373   : > { %v1241_v24 = vsub.f32 %v3722_v49, %v1217_v27  ;;  %2805 = vrcp.f32 %v1286_v38  ;;  %v1365_v11 = vand.u32 2147483648, %v1286_v38  ;;  %vm1359_vm11 = vweird.f32 %v1286_v38 }
 0x374   : > { %2807 = vpow2.f32 %v1270_v52 }
 0x375   : > { %v3783_v44 = vpop.eup %2801  ;;  %v1268_v17 = vmul.f32 1.442695, %v1241_v24  ;;  %v1366_v45 = vor.u32 1.1754944e-38, %v1365_v11 }
 0x376   : > { %v3785_v50 = vpop.eup %2803  ;;  %v1299_v39 = vsel %vm1184_vm12, %v3783_v44, 0.0 }
 0x377   : > { %2809 = vpow2.f32 %v1268_v17  ;;  %1300 = vadd.xlane.f32.xlu0 %v1299_v39  ;;  %v1323_v0 = vsel %vm1184_vm12, %v3785_v50, 0.0 }
 0x378   : > { %1324 = vadd.xlane.f32.xlu2 %v1323_v0 }
 0x379   : > { %v2806_v12 = vpop.eup %2805 }
 0x37a   : > { %v1355_v32 = vmul.f32 %v2806_v12, %v1286_v38  ;;  %v1223_v46 = vpop.xlane.xlu1 %1222  ;;  %v1289_v49 = vpop.xlane.xlu0 %1288  ;;  %vm1360_vm10 = vweird.f32 %v2806_v12 }
 0x37b   : > { %v3791_v53 = vpop.eup %2807  ;;  %v1243_v9 = vsub.f32 %v3732_v13, %v1223_v46  ;;  %2811 = vrcp.f32 %v1289_v49  ;;  %v1363_v13 = vand.u32 2147483647, %v1286_v38  ;;  %vm1361_vm13 = vmor %vm1359_vm11, %vm1360_vm10  ;;  %v1379_v26 = vand.u32 2147483648, %v1289_v49 }
 0x37c   : > { %v1356_v3 = vsub.f32 1.0, %v1355_v32  ;;  %v1314_v57 = vsel %vm1180_vm5, %v3791_v53, 0.0  ;;  %v1377_v5 = vand.u32 2147483647, %v1289_v49  ;;  %vm1373_vm14 = vweird.f32 %v1289_v49 }
 0x37d   : > { %v3794_v48 = vpop.eup %2809  ;;  %v1272_v56 = vmul.f32 1.442695, %v1243_v9  ;;  %vm1364_vm1 = vcmp.eq.f32.partialorder %v1363_v13, 8.507059e+37  ;;  %v1380_v25 = vor.u32 1.1754944e-38, %v1379_v26 }
 0x37e   : > { %v1357_v37 = vmul.f32 %v2806_v12, %v1356_v3  ;;  %v1311_v40 = vsel %vm1184_vm12, %v3794_v48, 0.0 }
 0x37f   : > { %2813 = vpow2.f32 %v1272_v56  ;;  %1312 = vadd.xlane.f32.xlu1 %v1311_v40  ;;  %1315 = vadd.xlane.f32.xlu0 %v1314_v57 }
 0x380   : > { %v1358_v36 = vadd.f32 %v2806_v12, %v1357_v37 }
 0x381   : > { %v2812_v18 = vpop.eup %2811 }
 0x382   : > { %v1369_v33 = vmul.f32 %v2812_v18, %v1289_v49  ;;  %v1280_v60 = vpop.xlane.xlu1 %1279  ;;  %v3800_v20 = vpop.xlane.xlu0 %1291  ;;  %v1362_v1 = vsel %vm1361_vm13, %v2806_v12, %v1358_v36  ;;  %vm1374_vm0 = vweird.f32 %v2812_v18 }
 0x383   : > { %2815 = vrcp.f32 %v1280_v60  ;;  %v1367_v34 = vsel %vm1364_vm1, %v1366_v45, %v1362_v1  ;;  %vm3811_vm15 = vmor %vm1373_vm14, %vm1374_vm0  ;;  %v1337_v17 = vand.u32 2147483648, %v1280_v60  ;;  %v1335_v39 = vand.u32 2147483647, %v1280_v60 }
 0x384   : > { %v1370_v42 = vsub.f32 1.0, %v1369_v33  ;;  %2817 = vrcp.f32 %v3800_v20  ;;  %v1552_v51 = vmul.f32 %v3724_v22, %v1367_v34  ;;  %v2947_v22 = vld [vmem:[%s4723_s1 + $0x78] sm:$0xff]  ;;  %v1393_v12 = vand.u32 2147483648, %v3800_v20  ;;  %v2949_v34 = vld [vmem:[%s4723_s1 + $0x68] sm:$0xff] }
 0x385   : > { %v3803_v58 = vpop.eup %2813  ;;  %vm1331_vm3 = vweird.f32 %v1280_v60  ;;  %v1391_v46 = vand.u32 2147483647, %v3800_v20  ;;  %vm1387_vm7 = vweird.f32 %v3800_v20  ;;  %vm1336_vm8 = vcmp.eq.f32.partialorder %v1335_v39, 8.507059e+37 }
 0x386   : > { %v1371_v21 = vmul.f32 %v2812_v18, %v1370_v42  ;;  %v1317_v47 = vsel %vm1184_vm12, %v3803_v58, 0.0  ;;  %2665 = vmatmul.msk.f32.vlgmr.msrb.gmra.mxu2 %vm1180_vm5, %v1552_v51  ;;  %vm1378_vm12 = vcmp.eq.f32.partialorder %v1377_v5, 8.507059e+37  ;;  %v1394_v57 = vor.u32 1.1754944e-38, %v1393_v12 }
 0x387   : > { %1318 = vadd.xlane.f32.xlu0 %v1317_v47  ;;  %1789 = vmatpush.msrb.mxu2 %v2947_v22  ;;  %vm1392_vm10 = vcmp.eq.f32.partialorder %v1391_v46, 8.507059e+37 }
 0x388   : > { %v1372_v61 = vadd.f32 %v2812_v18, %v1371_v21 }
 0x389   : > { %v2816_v19 = vpop.eup %2815  ;;  %1790 = vmatpush.msrb.mxu2 %v2948_v10  ;;  %v1463_v10 = vand.u32 2147483648, %v3809_v55 }
 0x38a   : > { %v2818_v14 = vpop.eup %2817  ;;  %v1327_v2 = vmul.f32 %v2816_v19, %v1280_v60  ;;  %v1283_v43 = vpop.xlane.xlu1 %1282  ;;  %v1376_v31 = vsel %vm3811_vm15, %v2812_v18, %v1372_v61  ;;  %vm1332_vm2 = vweird.f32 %v2816_v19  ;;  %v2950_v61 = vld [vmem:[%s4723_s1 + $0x60] sm:$0xff]  ;;  %vm1457_vm15 = vweird.f32 %v3809_v55 }
 0x38b   : > { %v1383_v62 = vmul.f32 %v2818_v14, %v3800_v20  ;;  %2819 = vrcp.f32 %v1283_v43  ;;  %v1381_v52 = vsel %vm1378_vm12, %v1380_v25, %v1376_v31  ;;  %vm1388_vm4 = vweird.f32 %v2818_v14  ;;  %vm1333_vm6 = vmor %vm1331_vm3, %vm1332_vm2 }
 0x38c   : > { %2821 = vrcp.f32 %v3809_v55  ;;  %v1328_v54 = vsub.f32 1.0, %v1327_v2  ;;  %v1553_v38 = vmul.f32 %v3734_v59, %v1381_v52  ;;  %v1338_v59 = vor.u32 1.1754944e-38, %v1337_v17  ;;  %vm1389_vm9 = vmor %vm1387_vm7, %vm1388_vm4 }
 0x38d   : > { %v1384_v27 = vsub.f32 1.0, %v1383_v62  ;;  %v1351_v33 = vand.u32 2147483648, %v1283_v43  ;;  %v1349_v42 = vand.u32 2147483647, %v1283_v43  ;;  %vm1345_vm13 = vweird.f32 %v1283_v43 }
 0x38e   : > { %v1329_v24 = vmul.f32 %v2816_v19, %v1328_v54  ;;  %2666 = vmatmul.msk.f32.gmra.mxu2 %vm1180_vm5, %v1553_v38  ;;  %v1464_v12 = vor.u32 1.1754944e-38, %v1463_v10 }
 0x38f   : > { %v1385_v0 = vmul.f32 %v2818_v14, %v1384_v27  ;;  %vm1350_vm0 = vcmp.eq.f32.partialorder %v1349_v42, 8.507059e+37 }
 0x390   : > { %v1330_v32 = vadd.f32 %v2816_v19, %v1329_v24  ;;  %v1461_v24 = vand.u32 2147483647, %v3809_v55 }
 0x391   : > { %v2820_v49 = vpop.eup %2819  ;;  %v1386_v9 = vadd.f32 %v2818_v14, %v1385_v0 }
 0x392   : > { %v3829_v3 = vpop.eup %2821  ;;  %v1341_v56 = vmul.f32 %v2820_v49, %v1283_v43  ;;  %v1304_v37 = vpop.xlane.xlu1 %1303  ;;  %v1334_v40 = vsel %vm1333_vm6, %v2816_v19, %v1330_v32  ;;  %vm1346_vm11 = vweird.f32 %v2820_v49 }
 0x393   : > { %2823 = vrcp.f32 %v1304_v37  ;;  %v1339_v36 = vsel %vm1336_vm8, %v1338_v59, %v1334_v40  ;;  %v1390_v13 = vsel %vm1389_vm9, %v2818_v14, %v1386_v9  ;;  %v1453_v18 = vmul.f32 %v3829_v3, %v3809_v55  ;;  %vm1347_vm1 = vmor %vm1345_vm13, %vm1346_vm11 }
 0x394   : > { %v1342_v11 = vsub.f32 1.0, %v1341_v56  ;;  %v1550_v60 = vmul.f32 %v3741_v35, %v1339_v36  ;;  %v1395_v1 = vsel %vm1392_vm10, %v1394_v57, %v1390_v13  ;;  %v1352_v35 = vor.u32 1.1754944e-38, %v1351_v33 }
 0x395   : > { %v1554_v20 = vmul.f32 %v3743_v30, %v1395_v1  ;;  %v1454_v51 = vsub.f32 1.0, %v1453_v18  ;;  %v1449_v25 = vand.u32 2147483648, %v1304_v37  ;;  %v1447_v43 = vand.u32 2147483647, %v1304_v37 }
 0x396   : > { %v1343_v45 = vmul.f32 %v2820_v49, %v1342_v11  ;;  %2663 = vmatmul.msk.f32.vlgmr.msrb.gmra.mxu1 %vm1180_vm5, %v1550_v60  ;;  %vm1458_vm12 = vweird.f32 %v3829_v3  ;;  %vm1443_vm2 = vweird.f32 %v1304_v37  ;;  %vm1462_vm8 = vcmp.eq.f32.partialorder %v1461_v24, 8.507059e+37 }
 0x397   : > { %2667 = vmatmul.msk.f32.vlgmr.msrb.gmra.mxu3 %vm1180_vm5, %v1554_v20  ;;  %1760 = vmatpush.msrb.mxu1 %v2949_v34  ;;  %v1455_v14 = vmul.f32 %v3829_v3, %v1454_v51  ;;  %v1450_v54 = vor.u32 1.1754944e-38, %v1449_v25  ;;  %vm1448_vm4 = vcmp.eq.f32.partialorder %v1447_v43, 8.507059e+37  ;;  %vm3851_vm6 = vmor %vm1457_vm15, %vm1458_vm12 }
 0x398   : > { %v1344_v26 = vadd.f32 %v2820_v49, %v1343_v45 }
 0x399   : > { %v2824_v21 = vpop.eup %2823  ;;  %1761 = vmatpush.msrb.mxu1 %v2950_v61 }
 0x39a   : > { %v1439_v47 = vmul.f32 %v2824_v21, %v1304_v37  ;;  %v1295_v5 = vpop.xlane.xlu1 %1294  ;;  %v1348_v30 = vsel %vm1347_vm1, %v2820_v49, %v1344_v26  ;;  %vm1444_vm14 = vweird.f32 %v2824_v21 }
 0x39b   : > { %2825 = vrcp.f32 %v1295_v5  ;;  %v1353_v19 = vsel %vm1350_vm0, %v1352_v35, %v1348_v30  ;;  %vm1445_vm3 = vmor %vm1443_vm2, %vm1444_vm14  ;;  %v1407_v32 = vand.u32 2147483648, %v1295_v5  ;;  %v1405_v9 = vand.u32 2147483647, %v1295_v5 }
 0x39c   : > { %v1440_v29 = vsub.f32 1.0, %v1439_v47  ;;  %v1551_v22 = vmul.f32 %v3751_v63, %v1353_v19  ;;  %v1456_v63 = vadd.f32 %v3829_v3, %v1455_v14  ;;  %vm1401_vm9 = vweird.f32 %v1295_v5 }
 0x39d   : > { %v1408_v56 = vor.u32 1.1754944e-38, %v1407_v32  ;;  %vm1406_vm11 = vcmp.eq.f32.partialorder %v1405_v9, 8.507059e+37 }
 0x39e   : > { %v1441_v2 = vmul.f32 %v2824_v21, %v1440_v29  ;;  %2664 = vmatmul.msk.f32.gmra.mxu1 %vm1180_vm5, %v1551_v22  ;;  %v1460_v46 = vsel %vm3851_vm6, %v3829_v3, %v1456_v63 }
 0x39f   : > { %v1465_v55 = vsel %vm1462_vm8, %v1464_v12, %v1460_v46 }
 0x3a0   : > { %v1442_v31 = vadd.f32 %v2824_v21, %v1441_v2  ;;  %v1559_v57 = vmul.f32 %v3692_v28, %v1465_v55 }
 0x3a1   : > { %v2826_v62 = vpop.eup %2825 }
 0x3a2   : > { %v1446_v52 = vsel %vm1445_vm3, %v2824_v21, %v1442_v31  ;;  %v1397_v27 = vmul.f32 %v2826_v62, %v1295_v5  ;;  %vm1402_vm7 = vweird.f32 %v2826_v62 }
 0x3a3   : > { %v1451_v17 = vsel %vm1448_vm4, %v1450_v54, %v1446_v52  ;;  %vm1403_vm10 = vmor %vm1401_vm9, %vm1402_vm7  ;;  %vm1817_vm4 = vcmask 257024   ;;  %vm4758_vm7 = vcmask 261120  }
 0x3a4   : > { %v1398_v39 = vsub.f32 1.0, %v1397_v27  ;;  %v1558_v0 = vmul.f32 %v3756_v16, %v1451_v17 }
 0x3a6   : > { %v1399_v49 = vmul.f32 %v2826_v62, %v1398_v39  ;;  %2671 = vmatmul.msk.f32.vlgmr.msra.gmra.mxu2 %vm1180_vm5, %v1558_v0 }
 0x3a8   : > { %v1400_v59 = vadd.f32 %v2826_v62, %v1399_v49 }
 0x3aa   : > { %v1404_v37 = vsel %vm1403_vm10, %v2826_v62, %v1400_v59 }
 0x3ab   : > { %v1409_v16 = vsel %vm1406_vm11, %v1408_v56, %v1404_v37 }
 0x3ac   : > { %v1555_v40 = vmul.f32 %v3760_v41, %v1409_v16 }
 0x3ae   : > { %2668 = vmatmul.msk.f32.gmra.mxu3 %vm1180_vm5, %v1555_v40  ;;  %2672 = vmatmul.msk.f32.gmra.mxu2 %vm1180_vm5, %v1559_v57 }
 0x3b3   : > { %v1298_v3 = vpop.xlane.xlu0 %1297 }
 0x3b4   : > { %2827 = vrcp.f32 %v1298_v3  ;;  %v1421_v33 = vand.u32 2147483648, %v1298_v3  ;;  %v1419_v1 = vand.u32 2147483647, %v1298_v3  ;;  %vm1415_vm1 = vweird.f32 %v1298_v3 }
 0x3b6   : > { %v1422_v28 = vor.u32 1.1754944e-38, %v1421_v33  ;;  %vm1420_vm14 = vcmp.eq.f32.partialorder %v1419_v1, 8.507059e+37 }
 0x3ba   : > { %v2828_v11 = vpop.eup %2827 }
 0x3bb   : > { %v1411_v36 = vmul.f32 %v2828_v11, %v1298_v3  ;;  %v1310_v13 = vpop.xlane.xlu1 %1309  ;;  %vm1416_vm13 = vweird.f32 %v2828_v11 }
 0x3bc   : > { %2829 = vrcp.f32 %v1310_v13  ;;  %vm1417_vm0 = vmor %vm1415_vm1, %vm1416_vm13  ;;  %v1477_v51 = vand.u32 2147483648, %v1310_v13  ;;  %v1475_v47 = vand.u32 2147483647, %v1310_v13  ;;  %vm1471_vm12 = vweird.f32 %v1310_v13 }
 0x3bd   : > { %v1412_v18 = vsub.f32 1.0, %v1411_v36 }
 0x3be   : > { %v1478_v30 = vor.u32 1.1754944e-38, %v1477_v51  ;;  %vm1476_vm3 = vcmp.eq.f32.partialorder %v1475_v47, 8.507059e+37 }
 0x3bf   : > { %v1413_v60 = vmul.f32 %v2828_v11, %v1412_v18 }
 0x3c1   : > { %v1414_v45 = vadd.f32 %v2828_v11, %v1413_v60 }
 0x3c2   : > { %v2830_v41 = vpop.eup %2829 }
 0x3c3   : > { %v1418_v20 = vsel %vm1417_vm0, %v2828_v11, %v1414_v45  ;;  %v1467_v42 = vmul.f32 %v2830_v41, %v1310_v13  ;;  %vm1472_vm15 = vweird.f32 %v2830_v41 }
 0x3c4   : > { %v1423_v26 = vsel %vm1420_vm14, %v1422_v28, %v1418_v20  ;;  %vm1473_vm2 = vmor %vm1471_vm12, %vm1472_vm15 }
 0x3c5   : > { %v1468_v34 = vsub.f32 1.0, %v1467_v42  ;;  %v1556_v21 = vmul.f32 %v3766_v15, %v1423_v26  ;;  %v1864_v15 = vmul.f32 %v3043_v6, %v3043_v6 }
 0x3c7   : > { %v1469_v35 = vmul.f32 %v2830_v41, %v1468_v34  ;;  %2669 = vmatmul.msk.f32.vlgmr.msra.gmra.mxu1 %vm1180_vm5, %v1556_v21  ;;  %v1868_v14 = vsel %vm1817_vm4, %v1864_v15, 0.0 }
 0x3c8   : > { %1869 = vadd.xlane.f32.xlu2 %v1868_v14 }
 0x3c9   : > { %v1470_v5 = vadd.f32 %v2830_v41, %v1469_v35 }
 0x3cb   : > { %v1474_v61 = vsel %vm1473_vm2, %v2830_v41, %v1470_v5 }
 0x3cc   : > { %v1479_v19 = vsel %vm1476_vm3, %v1478_v30, %v1474_v61 }
 0x3cd   : > { %v1560_v29 = vmul.f32 %v3770_v8, %v1479_v19  ;;  %v1863_v8 = vmul.f32 %v3053_v7, %v3053_v7 }
 0x3cf   : > { %2673 = vmatmul.msk.f32.vlgmr.msra.gmra.mxu3 %vm1180_vm5, %v1560_v29  ;;  %v1865_v52 = vsel %vm4758_vm7, %v1863_v8, 0.0 }
 0x3d0   : > { %1866 = vadd.xlane.f32.xlu1 %v1865_v52 }
 0x3e2   : > { %v1322_v22 = vpop.xlane.xlu2 %1321 }
 0x3e3   : > { %2831 = vrcp.f32 %v1322_v22  ;;  %v1533_v10 = vand.u32 2147483648, %v1322_v22  ;;  %v1531_v63 = vand.u32 2147483647, %v1322_v22  ;;  %vm1527_vm8 = vweird.f32 %v1322_v22 }
 0x3e5   : > { %v1534_v24 = vor.u32 1.1754944e-38, %v1533_v10  ;;  %vm1532_vm10 = vcmp.eq.f32.partialorder %v1531_v63, 8.507059e+37 }
 0x3e9   : > { %v2832_v25 = vpop.eup %2831 }
 0x3ea   : > { %v1523_v2 = vmul.f32 %v2832_v25, %v1322_v22  ;;  %v1301_v43 = vpop.xlane.xlu0 %1300  ;;  %vm1528_vm6 = vweird.f32 %v2832_v25 }
 0x3eb   : > { %v1325_v31 = vpop.xlane.xlu2 %1324  ;;  %2833 = vrcp.f32 %v1301_v43  ;;  %vm1529_vm9 = vmor %vm1527_vm8, %vm1528_vm6  ;;  %v1435_v37 = vand.u32 2147483648, %v1301_v43  ;;  %v1433_v16 = vand.u32 2147483647, %v1301_v43  ;;  %vm1429_vm13 = vweird.f32 %v1301_v43 }
 0x3ec   : > { %v1524_v62 = vsub.f32 1.0, %v1523_v2  ;;  %2835 = vrcp.f32 %v1325_v31  ;;  %v1547_v57 = vand.u32 2147483648, %v1325_v31  ;;  %v1545_v3 = vand.u32 2147483647, %v1325_v31 }
 0x3ed   : > { %vm1541_vm0 = vweird.f32 %v1325_v31  ;;  %v1436_v33 = vor.u32 1.1754944e-38, %v1435_v37  ;;  %vm1434_vm15 = vcmp.eq.f32.partialorder %v1433_v16, 8.507059e+37 }
 0x3ee   : > { %v1525_v54 = vmul.f32 %v2832_v25, %v1524_v62  ;;  %v1548_v41 = vor.u32 1.1754944e-38, %v1547_v57  ;;  %vm1546_vm2 = vcmp.eq.f32.partialorder %v1545_v3, 8.507059e+37 }
 0x3f0   : > { %v1526_v27 = vadd.f32 %v2832_v25, %v1525_v54 }
 0x3f1   : > { %v2834_v38 = vpop.eup %2833 }
 0x3f2   : > { %v2836_v17 = vpop.eup %2835  ;;  %v1530_v39 = vsel %vm1529_vm9, %v2832_v25, %v1526_v27  ;;  %v1425_v0 = vmul.f32 %v2834_v38, %v1301_v43  ;;  %v3875_v12 = vpop.xlane.xlu1 %1312  ;;  %vm1430_vm11 = vweird.f32 %v2834_v38 }
 0x3f3   : > { %v3877_v32 = vpop.xlane.xlu0 %1315  ;;  %v1535_v46 = vsel %vm1532_vm10, %v1534_v24, %v1530_v39  ;;  %v1537_v49 = vmul.f32 %v2836_v17, %v1325_v31  ;;  %2837 = vrcp.f32 %v3875_v12  ;;  %vm1542_vm1 = vweird.f32 %v2836_v17  ;;  %vm3883_vm14 = vmor %vm1429_vm13, %vm1430_vm11 }
 0x3f4   : > { %v1426_v9 = vsub.f32 1.0, %v1425_v0  ;;  %2839 = vrcp.f32 %v3877_v32  ;;  %v1564_v56 = vmul.f32 %v3777_v23, %v1535_v46  ;;  %vm1543_vm12 = vmor %vm1541_vm0, %vm1542_vm1  ;;  %v1491_v42 = vand.u32 2147483648, %v3875_v12 }
 0x3f5   : > { %v1538_v59 = vsub.f32 1.0, %v1537_v49  ;;  %v1505_v51 = vand.u32 2147483648, %v3877_v32  ;;  %v1489_v61 = vand.u32 2147483647, %v3875_v12  ;;  %v1503_v29 = vand.u32 2147483647, %v3877_v32 }
 0x3f6   : > { %v1427_v55 = vmul.f32 %v2834_v38, %v1426_v9  ;;  %2677 = vmatmul.msk.f32.vlgmr.msrb.gmra.mxu2 %vm1180_vm5, %v1564_v56  ;;  %vm1485_vm7 = vweird.f32 %v3875_v12  ;;  %vm1499_vm8 = vweird.f32 %v3877_v32 }
 0x3f7   : > { %v1539_v40 = vmul.f32 %v2836_v17, %v1538_v59  ;;  %vm1490_vm11 = vcmp.eq.f32.partialorder %v1489_v61, 8.507059e+37  ;;  %vm1504_vm13 = vcmp.eq.f32.partialorder %v1503_v29, 8.507059e+37 }
 0x3f8   : > { %v1428_v11 = vadd.f32 %v2834_v38, %v1427_v55 }
 0x3f9   : > { %v2838_v36 = vpop.eup %2837  ;;  %v1540_v18 = vadd.f32 %v2836_v17, %v1539_v40 }
 0x3fa   : > { %v2840_v23 = vpop.eup %2839  ;;  %v1481_v60 = vmul.f32 %v2838_v36, %v3875_v12  ;;  %v1432_v45 = vsel %vm3883_vm14, %v2834_v38, %v1428_v11  ;;  %vm1486_vm3 = vweird.f32 %v2838_v36 }
 0x3fb   : > { %v1319_v1 = vpop.xlane.xlu0 %1318  ;;  %v1495_v28 = vmul.f32 %v2840_v23, %v3877_v32  ;;  %v1437_v26 = vsel %vm1434_vm15, %v1436_v33, %v1432_v45  ;;  %v1544_v34 = vsel %vm1543_vm12, %v2836_v17, %v1540_v18  ;;  %vm1500_vm6 = vweird.f32 %v2840_v23  ;;  %vm1487_vm9 = vmor %vm1485_vm7, %vm1486_vm3 }
 0x3fc   : > { %2841 = vrcp.f32 %v1319_v1  ;;  %v1482_v20 = vsub.f32 1.0, %v1481_v60  ;;  %v1557_v35 = vmul.f32 %v3783_v44, %v1437_v26  ;;  %v1549_v47 = vsel %vm1546_vm2, %v1548_v41, %v1544_v34  ;;  %vm1501_vm10 = vmor %vm1499_vm8, %vm1500_vm6 }
 0x3fd   : > { %v1496_v21 = vsub.f32 1.0, %v1495_v28  ;;  %v1565_v30 = vmul.f32 %v3785_v50, %v1549_v47  ;;  %v1492_v44 = vor.u32 1.1754944e-38, %v1491_v42  ;;  %v1506_v50 = vor.u32 1.1754944e-38, %v1505_v51 }
 0x3fe   : > { %v1483_v5 = vmul.f32 %v2838_v36, %v1482_v20  ;;  %2670 = vmatmul.msk.f32.gmra.mxu1 %vm1180_vm5, %v1557_v35  ;;  %v1519_v54 = vand.u32 2147483648, %v1319_v1  ;;  %v1517_v27 = vand.u32 2147483647, %v1319_v1  ;;  %vm1513_vm0 = vweird.f32 %v1319_v1 }
 0x3ff   : > { %v1497_v19 = vmul.f32 %v2840_v23, %v1496_v21  ;;  %2678 = vmatmul.msk.f32.gmra.mxu2 %vm1180_vm5, %v1565_v30  ;;  %vm4761_vm12 = vcmask 261120  }
 0x400   : > { %v1484_v22 = vadd.f32 %v2838_v36, %v1483_v5  ;;  %v1520_v24 = vor.u32 1.1754944e-38, %v1519_v54  ;;  %vm1518_vm15 = vcmp.eq.f32.partialorder %v1517_v27, 8.507059e+37  ;;  %vm4762_vm2 = vmmov %vm4761_vm12 }
 0x401   : > { %v1498_v14 = vadd.f32 %v2840_v23, %v1497_v19  ;;  %vm4764_vm3 = vmmov %vm4762_vm2 }
 0x402   : > { %v2842_v15 = vpop.eup %2841  ;;  %v1488_v2 = vsel %vm1487_vm9, %v2838_v36, %v1484_v22  ;;  %vm4765_vm6 = vmmov %vm4762_vm2 }
 0x403   : > { %v1509_v25 = vmul.f32 %v2842_v15, %v1319_v1  ;;  %v1502_v43 = vsel %vm1501_vm10, %v2840_v23, %v1498_v14  ;;  %v1493_v31 = vsel %vm1490_vm11, %v1492_v44, %v1488_v2  ;;  %vm1514_vm1 = vweird.f32 %v2842_v15  ;;  %vm4766_vm7 = vmmov %vm4762_vm2 }
 0x404   : > { %v1507_v62 = vsel %vm1504_vm13, %v1506_v50, %v1502_v43  ;;  %v1561_v8 = vmul.f32 %v3794_v48, %v1493_v31  ;;  %vm1515_vm14 = vmor %vm1513_vm0, %vm1514_vm1 }
 0x405   : > { %v1510_v10 = vsub.f32 1.0, %v1509_v25  ;;  %v1562_v63 = vmul.f32 %v3791_v53, %v1507_v62  ;;  %vm4767_vm8 = vmmov %vm4762_vm2 }
 0x406   : > { %2674 = vmatmul.msk.f32.gmra.mxu3 %vm1180_vm5, %v1561_v8  ;;  %vm4768_vm9 = vmmov %vm4762_vm2 }
 0x407   : > { %v1511_v52 = vmul.f32 %v2842_v15, %v1510_v10  ;;  %2675 = vmatmul.msk.f32.vlgmr.msrb.gmra.mxu1 %vm1180_vm5, %v1562_v63  ;;  %vm4769_vm10 = vmmov %vm4762_vm2 }
 0x408   : > { %vm4770_vm11 = vmmov %vm4762_vm2 }
 0x409   : > { %v1512_v38 = vadd.f32 %v2842_v15, %v1511_v52  ;;  %v3905_v39 = vpop.f32.mrf.mxu2  ;;  %vm4771_vm13 = vmmov %vm4762_vm2 }
 0x40a   : > { %v1897_v48 = vmul.f32 %v3905_v39, %v3905_v39  ;;  %v1800_v43 = vmul.f32 %v3905_v39, %v3053_v7  ;;  %vm4772_vm1 = vmmov %vm4762_vm2 }
 0x40b   : > { %v1516_v17 = vsel %vm1515_vm14, %v2842_v15, %v1512_v38  ;;  %vm4773_vm0 = vmmov %vm4772_vm1 }
 0x40c   : > { %v1521_v0 = vsel %vm1518_vm15, %v1520_v24, %v1516_v17  ;;  %v1917_v12 = vsel %vm4761_vm12, %v1897_v48, 0.0  ;;  %v1821_v10 = vsel %vm4769_vm10, %v1800_v43, 0.0  ;;  %vm4774_vm14 = vmmov %vm4773_vm0 }
 0x40d   : > { %v1563_v53 = vmul.f32 %v3803_v58, %v1521_v0  ;;  %1918 = vadd.xlane.f32.xlu2 %v1917_v12  ;;  %vm4775_vm15 = vmmov %vm4773_vm0 }
 0x40e   : > { %vm4776_vm12 = vmmov %vm4773_vm0 }
 0x40f   : > { %2676 = vmatmul.msk.f32.gmra.mxu1 %vm1180_vm5, %v1563_v53  ;;  %vm4763_vm5 = vmmov %vm4762_vm2 }
 0x411   : > { %v3913_v9 = vpop.f32.mrf.mxu2 }
 0x412   : > { %v1898_v59 = vmul.f32 %v3913_v9, %v3913_v9  ;;  %v1801_v63 = vmul.f32 %v3913_v9, %v3043_v6 }
 0x413   : > { %v1589_v32 = vpop.f32.mrf.mxu1 }
 0x414   : > { %v1895_v46 = vmul.f32 %v1589_v32, %v1589_v32  ;;  %v1920_v58 = vsel %vm1817_vm4, %v1898_v59, 0.0  ;;  %v1798_v31 = vmul.f32 %v1589_v32, %v3053_v7  ;;  %v1824_v17 = vsel %vm1817_vm4, %v1801_v63, 0.0 }
 0x416   : > { %v1911_v49 = vsel %vm4762_vm2, %v1895_v46, 0.0  ;;  %v1814_v8 = vsel %vm4770_vm11, %v1798_v31, 0.0 }
 0x417   : > { %1912 = vadd.xlane.f32.xlu0 %v1911_v49 }
 0x41a   : > { %v3919_v16 = vpop.f32.mrf.mxu3 }
 0x41b   : > { %v1592_v56 = vpop.f32.mrf.mxu1  ;;  %v1899_v40 = vmul.f32 %v3919_v16, %v3919_v16  ;;  %v1802_v39 = vmul.f32 %v3919_v16, %v3053_v7 }
 0x41c   : > { %v1896_v55 = vmul.f32 %v1592_v56, %v1592_v56  ;;  %v1799_v54 = vmul.f32 %v1592_v56, %v3043_v6 }
 0x41d   : > { %v1923_v57 = vsel %vm4763_vm5, %v1899_v40, 0.0  ;;  %v1827_v53 = vsel %vm4771_vm13, %v1802_v39, 0.0 }
 0x41e   : > { %v1914_v37 = vsel %vm1817_vm4, %v1896_v55, 0.0  ;;  %v1818_v27 = vsel %vm1817_vm4, %v1799_v54, 0.0 }
 0x41f   : > { %1915 = vadd.xlane.f32.xlu1 %v1914_v37  ;;  %1921 = vadd.xlane.f32.xlu0 %v1920_v58 }
 0x427   : > { %1924 = vadd.xlane.f32.xlu1 %v1923_v57 }
 0x429   : > { %v1705_v3 = vpop.f32.mrf.mxu2 }
 0x42a   : > { %v1903_v11 = vmul.f32 %v1705_v3, %v1705_v3  ;;  %v1806_v0 = vmul.f32 %v1705_v3, %v3053_v7 }
 0x42c   : > { %v1935_v36 = vsel %vm4764_vm3, %v1903_v11, 0.0  ;;  %v1839_v32 = vsel %vm4772_vm1, %v1806_v0, 0.0 }
 0x42d   : > { %1936 = vadd.xlane.f32.xlu2 %v1935_v36 }
 0x431   : > { %v1650_v13 = vpop.f32.mrf.mxu3  ;;  %v3925_v18 = vpop.f32.mrf.mxu2 }
 0x432   : > { %v1900_v23 = vmul.f32 %v1650_v13, %v1650_v13  ;;  %v1904_v33 = vmul.f32 %v3925_v18, %v3925_v18  ;;  %v1803_v52 = vmul.f32 %v1650_v13, %v3043_v6  ;;  %v1807_v56 = vmul.f32 %v3925_v18, %v3043_v6 }
 0x434   : > { %v1938_v60 = vsel %vm1817_vm4, %v1904_v33, 0.0  ;;  %v1926_v1 = vsel %vm1817_vm4, %v1900_v23, 0.0  ;;  %v1830_v24 = vsel %vm1817_vm4, %v1803_v52, 0.0  ;;  %v1842_v16 = vsel %vm1817_vm4, %v1807_v56, 0.0 }
 0x435   : > { %1939 = vadd.xlane.f32.xlu0 %v1938_v60  ;;  %1927 = vadd.xlane.f32.xlu2 %v1926_v1 }
 0x43b   : > { %v3969_v38 = vpop.xlane.xlu2 %1869 }
 0x443   : > { %v3978_v12 = vpop.xlane.xlu1 %1866 }
 0x444   : > { %v1676_v45 = vpop.f32.mrf.mxu1  ;;  %2843 = vrsqrt.f32 %v3978_v12  ;;  %vm1880_vm2 = vcmp.eq.f32.partialorder %v3978_v12, 0.0 }
 0x445   : > { %v1901_v41 = vmul.f32 %v1676_v45, %v1676_v45  ;;  %v1804_v48 = vmul.f32 %v1676_v45, %v3053_v7 }
 0x447   : > { %v1929_v28 = vsel %vm4765_vm6, %v1901_v41, 0.0  ;;  %v1833_v46 = vsel %vm4773_vm0, %v1804_v48, 0.0  ;;  %vm1890_vm6 = vcmp.eq.f32.partialorder %v3969_v38, inf }
 0x448   : > { %1930 = vadd.xlane.f32.xlu0 %v1929_v28 }
 0x44a   : > { %v2844_v40 = vpop.eup %2843 }
 0x44b   : > { %v1872_v18 = vmul.f32 %v2844_v40, %v3978_v12 }
 0x452   : > { %v3932_v20 = vpop.f32.mrf.mxu3 }
 0x453   : > { %v1905_v42 = vmul.f32 %v3932_v20, %v3932_v20  ;;  %v1808_v11 = vmul.f32 %v3932_v20, %v3053_v7  ;;  %v1873_v20 = vmul.f32 %v2844_v40, %v1872_v18 }
 0x455   : > { %v1941_v26 = vsel %vm4766_vm7, %v1905_v42, 0.0  ;;  %v1845_v60 = vsel %vm4774_vm14, %v1808_v11, 0.0  ;;  %vm1892_vm7 = vcmp.eq.f32.partialorder %v3969_v38, 0.0 }
 0x456   : > { %1942 = vadd.xlane.f32.xlu1 %v1941_v26 }
 0x479   : > { %v3937_v51 = vpop.f32.mrf.mxu2 }
 0x47a   : > { %v1909_v2 = vmul.f32 %v3937_v51, %v3937_v51  ;;  %v1812_v36 = vmul.f32 %v3937_v51, %v3053_v7 }
 0x47b   : > { %v1679_v34 = vpop.f32.mrf.mxu1 }
 0x47c   : > { %v1902_v21 = vmul.f32 %v1679_v34, %v1679_v34  ;;  %v1953_v62 = vsel %vm4768_vm9, %v1909_v2, 0.0  ;;  %v1805_v9 = vmul.f32 %v1679_v34, %v3043_v6  ;;  %v1857_v41 = vsel %vm4775_vm15, %v1812_v36, 0.0 }
 0x47e   : > { %v1932_v35 = vsel %vm1817_vm4, %v1902_v21, 0.0  ;;  %v1836_v37 = vsel %vm1817_vm4, %v1805_v9, 0.0 }
 0x47f   : > { %1933 = vadd.xlane.f32.xlu1 %v1932_v35 }
 0x480   : > { %v3982_v49 = vpop.xlane.xlu2 %1918 }
 0x481   : > { %2845 = vrsqrt.f32 %v3982_v49  ;;  %vm1990_vm5 = vcmp.eq.f32.partialorder %v3982_v49, inf  ;;  %v1993_v36 = vand.u32 2147483648, %v3982_v49  ;;  %vm1992_vm3 = vcmp.eq.f32.partialorder %v3982_v49, 0.0 }
 0x482   : > { %v3945_v61 = vpop.f32.mrf.mxu2  ;;  %2847 = vrsqrt.f32 %v3969_v38 }
 0x483   : > { %v1910_v22 = vmul.f32 %v3945_v61, %v3945_v61  ;;  %v1813_v35 = vmul.f32 %v3945_v61, %v3043_v6 }
 0x484   : > { %v3940_v47 = vpop.f32.mrf.mxu1 }
 0x485   : > { %v1907_v5 = vmul.f32 %v3940_v47, %v3940_v47  ;;  %v1956_v50 = vsel %vm1817_vm4, %v1910_v22, 0.0  ;;  %v1810_v13 = vmul.f32 %v3940_v47, %v3053_v7 }
 0x487   : > { %v1947_v30 = vsel %vm4767_vm8, %v1907_v5, 0.0  ;;  %v2846_v3 = vpop.eup %2845  ;;  %v1851_v7 = vsel %vm4776_vm12, %v1810_v13, 0.0  ;;  %v1874_v5 = vmul.f32 0.5, %v1873_v20 }
 0x488   : > { %1948 = vadd.xlane.f32.xlu0 %v1947_v30  ;;  %v1984_v23 = vmul.f32 %v2846_v3, %v3982_v49  ;;  %v2848_v1 = vpop.eup %2847 }
 0x489   : > { %v1737_v19 = vpop.f32.mrf.mxu3  ;;  %v1884_v51 = vmul.f32 %v2848_v1, %v3969_v38 }
 0x48a   : > { %v1906_v29 = vmul.f32 %v1737_v19, %v1737_v19  ;;  %v3986_v59 = vpop.xlane.xlu0 %1912  ;;  %v1809_v55 = vmul.f32 %v1737_v19, %v3043_v6  ;;  %v1985_v42 = vmul.f32 %v2846_v3, %v1984_v23 }
 0x48b   : > { %2849 = vrsqrt.f32 %v3986_v59  ;;  %vm1966_vm8 = vcmp.eq.f32.partialorder %v3986_v59, inf  ;;  %vm1968_vm10 = vcmp.eq.f32.partialorder %v3986_v59, 0.0 }
 0x48c   : > { %v3949_v15 = vpop.f32.mrf.mxu1  ;;  %v1944_v14 = vsel %vm1817_vm4, %v1906_v29, 0.0  ;;  %v1848_v58 = vsel %vm1817_vm4, %v1809_v55, 0.0  ;;  %v1986_v30 = vmul.f32 0.5, %v1985_v42 }
 0x48d   : > { %v1908_v44 = vmul.f32 %v3949_v15, %v3949_v15  ;;  %1945 = vadd.xlane.f32.xlu2 %v1944_v14  ;;  %v1811_v26 = vmul.f32 %v3949_v15, %v3043_v6  ;;  %v1885_v15 = vmul.f32 %v2848_v1, %v1884_v51 }
 0x48e   : > { %v1987_v6 = vsub.f32 1.5, %v1986_v30  ;;  %v1893_v30 = vand.u32 2147483648, %v3969_v38 }
 0x48f   : > { %v1950_v25 = vsel %vm1817_vm4, %v1908_v44, 0.0  ;;  %v1854_v22 = vsel %vm1817_vm4, %v1811_v26, 0.0 }
 0x490   : > { %1957 = vadd.xlane.f32.xlu0 %v1956_v50  ;;  %1951 = vadd.xlane.f32.xlu1 %v1950_v25  ;;  %v1860_v50 = vsel %vm1817_vm4, %v1813_v35, 0.0  ;;  %v1875_v25 = vsub.f32 1.5, %v1874_v5  ;;  %v1988_v54 = vmul.f32 %v2846_v3, %v1987_v6  ;;  %vm1878_vm4 = vcmp.eq.f32.partialorder %v3978_v12, inf }
 0x491   : > { %v2850_v28 = vpop.eup %2849 }
 0x492   : > { %v3995_v57 = vpop.xlane.xlu1 %1915  ;;  %v4008_v33 = vpop.xlane.xlu0 %1921  ;;  %v1960_v47 = vmul.f32 %v2850_v28, %v3986_v59  ;;  %v1989_v48 = vmul.f32 %v1988_v54, %v3982_v49 }
 0x493   : > { %2851 = vrsqrt.f32 %v3995_v57  ;;  %vm1978_vm9 = vcmp.eq.f32.partialorder %v3995_v57, inf  ;;  %vm1980_vm11 = vcmp.eq.f32.partialorder %v3995_v57, 0.0  ;;  %vm2002_vm13 = vcmp.eq.f32.partialorder %v4008_v33, inf }
 0x494   : > { %2853 = vrsqrt.f32 %v4008_v33  ;;  %v1961_v44 = vmul.f32 %v2850_v28, %v1960_v47  ;;  %vm2004_vm1 = vcmp.eq.f32.partialorder %v4008_v33, 0.0 }
 0x495   : > { %1954 = vadd.xlane.f32.xlu2 %v1953_v62  ;;  %v1886_v62 = vmul.f32 0.5, %v1885_v15 }
 0x498   : > { %1822 = vadd.xlane.f32.xlu0 %v1821_v10  ;;  %1815 = vadd.xlane.f32.xlu1 %v1814_v8  ;;  %v1962_v10 = vmul.f32 0.5, %v1961_v44  ;;  %v1876_v8 = vmul.f32 %v2844_v40, %v1875_v25  ;;  %v1991_v40 = vsel %vm1990_vm5, %v3982_v49, %v1989_v48  ;;  %v1981_v25 = vand.u32 2147483648, %v3995_v57 }
 0x499   : > { %v2852_v34 = vpop.eup %2851 }
 0x49a   : > { %v4018_v21 = vpop.xlane.xlu1 %1924  ;;  %v2854_v19 = vpop.eup %2853  ;;  %v1972_v29 = vmul.f32 %v2852_v34, %v3995_v57  ;;  %v1877_v0 = vmul.f32 %v1876_v8, %v3978_v12 }
 0x49b   : > { %2855 = vrsqrt.f32 %v4018_v21  ;;  %v1996_v61 = vmul.f32 %v2854_v19, %v4008_v33  ;;  %vm2014_vm0 = vcmp.eq.f32.partialorder %v4018_v21, inf  ;;  %vm2016_vm14 = vcmp.eq.f32.partialorder %v4018_v21, 0.0 }
 0x49c   : > { %v1973_v2 = vmul.f32 %v2852_v34, %v1972_v29 }
 0x49d   : > { %1819 = vadd.xlane.f32.xlu2 %v1818_v27  ;;  %v1997_v63 = vmul.f32 %v2854_v19, %v1996_v61 }
 0x49e   : > { %v1974_v52 = vmul.f32 0.5, %v1973_v2 }
 0x4a0   : > { %1831 = vadd.xlane.f32.xlu0 %v1830_v24  ;;  %1825 = vadd.xlane.f32.xlu1 %v1824_v17  ;;  %v4012_v45 = vpop.xlane.xlu2 %1936  ;;  %v1887_v24 = vsub.f32 1.5, %v1886_v62  ;;  %v1963_v17 = vsub.f32 1.5, %v1962_v10 }
 0x4a1   : > { %v4033_v31 = vpop.eup %2855  ;;  %2857 = vrsqrt.f32 %v4012_v45  ;;  %vm2062_vm15 = vcmp.eq.f32.partialorder %v4012_v45, inf }
 0x4a2   : > { %v2008_v27 = vmul.f32 %v4033_v31, %v4018_v21  ;;  %v1888_v55 = vmul.f32 %v2848_v1, %v1887_v24 }
 0x4a4   : > { %v2009_v56 = vmul.f32 %v4033_v31, %v2008_v27  ;;  %v1889_v1 = vmul.f32 %v1888_v55, %v3969_v38  ;;  %v2005_v27 = vand.u32 2147483648, %v4008_v33 }
 0x4a5   : > { %1828 = vadd.xlane.f32.xlu2 %v1827_v53  ;;  %v1998_v53 = vmul.f32 0.5, %v1997_v63 }
 0x4a6   : > { %v2010_v23 = vmul.f32 0.5, %v2009_v56  ;;  %v1891_v5 = vsel %vm1890_vm6, %v3969_v38, %v1889_v1 }
 0x4a7   : > { %v1999_v3 = vsub.f32 1.5, %v1998_v53 }
 0x4a8   : > { %1840 = vadd.xlane.f32.xlu0 %v1839_v32  ;;  %1834 = vadd.xlane.f32.xlu1 %v1833_v46  ;;  %v4027_v14 = vpop.xlane.xlu0 %1939  ;;  %v4031_v43 = vpop.xlane.xlu2 %1927  ;;  %v1975_v46 = vsub.f32 1.5, %v1974_v52  ;;  %v2011_v51 = vsub.f32 1.5, %v2010_v23 }
 0x4a9   : > { %2859 = vrsqrt.f32 %v4031_v43  ;;  %v4043_v32 = vpop.eup %2857  ;;  %v2000_v26 = vmul.f32 %v2854_v19, %v1999_v3  ;;  %vm2026_vm12 = vcmp.eq.f32.partialorder %v4031_v43, inf  ;;  %vm2074_vm5 = vcmp.eq.f32.partialorder %v4027_v14, inf }
 0x4aa   : > { %2861 = vrsqrt.f32 %v4027_v14  ;;  %v2056_v11 = vmul.f32 %v4043_v32, %v4012_v45  ;;  %v1976_v13 = vmul.f32 %v2852_v34, %v1975_v46  ;;  %v2012_v2 = vmul.f32 %v4033_v31, %v2011_v51 }
 0x4ab   : > { %v2001_v15 = vmul.f32 %v2000_v26, %v4008_v33 }
 0x4ac   : > { %v2057_v49 = vmul.f32 %v4043_v32, %v2056_v11 }
 0x4ad   : > { %1837 = vadd.xlane.f32.xlu2 %v1836_v37  ;;  %v1881_v37 = vand.u32 2147483648, %v3978_v12  ;;  %v2003_v52 = vsel %vm2002_vm13, %v4008_v33, %v2001_v15 }
 0x4ae   : > { %v2058_v44 = vmul.f32 0.5, %v2057_v49  ;;  %v2006_v48 = vsel %vm2004_vm1, %v2005_v27, %v2003_v52 }
 0x4af   : > { %v4047_v9 = vpop.eup %2859 }
 0x4b0   : > { %1849 = vadd.xlane.f32.xlu0 %v1848_v58  ;;  %1843 = vadd.xlane.f32.xlu1 %v1842_v16  ;;  %v1964_v58 = vmul.f32 %v2850_v28, %v1963_v17  ;;  %v1879_v16 = vsel %vm1878_vm4, %v3978_v12, %v1877_v0  ;;  %v2020_v18 = vmul.f32 %v4047_v9, %v4031_v43  ;;  %v2059_v31 = vsub.f32 1.5, %v2058_v44 }
 0x4b1   : > { %v1977_v12 = vmul.f32 %v1976_v13, %v3995_v57  ;;  %vm2064_vm4 = vcmp.eq.f32.partialorder %v4012_v45, 0.0 }
 0x4b2   : > { %v1965_v28 = vmul.f32 %v1964_v58, %v3986_v59  ;;  %v2021_v34 = vmul.f32 %v4047_v9, %v2020_v18  ;;  %v2060_v56 = vmul.f32 %v4043_v32, %v2059_v31 }
 0x4b4   : > { %v1967_v19 = vsel %vm1966_vm8, %v3986_v59, %v1965_v28  ;;  %v2022_v6 = vmul.f32 0.5, %v2021_v34  ;;  %v2061_v32 = vmul.f32 %v2060_v56, %v4012_v45 }
 0x4b5   : > { %1846 = vadd.xlane.f32.xlu2 %v1845_v60  ;;  %v4062_v60 = vpop.eup %2861 }
 0x4b6   : > { %v2068_v35 = vmul.f32 %v4062_v60, %v4027_v14  ;;  %v2023_v24 = vsub.f32 1.5, %v2022_v6 }
 0x4b8   : > { %1858 = vadd.xlane.f32.xlu0 %v1857_v41  ;;  %1852 = vadd.xlane.f32.xlu1 %v1851_v7  ;;  %v4067_v41 = vsel %vm1880_vm2, %v1881_v37, %v1879_v16  ;;  %v1994_v7 = vsel %vm1992_vm3, %v1993_v36, %v1991_v40  ;;  %v2069_v62 = vmul.f32 %v4062_v60, %v2068_v35  ;;  %v2017_v40 = vand.u32 2147483648, %v4018_v21 }
 0x4b9   : > { %v2153_v47 = vmul.f32 %v1994_v7, %v4067_v41  ;;  %v2024_v55 = vmul.f32 %v4047_v9, %v2023_v24  ;;  %vm2028_vm2 = vcmp.eq.f32.partialorder %v4031_v43, 0.0  ;;  %vm2076_vm3 = vcmp.eq.f32.partialorder %v4027_v14, 0.0 }
 0x4ba   : > { %v2070_v0 = vmul.f32 0.5, %v2069_v62 }
 0x4bb   : > { %v4039_v39 = vpop.xlane.xlu0 %1930  ;;  %v4097_v10 = vmax.f32 %v2153_v47, 1e-08  ;;  %v2025_v18 = vmul.f32 %v2024_v55, %v4031_v43 }
 0x4bc   : > { %2863 = vrsqrt.f32 %v4039_v39  ;;  %v2071_v58 = vsub.f32 1.5, %v2070_v0  ;;  %vm2038_vm6 = vcmp.eq.f32.partialorder %v4039_v39, inf }
 0x4bd   : > { %1855 = vadd.xlane.f32.xlu2 %v1854_v22  ;;  %v1969_v22 = vand.u32 2147483648, %v3986_v59  ;;  %v4106_v59 = vsel %vm1892_vm7, %v1893_v30, %v1891_v5  ;;  %vm2040_vm7 = vcmp.eq.f32.partialorder %v4039_v39, 0.0  ;;  %vm2216_vm8 = vweird.f32 %v4097_v10 }
 0x4be   : > { %v2154_v16 = vmul.f32 %v2006_v48, %v4106_v59  ;;  %v2072_v23 = vmul.f32 %v4062_v60, %v2071_v58  ;;  %v2065_v60 = vand.u32 2147483648, %v4012_v45 }
 0x4bf   : > { %v1970_v61 = vsel %vm1968_vm10, %v1969_v22, %v1967_v19  ;;  %v2220_v22 = vand.u32 2147483647, %v4097_v10 }
 0x4c0   : > { %1861 = vadd.xlane.f32.xlu1 %v1860_v50  ;;  %v1979_v50 = vsel %vm1978_vm9, %v3995_v57, %v1977_v12  ;;  %v2151_v17 = vmul.f32 %v1970_v61, %v4067_v41  ;;  %v2013_v57 = vmul.f32 %v2012_v2, %v4018_v21  ;;  %v4136_v1 = vmax.f32 %v2154_v16, 1e-08 }
 0x4c1   : > { %v1982_v63 = vsel %vm1980_vm11, %v1981_v25, %v1979_v50  ;;  %v2027_v12 = vsel %vm2026_vm12, %v4031_v43, %v2025_v18  ;;  %v2073_v34 = vmul.f32 %v2072_v23, %v4027_v14  ;;  %vm4192_vm10 = vcmp.eq.f32.partialorder %v2220_v22, 8.507059e+37 }
 0x4c2   : > { %v4072_v42 = vpop.eup %2863  ;;  %v2152_v46 = vmul.f32 %v1982_v63, %v4106_v59  ;;  %v4120_v37 = vmax.f32 %v2151_v17, 1e-08  ;;  %v2015_v33 = vsel %vm2014_vm0, %v4018_v21, %v2013_v57  ;;  %v2063_v21 = vsel %vm2062_vm15, %v4012_v45, %v2061_v32 }
 0x4c3   : > { %v2032_v29 = vmul.f32 %v4072_v42, %v4039_v39  ;;  %v2018_v9 = vsel %vm2016_vm14, %v2017_v40, %v2015_v33  ;;  %v2066_v35 = vsel %vm2064_vm4, %v2065_v60, %v2063_v21  ;;  %v2075_v15 = vsel %vm2074_vm5, %v4027_v14, %v2073_v34 }
 0x4c4   : > { %v4126_v36 = vmax.f32 %v2152_v46, 1e-08  ;;  %v2155_v49 = vmul.f32 %v2018_v9, %v4067_v41  ;;  %v2159_v50 = vmul.f32 %v2066_v35, %v4067_v41  ;;  %v2222_v63 = vand.u32 2147483648, %v4097_v10 }
 0x4c5   : > { %v2033_v8 = vmul.f32 %v4072_v42, %v2032_v29  ;;  %vm2188_vm11 = vweird.f32 %v4120_v37  ;;  %v2192_v46 = vand.u32 2147483647, %v4120_v37  ;;  %v2194_v56 = vand.u32 2147483648, %v4120_v37 }
 0x4c6   : > { %v4155_v29 = vmax.f32 %v2155_v49, 1e-08  ;;  %v4184_v24 = vmax.f32 %v2159_v50, 1e-08  ;;  %v2206_v40 = vand.u32 2147483647, %v4126_v36  ;;  %vm2202_vm12 = vweird.f32 %v4126_v36 }
 0x4c7   : > { %v2034_v38 = vmul.f32 0.5, %v2033_v8  ;;  %v2041_v8 = vand.u32 2147483648, %v4039_v39  ;;  %vm4228_vm14 = vcmp.eq.f32.partialorder %v2192_v46, 8.507059e+37  ;;  %v2208_v60 = vand.u32 2147483648, %v4126_v36 }
 0x4c8   : > { %vm4244_vm4 = vcmp.eq.f32.partialorder %v2206_v40, 8.507059e+37  ;;  %vm2230_vm5 = vweird.f32 %v4136_v1  ;;  %v2236_v50 = vand.u32 2147483648, %v4136_v1  ;;  %v2304_v16 = vand.u32 2147483647, %v4184_v24 }
 0x4c9   : > { %v4070_v20 = vpop.xlane.xlu1 %1942  ;;  %v2035_v3 = vsub.f32 1.5, %v2034_v38 }
 0x4ca   : > { %2865 = vrsqrt.f32 %v4070_v20  ;;  %vm2086_vm13 = vcmp.eq.f32.partialorder %v4070_v20, inf  ;;  %vm2088_vm0 = vcmp.eq.f32.partialorder %v4070_v20, 0.0 }
 0x4cb   : > { %2867 = vrcp.f32 %v4097_v10  ;;  %v2036_v7 = vmul.f32 %v4072_v42, %v2035_v3  ;;  %v2029_v42 = vand.u32 2147483648, %v4031_v43  ;;  %v2077_v43 = vand.u32 2147483648, %v4027_v14 }
 0x4cc   : > { %2869 = vrcp.f32 %v4120_v37  ;;  %v2306_v14 = vand.u32 2147483648, %v4184_v24 }
 0x4cd   : > { %2871 = vrcp.f32 %v4126_v36  ;;  %v2037_v47 = vmul.f32 %v2036_v7, %v4039_v39  ;;  %v2030_v19 = vsel %vm2028_vm2, %v2029_v42, %v2027_v12  ;;  %v2078_v31 = vsel %vm2076_vm3, %v2077_v43, %v2075_v15 }
 0x4ce   : > { %2873 = vrcp.f32 %v4136_v1  ;;  %v2156_v2 = vmul.f32 %v2030_v19, %v4106_v59  ;;  %v4345_v7 = vor.u32 1.1754944e-38, %v2306_v14 }
 0x4cf   : > { %v2039_v25 = vsel %vm2038_vm6, %v4039_v39, %v2037_v47  ;;  %2875 = vrcp.f32 %v4155_v29  ;;  %v2223_v39 = vor.u32 1.1754944e-38, %v2222_v63 }
 0x4d0   : > { %v4102_v54 = vpop.eup %2865  ;;  %v4190_v48 = vmax.f32 %v2156_v2, 1e-08  ;;  %2877 = vrcp.f32 %v4184_v24 }
 0x4d1   : > { %v2080_v53 = vmul.f32 %v4102_v54, %v4070_v20  ;;  %v4128_v13 = vpop.eup %2867 }
 0x4d2   : > { %v2212_v26 = vmul.f32 %v4128_v13, %v4097_v10  ;;  %v4152_v51 = vpop.eup %2869  ;;  %vm2217_vm9 = vweird.f32 %v4128_v13  ;;  %2879 = vrcp.f32 %v4190_v48  ;;  %v2089_v10 = vand.u32 2147483648, %v4070_v20 }
 0x4d3   : > { %v2081_v11 = vmul.f32 %v4102_v54, %v2080_v53  ;;  %v4157_v45 = vpop.eup %2871  ;;  %v2184_v44 = vmul.f32 %v4152_v51, %v4120_v37  ;;  %v2160_v53 = vmul.f32 %v2078_v31, %v4106_v59  ;;  %vm4209_vm1 = vmor %vm2216_vm8, %vm2217_vm9  ;;  %vm2189_vm15 = vweird.f32 %v4152_v51 }
 0x4d4   : > { %v2213_v30 = vsub.f32 1.0, %v2212_v26  ;;  %v4172_v62 = vpop.eup %2873  ;;  %v2198_v52 = vmul.f32 %v4157_v45, %v4126_v36  ;;  %vm2203_vm2 = vweird.f32 %v4157_v45  ;;  %vm4259_vm3 = vmor %vm2188_vm11, %vm2189_vm15  ;;  %v2248_v37 = vand.u32 2147483647, %v4155_v29 }
 0x4d5   : > { %v2082_v28 = vmul.f32 0.5, %v2081_v11  ;;  %v2185_v27 = vsub.f32 1.0, %v2184_v44  ;;  %v2226_v0 = vmul.f32 %v4172_v62, %v4136_v1  ;;  %v4201_v33 = vpop.eup %2875  ;;  %v4225_v23 = vmax.f32 %v2160_v53, 1e-08  ;;  %vm4278_vm6 = vmor %vm2202_vm12, %vm2203_vm2 }
 0x4d6   : > { %v2214_v61 = vmul.f32 %v4128_v13, %v2213_v30  ;;  %v2199_v38 = vsub.f32 1.0, %v2198_v52  ;;  %v4249_v34 = vpop.eup %2877  ;;  %v2234_v30 = vand.u32 2147483647, %v4136_v1  ;;  %v2209_v44 = vor.u32 1.1754944e-38, %v2208_v60 }
 0x4d7   : > { %v2083_v5 = vsub.f32 1.5, %v2082_v28  ;;  %v2186_v58 = vmul.f32 %v4152_v51, %v2185_v27  ;;  %v2227_v9 = vsub.f32 1.0, %v2226_v0  ;;  %v2195_v28 = vor.u32 1.1754944e-38, %v2194_v56 }
 0x4d8   : > { %v2215_v57 = vadd.f32 %v4128_v13, %v2214_v61  ;;  %v2200_v18 = vmul.f32 %v4157_v45, %v2199_v38  ;;  %v4255_v47 = vpop.eup %2879  ;;  %v2296_v36 = vmul.f32 %v4249_v34, %v4184_v24  ;;  %vm4293_vm8 = vcmp.eq.f32.partialorder %v2234_v30, 8.507059e+37 }
 0x4d9   : > { %v2084_v6 = vmul.f32 %v4102_v54, %v2083_v5  ;;  %v2042_v54 = vsel %vm2040_vm7, %v2041_v8, %v2039_v25  ;;  %v2187_v49 = vadd.f32 %v4152_v51, %v2186_v58  ;;  %v2228_v42 = vmul.f32 %v4172_v62, %v2227_v9 }
 0x4da   : > { %v2157_v55 = vmul.f32 %v2042_v54, %v4067_v41  ;;  %v2219_v32 = vsel %vm4209_vm1, %v4128_v13, %v2215_v57  ;;  %v2240_v13 = vmul.f32 %v4201_v33, %v4155_v29  ;;  %v2201_v35 = vadd.f32 %v4157_v45, %v2200_v18 }
 0x4db   : > { %v2085_v17 = vmul.f32 %v2084_v6, %v4070_v20  ;;  %v2191_v15 = vsel %vm4259_vm3, %v4152_v51, %v2187_v49  ;;  %v2229_v2 = vadd.f32 %v4172_v62, %v2228_v42  ;;  %vm2231_vm7 = vweird.f32 %v4172_v62 }
 0x4dc   : > { %v4234_v26 = vmax.f32 %v2157_v55, 1e-08  ;;  %v2241_v19 = vsub.f32 1.0, %v2240_v13  ;;  %v2250_v51 = vand.u32 2147483648, %v4155_v29  ;;  %v2205_v8 = vsel %vm4278_vm6, %v4157_v45, %v2201_v35  ;;  %vm4308_vm9 = vmor %vm2230_vm5, %vm2231_vm7 }
 0x4dd   : > { %v2087_v3 = vsel %vm2086_vm13, %v4070_v20, %v2085_v17  ;;  %v4241_v20 = vsel %vm4192_vm10, %v2223_v39, %v2219_v32  ;;  %v2254_v63 = vmul.f32 %v4255_v47, %v4190_v48  ;;  %v4304_v45 = vsel %vm4228_vm14, %v2195_v28, %v2191_v15 }
 0x4de   : > { %v2090_v21 = vsel %vm2088_vm0, %v2089_v10, %v2087_v3  ;;  %v2242_v54 = vmul.f32 %v4201_v33, %v2241_v19  ;;  %v2237_v0 = vor.u32 1.1754944e-38, %v2236_v50  ;;  %vm2244_vm10 = vweird.f32 %v4155_v29 }
 0x4df   : > { %v2161_v43 = vmul.f32 %v2090_v21, %v4067_v41  ;;  %v4318_v53 = vsel %vm4244_vm4, %v2209_v44, %v2205_v8  ;;  %v2233_v1 = vsel %vm4308_vm9, %v4172_v62, %v2229_v2  ;;  %v2251_v46 = vor.u32 1.1754944e-38, %v2250_v51 }
 0x4e0   : > { %v2255_v56 = vsub.f32 1.0, %v2254_v63  ;;  %vm2245_vm11 = vweird.f32 %v4201_v33  ;;  %vm4324_vm13 = vcmp.eq.f32.partialorder %v2248_v37, 8.507059e+37  ;;  %v2297_v58 = vsub.f32 1.0, %v2296_v36 }
 0x4e1   : > { %v4298_v27 = vmax.f32 %v2161_v43, 1e-08  ;;  %v2243_v32 = vadd.f32 %v4201_v33, %v2242_v54  ;;  %vm2300_vm1 = vweird.f32 %v4184_v24  ;;  %v4341_v10 = vsel %vm4293_vm8, %v2237_v0, %v2233_v1  ;;  %vm4362_vm14 = vmor %vm2244_vm10, %vm2245_vm11 }
 0x4e2   : > { %vm2258_vm0 = vweird.f32 %v4190_v48  ;;  %v2262_v60 = vand.u32 2147483647, %v4190_v48  ;;  %v2256_v12 = vmul.f32 %v4255_v47, %v2255_v56  ;;  %v2264_v42 = vand.u32 2147483648, %v4190_v48 }
 0x4e3   : > { %v2298_v5 = vmul.f32 %v4249_v34, %v2297_v58  ;;  %v2247_v19 = vsel %vm4362_vm14, %v4201_v33, %v2243_v32  ;;  %vm2301_vm4 = vweird.f32 %v4249_v34  ;;  %vm4380_vm2 = vcmp.eq.f32.partialorder %v2304_v16, 8.507059e+37 }
 0x4e4   : > { %v2318_v33 = vand.u32 2147483647, %v4225_v23  ;;  %v2257_v2 = vadd.f32 %v4255_v47, %v2256_v12  ;;  %vm2259_vm5 = vweird.f32 %v4255_v47  ;;  %vm4391_vm3 = vcmp.eq.f32.partialorder %v2262_v60, 8.507059e+37  ;;  %vm4408_vm6 = vmor %vm2300_vm1, %vm2301_vm4 }
 0x4e5   : > { %v2299_v51 = vadd.f32 %v4249_v34, %v2298_v5  ;;  %v2265_v36 = vor.u32 1.1754944e-38, %v2264_v42  ;;  %vm2314_vm7 = vweird.f32 %v4225_v23  ;;  %vm4419_vm8 = vmor %vm2258_vm0, %vm2259_vm5  ;;  %v2320_v24 = vand.u32 2147483648, %v4225_v23 }
 0x4e6   : > { %v2261_v16 = vsel %vm4419_vm8, %v4255_v47, %v2257_v2  ;;  %vm4434_vm10 = vcmp.eq.f32.partialorder %v2318_v33, 8.507059e+37  ;;  %v2278_v42 = vand.u32 2147483648, %v4234_v26 }
 0x4e7   : > { %v2303_v48 = vsel %vm4408_vm6, %v4249_v34, %v2299_v51  ;;  %v4479_v33 = vsel %vm4391_vm3, %v2265_v36, %v2261_v16 }
 0x4e8   : > { %v2279_v51 = vor.u32 1.1754944e-38, %v2278_v42 }
 0x4f2   : > { %v4216_v11 = vpop.xlane.xlu1 %1933 }
 0x4f3   : > { %2881 = vrsqrt.f32 %v4216_v11  ;;  %vm2050_vm15 = vcmp.eq.f32.partialorder %v4216_v11, inf  ;;  %vm2052_vm12 = vcmp.eq.f32.partialorder %v4216_v11, 0.0 }
 0x4f4   : > { %2883 = vrcp.f32 %v4225_v23 }
 0x4f5   : > { %2885 = vrcp.f32 %v4234_v26 }
 0x4f9   : > { %v2882_v22 = vpop.eup %2881 }
 0x4fa   : > { %v2044_v25 = vmul.f32 %v2882_v22, %v4216_v11  ;;  %v4300_v17 = vpop.eup %2883 }
 0x4fb   : > { %v4272_v6 = vpop.xlane.xlu0 %1948  ;;  %v4314_v39 = vpop.eup %2885  ;;  %v2310_v62 = vmul.f32 %v4300_v17, %v4225_v23  ;;  %vm2315_vm9 = vweird.f32 %v4300_v17 }
 0x4fc   : > { %2887 = vrsqrt.f32 %v4272_v6  ;;  %v2045_v52 = vmul.f32 %v2882_v22, %v2044_v25  ;;  %v2268_v18 = vmul.f32 %v4314_v39, %v4234_v26  ;;  %vm2273_vm11 = vweird.f32 %v4314_v39  ;;  %vm4460_vm1 = vmor %vm2314_vm7, %vm2315_vm9 }
 0x4fd   : > { %2889 = vrcp.f32 %v4298_v27  ;;  %v2311_v43 = vsub.f32 1.0, %v2310_v62  ;;  %vm2112_vm3 = vcmp.eq.f32.partialorder %v4272_v6, 0.0 }
 0x4fe   : > { %v2046_v38 = vmul.f32 0.5, %v2045_v52  ;;  %v2269_v15 = vsub.f32 1.0, %v2268_v18  ;;  %v4397_v52 = vsel %vm4324_vm13, %v2251_v46, %v2247_v19  ;;  %vm2272_vm13 = vweird.f32 %v4234_v26 }
 0x4ff   : > { %v2312_v31 = vmul.f32 %v4300_v17, %v2311_v43  ;;  %v4454_v19 = vsel %vm4380_vm2, %v4345_v7, %v2303_v48  ;;  %vm4468_vm0 = vmor %vm2272_vm13, %vm2273_vm11  ;;  %vm2110_vm2 = vcmp.eq.f32.partialorder %v4272_v6, inf }
 0x500   : > { %v2047_v40 = vsub.f32 1.5, %v2046_v38  ;;  %v4329_v3 = vpop.xlane.xlu2 %1945  ;;  %v2270_v0 = vmul.f32 %v4314_v39, %v2269_v15 }
 0x501   : > { %2891 = vrsqrt.f32 %v4329_v3  ;;  %v2101_v48 = vand.u32 2147483648, %v4329_v3  ;;  %vm2100_vm5 = vcmp.eq.f32.partialorder %v4329_v3, 0.0 }
 0x502   : > { %v4336_v9 = vpop.eup %2887  ;;  %v2048_v28 = vmul.f32 %v2882_v22, %v2047_v40  ;;  %v2053_v22 = vand.u32 2147483648, %v4216_v11  ;;  %v2271_v34 = vadd.f32 %v4314_v39, %v2270_v0  ;;  %v2332_v0 = vand.u32 2147483647, %v4298_v27 }
 0x503   : > { %v2104_v13 = vmul.f32 %v4336_v9, %v4272_v6  ;;  %v4349_v21 = vpop.xlane.xlu1 %1951  ;;  %v4351_v49 = vpop.xlane.xlu0 %1957 }
 0x504   : > { %2893 = vrsqrt.f32 %v4349_v21  ;;  %v2049_v30 = vmul.f32 %v2048_v28, %v4216_v11  ;;  %v4375_v44 = vpop.eup %2889  ;;  %v2313_v28 = vadd.f32 %v4300_v17, %v2312_v31  ;;  %vm2122_vm7 = vcmp.eq.f32.partialorder %v4349_v21, inf }
 0x505   : > { %2895 = vrsqrt.f32 %v4351_v49  ;;  %v2105_v29 = vmul.f32 %v4336_v9, %v2104_v13  ;;  %v2324_v55 = vmul.f32 %v4375_v44, %v4298_v27  ;;  %vm2329_vm4 = vweird.f32 %v4375_v44 }
 0x506   : > { %v2051_v50 = vsel %vm2050_vm15, %v4216_v11, %v2049_v30  ;;  %v2276_v30 = vand.u32 2147483647, %v4234_v26  ;;  %v2317_v23 = vsel %vm4460_vm1, %v4300_v17, %v2313_v28  ;;  %vm2328_vm15 = vweird.f32 %v4298_v27 }
 0x507   : > { %v2892_v25 = vpop.eup %2891  ;;  %v2054_v61 = vsel %vm2052_vm12, %v2053_v22, %v2051_v50  ;;  %v2106_v57 = vmul.f32 0.5, %v2105_v29  ;;  %v2325_v35 = vsub.f32 1.0, %v2324_v55  ;;  %v2321_v22 = vor.u32 1.1754944e-38, %v2320_v24  ;;  %vm4519_vm6 = vmor %vm2328_vm15, %vm2329_vm4 }
 0x508   : > { %v2092_v8 = vmul.f32 %v2892_v25, %v4329_v3  ;;  %v4389_v63 = vpop.xlane.xlu2 %1954  ;;  %v2158_v56 = vmul.f32 %v2054_v61, %v4106_v59  ;;  %vm2277_vm14 = vcmp.eq.f32.partialorder %v2276_v30, 8.507059e+37  ;;  %vm2098_vm12 = vcmp.eq.f32.partialorder %v4329_v3, inf }
 0x509   : > { %2897 = vrsqrt.f32 %v4389_v63  ;;  %v2107_v13 = vsub.f32 1.5, %v2106_v57  ;;  %v4488_v17 = vsel %vm4434_vm10, %v2321_v22, %v2317_v23  ;;  %vm2146_vm8 = vcmp.eq.f32.partialorder %v4351_v49, inf }
 0x50a   : > { %v4400_v54 = vpop.eup %2893  ;;  %v2093_v1 = vmul.f32 %v2892_v25, %v2092_v8  ;;  %v4440_v18 = vmax.f32 %v2158_v56, 1e-08  ;;  %v2326_v8 = vmul.f32 %v4375_v44, %v2325_v35  ;;  %v2125_v35 = vand.u32 2147483648, %v4349_v21 }
 0x50b   : > { %v4413_v38 = vpop.eup %2895  ;;  %v1816_v58 = vpop.xlane.xlu1 %1815  ;;  %v2116_v62 = vmul.f32 %v4400_v54, %v4349_v21  ;;  %v2108_v7 = vmul.f32 %v4336_v9, %v2107_v13  ;;  %v2334_v9 = vand.u32 2147483648, %v4298_v27  ;;  %v2149_v26 = vand.u32 2147483648, %v4351_v49 }
 0x50c   : > { %v2094_v32 = vmul.f32 0.5, %v2093_v1  ;;  %v2140_v47 = vmul.f32 %v4413_v38, %v4351_v49  ;;  %v1823_v12 = vpop.xlane.xlu0 %1822  ;;  %2899 = vrcp.f32 %v4440_v18  ;;  %v4504_v16 = vadd.f32 %v4375_v44, %v2326_v8 }
 0x50d   : > { %v2117_v15 = vmul.f32 %v4400_v54, %v2116_v62  ;;  %v2109_v14 = vmul.f32 %v2108_v7, %v4272_v6  ;;  %v2407_v40 = vmul.f32 %v4304_v45, %v1816_v58  ;;  %v4509_v62 = vor.u32 1.1754944e-38, %v2334_v9 }
 0x50e   : > { %v2095_v60 = vsub.f32 1.5, %v2094_v32  ;;  %v2141_v37 = vmul.f32 %v4413_v38, %v2140_v47  ;;  %v2409_v32 = vmul.f32 %v4241_v20, %v1823_v12  ;;  %v2113_v45 = vand.u32 2147483648, %v4272_v6 }
 0x50f   : > { %v2898_v5 = vpop.eup %2897  ;;  %v2118_v36 = vmul.f32 0.5, %v2117_v15  ;;  %v2331_v12 = vsel %vm4519_vm6, %v4375_v44, %v4504_v16  ;;  %vm2134_vm9 = vcmp.eq.f32.partialorder %v4389_v63, inf  ;;  %vm2136_vm10 = vcmp.eq.f32.partialorder %v4389_v63, 0.0 }
 0x510   : > { %v2096_v29 = vmul.f32 %v2892_v25, %v2095_v60  ;;  %v2128_v50 = vmul.f32 %v2898_v5, %v4389_v63  ;;  %v2275_v25 = vsel %vm4468_vm0, %v4314_v39, %v2271_v34  ;;  %v1820_v31 = vpop.xlane.xlu2 %1819  ;;  %v2142_v1 = vmul.f32 0.5, %v2141_v37 }
 0x511   : > { %v4494_v57 = vsel %vm2277_vm14, %v2279_v51, %v2275_v25  ;;  %v2119_v28 = vsub.f32 1.5, %v2118_v36  ;;  %v2111_v34 = vsel %vm2110_vm2, %v4272_v6, %v2109_v14  ;;  %v2428_v30 = vmul.f32 6.0, %v2409_v32 }
 0x512   : > { %v2097_v61 = vmul.f32 %v2096_v29, %v4329_v3  ;;  %v2129_v2 = vmul.f32 %v2898_v5, %v2128_v50  ;;  %v4492_v11 = vpop.eup %2899  ;;  %v2143_v42 = vsub.f32 1.5, %v2142_v1  ;;  %v2408_v43 = vmul.f32 %v4318_v53, %v1820_v31 }
 0x513   : > { %v1826_v46 = vpop.xlane.xlu1 %1825  ;;  %v2282_v55 = vmul.f32 %v4492_v11, %v4440_v18  ;;  %v2114_v22 = vsel %vm2112_vm3, %v2113_v45, %v2111_v34  ;;  %v2120_v29 = vmul.f32 %v4400_v54, %v2119_v28  ;;  %v2137_v7 = vand.u32 2147483648, %v4389_v63 }
 0x514   : > { %v2130_v39 = vmul.f32 0.5, %v2129_v2  ;;  %v2099_v56 = vsel %vm2098_vm12, %v4329_v3, %v2097_v61  ;;  %v1832_v47 = vpop.xlane.xlu0 %1831  ;;  %v2410_v6 = vmul.f32 %v4341_v10, %v1826_v46  ;;  %v2144_v50 = vmul.f32 %v4413_v38, %v2143_v42 }
 0x515   : > { %v2102_v60 = vsel %vm2100_vm5, %v2101_v48, %v2099_v56  ;;  %v2283_v58 = vsub.f32 1.0, %v2282_v55  ;;  %vm2124_vm11 = vcmp.eq.f32.partialorder %v4349_v21, 0.0  ;;  %vm2148_vm13 = vcmp.eq.f32.partialorder %v4351_v49, 0.0 }
 0x516   : > { %v2131_v24 = vsub.f32 1.5, %v2130_v39  ;;  %v2162_v15 = vmul.f32 %v2102_v60, %v4106_v59  ;;  %v2446_v38 = vmul.f32 1.442695, %v2428_v30  ;;  %v2427_v25 = vmul.f32 6.0, %v2408_v43 }
 0x517   : > { %v2284_v54 = vmul.f32 %v4492_v11, %v2283_v58  ;;  %v2163_v2 = vmul.f32 %v2114_v22, %v4067_v41  ;;  %v2121_v51 = vmul.f32 %v2120_v29, %v4349_v21  ;;  %v2429_v8 = vmul.f32 6.0, %v2410_v6 }
 0x518   : > { %v2132_v13 = vmul.f32 %v2898_v5, %v2131_v24  ;;  %v2426_v5 = vmul.f32 6.0, %v2407_v40  ;;  %v1829_v23 = vpop.xlane.xlu2 %1828  ;;  %v4543_v37 = vmax.f32 %v2162_v15, 1e-08  ;;  %v2412_v31 = vmul.f32 %v4479_v33, %v1832_v47 }
 0x519   : > { %v2145_v9 = vmul.f32 %v2144_v50, %v4351_v49  ;;  %v2411_v39 = vmul.f32 %v4397_v52, %v1829_v23  ;;  %vm2286_vm1 = vweird.f32 %v4440_v18  ;;  %v2285_v46 = vadd.f32 %v4492_v11, %v2284_v54 }
 0x51a   : > { %v2133_v3 = vmul.f32 %v2132_v13, %v4389_v63  ;;  %v2442_v10 = vmul.f32 1.442695, %v2426_v5  ;;  %2901 = vrcp.f32 %v4543_v37  ;;  %vm2287_vm0 = vweird.f32 %v4492_v11 }
 0x51b   : > { %v1835_v61 = vpop.xlane.xlu1 %1834  ;;  %v2290_v33 = vand.u32 2147483647, %v4440_v18  ;;  %v2444_v56 = vmul.f32 1.442695, %v2427_v25  ;;  %v2292_v24 = vand.u32 2147483648, %v4440_v18  ;;  %v2431_v48 = vmul.f32 6.0, %v2412_v31  ;;  %vm4573_vm14 = vmor %vm2286_vm1, %vm2287_vm0 }
 0x51c   : > { %v2135_v53 = vsel %vm2134_vm9, %v4389_v63, %v2133_v3  ;;  %v2413_v14 = vmul.f32 %v4494_v57, %v1835_v61  ;;  %v1841_v1 = vpop.xlane.xlu0 %1840  ;;  %2903 = vpow2.f32 %v2442_v10  ;;  %v4561_v55 = vmax.f32 %v2163_v2, 1e-08 }
 0x51d   : > { %v2138_v36 = vsel %vm2136_vm10, %v2137_v7, %v2135_v53  ;;  %v2123_v63 = vsel %vm2122_vm7, %v4349_v21, %v2121_v51  ;;  %v2448_v52 = vmul.f32 1.442695, %v2429_v8  ;;  %v2147_v40 = vsel %vm2146_vm8, %v4351_v49, %v2145_v9 }
 0x51e   : > { %v2165_v57 = vmul.f32 %v2138_v36, %v4067_v41  ;;  %v2430_v32 = vmul.f32 6.0, %v2411_v39  ;;  %v2415_v28 = vmul.f32 %v4454_v19, %v1841_v1  ;;  %2905 = vrcp.f32 %v4561_v55 }
 0x51f   : > { %2907 = vpow2.f32 %v2446_v38  ;;  %v2432_v34 = vmul.f32 6.0, %v2413_v14  ;;  %v2289_v41 = vsel %vm4573_vm14, %v4492_v11, %v2285_v46  ;;  %vm2291_vm15 = vcmp.eq.f32.partialorder %v2290_v33, 8.507059e+37 }
 0x520   : > { %v2902_v47 = vpop.eup %2901  ;;  %2909 = vpow2.f32 %v2444_v56  ;;  %v2293_v60 = vor.u32 1.1754944e-38, %v2292_v24  ;;  %v1838_v42 = vpop.xlane.xlu2 %1837  ;;  %v4582_v18 = vmax.f32 %v2165_v57, 1e-08  ;;  %v2126_v45 = vsel %vm2124_vm11, %v2125_v35, %v2123_v63 }
 0x521   : > { %v2338_v19 = vmul.f32 %v2902_v47, %v4543_v37  ;;  %v2150_v3 = vsel %vm2148_vm13, %v2149_v26, %v2147_v40  ;;  %2911 = vpow2.f32 %v2448_v52  ;;  %v2452_v58 = vmul.f32 1.442695, %v2431_v48 }
 0x522   : > { %v4588_v5 = vpop.eup %2903  ;;  %v2450_v30 = vmul.f32 1.442695, %v2430_v32  ;;  %v2434_v11 = vmul.f32 6.0, %v2415_v28  ;;  %v2294_v43 = vsel %vm2291_vm15, %v2293_v60, %v2289_v41  ;;  %v2454_v6 = vmul.f32 1.442695, %v2432_v34 }
 0x523   : > { %v1844_v22 = vpop.xlane.xlu1 %1843  ;;  %v2339_v29 = vsub.f32 1.0, %v2338_v19  ;;  %v2414_v15 = vmul.f32 %v2294_v43, %v1838_v42  ;;  %v2346_v50 = vand.u32 2147483647, %v4543_v37  ;;  %vm4593_vm12 = vcmp.eq.f32.partialorder %v2332_v0, 8.507059e+37 }
 0x524   : > { %2913 = vrcp.f32 %v4582_v18  ;;  %v4598_v49 = vpop.eup %2905  ;;  %vm2343_vm4 = vweird.f32 %v2902_v47  ;;  %v2348_v26 = vand.u32 2147483648, %v4543_v37  ;;  %v2164_v23 = vmul.f32 %v2126_v45, %v4106_v59  ;;  %v1850_v36 = vpop.xlane.xlu0 %1849 }
 0x525   : > { %v2340_v35 = vmul.f32 %v2902_v47, %v2339_v29  ;;  %v4602_v53 = vpop.eup %2907  ;;  %2915 = vpow2.f32 %v2452_v58  ;;  %v2416_v7 = vmul.f32 %v4488_v17, %v1844_v22  ;;  %v2352_v27 = vmul.f32 %v4598_v49, %v4561_v55 }
 0x526   : > { %v2166_v0 = vmul.f32 %v2150_v3, %v4106_v59  ;;  %v4608_v54 = vpop.eup %2909  ;;  %2917 = vpow2.f32 %v2450_v30  ;;  %vm2342_vm2 = vweird.f32 %v4543_v37  ;;  %v4611_v38 = vmax.f32 %v2164_v23, 1e-08 }
 0x527   : > { %v2341_v10 = vadd.f32 %v2902_v47, %v2340_v35  ;;  %v4613_v25 = vpop.eup %2911  ;;  %v2458_v61 = vmul.f32 1.442695, %v2434_v11  ;;  %v2433_v2 = vmul.f32 6.0, %v2414_v15  ;;  %vm2344_vm5 = vmor %vm2342_vm2, %vm2343_vm4  ;;  %v2353_v17 = vsub.f32 1.0, %v2352_v27 }
 0x528   : > { %v4616_v51 = vmax.f32 %v2166_v0, 1e-08  ;;  %2919 = vpow2.f32 %v2454_v6  ;;  %vm2347_vm3 = vcmp.eq.f32.partialorder %v2346_v50, 8.507059e+37  ;;  %v2349_v59 = vor.u32 1.1754944e-38, %v2348_v26  ;;  %v1847_v14 = vpop.xlane.xlu2 %1846 }
 0x529   : > { %v2345_v8 = vsel %vm2344_vm5, %v2902_v47, %v2341_v10  ;;  %v2435_v9 = vmul.f32 6.0, %v2416_v7  ;;  %v2354_v37 = vmul.f32 %v4598_v49, %v2353_v17  ;;  %vm2357_vm7 = vweird.f32 %v4598_v49 }
 0x52a   : > { %v2914_v31 = vpop.eup %2913  ;;  %2921 = vrcp.f32 %v4611_v38  ;;  %v2350_v39 = vsel %vm2347_vm3, %v2349_v59, %v2345_v8  ;;  %vm2356_vm8 = vweird.f32 %v4561_v55  ;;  %v2362_v1 = vand.u32 2147483648, %v4561_v55 }
 0x52b   : > { %v2380_v46 = vmul.f32 %v2914_v31, %v4582_v18  ;;  %v4624_v33 = vpop.eup %2915  ;;  %v2456_v56 = vmul.f32 1.442695, %v2433_v2  ;;  %v2355_v24 = vadd.f32 %v4598_v49, %v2354_v37  ;;  %v2360_v63 = vand.u32 2147483647, %v4561_v55  ;;  %vm4641_vm9 = vmor %vm2356_vm8, %vm2357_vm7  ;;  %v1853_v16 = vpop.xlane.xlu1 %1852 }
 0x52c   : > { %2923 = vrcp.f32 %v4616_v51  ;;  %v4629_v52 = vpop.eup %2917  ;;  %v2336_v48 = vsel %vm4593_vm12, %v4509_v62, %v2331_v12  ;;  %v2418_v40 = vmul.f32 %v2350_v39, %v1850_v36  ;;  %v2390_v28 = vand.u32 2147483648, %v4582_v18  ;;  %v1859_v21 = vpop.xlane.xlu0 %1858 }
 0x52d   : > { %2925 = vpow2.f32 %v2458_v61  ;;  %v2381_v55 = vsub.f32 1.0, %v2380_v46  ;;  %v2417_v32 = vmul.f32 %v2336_v48, %v1847_v14  ;;  %v2359_v20 = vsel %vm4641_vm9, %v4598_v49, %v2355_v24 }
 0x52e   : > { %v4649_v44 = vpop.eup %2919  ;;  %v2363_v13 = vor.u32 1.1754944e-38, %v2362_v1  ;;  %vm2385_vm6 = vweird.f32 %v2914_v31  ;;  %v2388_v12 = vand.u32 2147483647, %v4582_v18  ;;  %v4819_v34 = vlaneseq }
 0x52f   : > { %v2382_v62 = vmul.f32 %v2914_v31, %v2381_v55  ;;  %2927 = vpow2.f32 %v2456_v56  ;;  %v2460_v60 = vmul.f32 1.442695, %v2435_v9  ;;  %vm2361_vm10 = vcmp.eq.f32.partialorder %v2360_v63, 8.507059e+37 }
 0x530   : > { %v2922_v47 = vpop.eup %2921  ;;  %v4653_v41 = vand.u32 127, %v4819_v34  ;;  %v2364_v42 = vsel %vm2361_vm10, %v2363_v13, %v2359_v20  ;;  %vm2384_vm11 = vweird.f32 %v4582_v18  ;;  %v2437_v58 = vmul.f32 6.0, %v2418_v40  ;;  %v1856_v36 = vpop.xlane.xlu2 %1855 }
 0x531   : > { %v2383_v19 = vadd.f32 %v2914_v31, %v2382_v62  ;;  %v2366_v45 = vmul.f32 %v2922_v47, %v4611_v38  ;;  %v2436_v30 = vmul.f32 6.0, %v2417_v32  ;;  %v2419_v11 = vmul.f32 %v2364_v42, %v1853_v16  ;;  %vm2386_vm13 = vmor %vm2384_vm11, %vm2385_vm6 }
 0x532   : > { %v2924_v3 = vpop.eup %2923  ;;  %v2391_v43 = vor.u32 1.1754944e-38, %v2390_v28  ;;  %vm2389_vm1 = vcmp.eq.f32.partialorder %v2388_v12, 8.507059e+37  ;;  %vm2370_vm0 = vweird.f32 %v4611_v38  ;;  %v2374_v18 = vand.u32 2147483647, %v4611_v38 }
 0x533   : > { %v4658_v22 = vpop.eup %2925  ;;  %v2387_v29 = vsel %vm2386_vm13, %v2914_v31, %v2383_v19  ;;  %v2367_v6 = vsub.f32 1.0, %v2366_v45  ;;  %v2394_v15 = vmul.f32 %v2924_v3, %v4616_v51  ;;  %v2376_v49 = vand.u32 2147483648, %v4611_v38  ;;  %v1862_v46 = vpop.xlane.xlu1 %1861 }
 0x534   : > { %v2392_v50 = vsel %vm2389_vm1, %v2391_v43, %v2387_v29  ;;  %vm2371_vm14 = vweird.f32 %v2922_v47  ;;  %v2464_v27 = vmul.f32 1.442695, %v2437_v58  ;;  %v2438_v0 = vmul.f32 6.0, %v2419_v11 }
 0x535   : > { %v2421_v35 = vmul.f32 %v2392_v50, %v1859_v21  ;;  %v2368_v26 = vmul.f32 %v2922_v47, %v2367_v6  ;;  %v2395_v23 = vsub.f32 1.0, %v2394_v15  ;;  %v2928_v7 = vpop.eup %2927  ;;  %v2402_v10 = vand.u32 2147483647, %v4616_v51  ;;  %vm2372_vm12 = vmor %vm2370_vm0, %vm2371_vm14 }
 0x536   : > { %v2404_v61 = vand.u32 2147483648, %v4616_v51  ;;  %vm2399_vm15 = vweird.f32 %v2924_v3  ;;  %v4667_v59 = vadd.s32 4294967288, %v4653_v41  ;;  %2929 = vpow2.f32 %v2460_v60 }
 0x537   : > { %v2440_v2 = vmul.f32 6.0, %v2421_v35  ;;  %v2369_v17 = vadd.f32 %v2922_v47, %v2368_v26  ;;  %v2396_v8 = vmul.f32 %v2924_v3, %v2395_v23  ;;  %v2462_v31 = vmul.f32 1.442695, %v2436_v30 }
 0x538   : > { %v2377_v9 = vor.u32 1.1754944e-38, %v2376_v49  ;;  %vm2375_vm4 = vcmp.eq.f32.partialorder %v2374_v18, 8.507059e+37  ;;  %vm2398_vm2 = vweird.f32 %v4616_v51  ;;  %2931 = vpow2.f32 %v2464_v27 }
 0x539   : > { %v2373_v37 = vsel %vm2372_vm12, %v2922_v47, %v2369_v17  ;;  %v2397_v39 = vadd.f32 %v2924_v3, %v2396_v8  ;;  %v2466_v14 = vmul.f32 1.442695, %v2438_v0  ;;  %vm2400_vm5 = vmor %vm2398_vm2, %vm2399_vm15  ;;  %v2405_v56 = vor.u32 1.1754944e-38, %v2404_v61 }
 0x53a   : > { %v2378_v1 = vsel %vm2375_vm4, %v2377_v9, %v2373_v37  ;;  %v2470_v24 = vmul.f32 1.442695, %v2440_v2  ;;  %vm2403_vm3 = vcmp.eq.f32.partialorder %v2402_v10, 8.507059e+37  ;;  %2933 = vpow2.f32 %v2462_v31 }
 0x53b   : > { %v2420_v63 = vmul.f32 %v2378_v1, %v1856_v36  ;;  %v2401_v48 = vsel %vm2400_vm5, %v2924_v3, %v2397_v39  ;;  %vm2495_vm7 = vcmask 130112   ;;  %v2498_v57 = vperm.slane %v4613_v25, %v4667_v59 }
 0x53c   : > { %v2406_v38 = vsel %vm2403_vm3, %v2405_v56, %v2401_v48  ;;  %v2930_v51 = vpop.eup %2929  ;;  %v2497_v32 = vperm.slane %v4602_v53, %v4653_v41  ;;  %v2494_v20 = vperm.slane %v4608_v54, %v4667_v59  ;;  %v2500_v28 = vperm.slane %v4629_v52, %v4653_v41 }
 0x53d   : > { %v2439_v55 = vmul.f32 6.0, %v2420_v63  ;;  %v2422_v40 = vmul.f32 %v2406_v38, %v1862_v46  ;;  %2935 = vpow2.f32 %v2466_v14  ;;  %v2504_v16 = vperm.slane %v2928_v7, %v4667_v59 }
 0x53e   : > { %2937 = vpow2.f32 %v2470_v24  ;;  %v2932_v12 = vpop.eup %2931  ;;  %v2492_v25 = vperm.slane %v4588_v5, %v4653_v41  ;;  %vm2518_vm8 = vcmask 1041409   ;;  %v2501_v53 = vperm.slane %v4624_v33, %v4667_v59 }
 0x53f   : > { %v2468_v13 = vmul.f32 1.442695, %v2439_v55  ;;  %v2441_v62 = vmul.f32 6.0, %v2422_v40  ;;  %v2499_v47 = vsel %vm2495_vm7, %v2498_v57, %v2497_v32  ;;  %v2503_v54 = vperm.slane %v4649_v44, %v4653_v41 }
 0x540   : > { %v2934_v34 = vpop.eup %2933  ;;  %v2496_v60 = vsel %vm2495_vm7, %v2494_v20, %v2492_v25  ;;  %v2502_v42 = vsel %vm2495_vm7, %v2501_v53, %v2500_v28  ;;  %v2507_v19 = vperm.slane %v2930_v51, %v4667_v59  ;;  %vm2520_vm9 = vcmask 1042434  }
 0x541   : > { %2939 = vpow2.f32 %v2468_v13  ;;  %v2472_v52 = vmul.f32 1.442695, %v2441_v62  ;;  %v2505_v5 = vsel %vm2495_vm7, %v2504_v16, %v2503_v54  ;;  %v2510_v45 = vperm.slane %v2932_v12, %v4667_v59 }
 0x542   : > { %vm2522_vm6 = vcmask 1043459   ;;  %v2519_v3 = vsel %vm2518_vm8, %v2499_v47, %v2496_v60  ;;  %v2506_v44 = vperm.slane %v4658_v22, %v4653_v41  ;;  %v2509_v30 = vperm.slane %v2934_v34, %v4653_v41 }
 0x543   : > { %2941 = vpow2.f32 %v2472_v52  ;;  %v2936_v33 = vpop.eup %2935  ;;  %v2521_v11 = vsel %vm2520_vm9, %v2502_v42, %v2519_v3  ;;  %vm2524_vm10 = vcmask 1044484   ;;  %vm2526_vm11 = vcmask 1045509  }
 0x544   : > { %v2938_v58 = vpop.eup %2937  ;;  %v2508_v43 = vsel %vm2495_vm7, %v2507_v19, %v2506_v44  ;;  %v2523_v29 = vsel %vm2522_vm6, %v2505_v5, %v2521_v11  ;;  %v2511_v15 = vsel %vm2495_vm7, %v2510_v45, %v2509_v30  ;;  %v2512_v50 = vperm.slane %v2936_v33, %v4653_v41 }
 0x545   : > { %v2515_v21 = vperm.slane %v2938_v58, %v4653_v41  ;;  %vm2528_vm13 = vcmask 1046534   ;;  %v2525_v49 = vsel %vm2524_vm10, %v2508_v43, %v2523_v29  ;;  %vm2530_vm1 = vcmask 1047559  }
 0x546   : > { %v2527_v23 = vsel %vm2526_vm11, %v2511_v15, %v2525_v49  ;;  %vm2425_vm0 = vcmp.lt.s32.totalorder %v4653_v41, %v3039_v4  ;;  %vm4820_vm14 = vcmask 97280   ;;  %v2990_v2 = vmov 6.0  }
 0x547   : > { %v2940_v6 = vpop.eup %2939  ;;  %2943 = vrcp.f32 %v2990_v2  ;;  %vm2547_vm12 = vcmask 7168  }
 0x548   : > { %v2513_v18 = vperm.slane %v2940_v6, %v4667_v59 }
 0x549   : > { %v2942_v22 = vpop.eup %2941 }
 0x54a   : > { %v2516_v35 = vperm.slane %v2942_v22, %v4667_v59  ;;  %v2514_v26 = vsel %vm2495_vm7, %v2513_v18, %v2512_v50 }
 0x54b   : > { %v2529_v7 = vsel %vm2528_vm13, %v2514_v26, %v2527_v23 }
 0x54c   : > { %v2517_v27 = vsel %vm2495_vm7, %v2516_v35, %v2515_v21 }
 0x54d   : > { %v2531_v0 = vsel %vm2530_vm1, %v2517_v27, %v2529_v7  ;;  %v2944_v17 = vpop.eup %2943 }
 0x54e   : > { %v2533_v10 = vsel %vm2425_vm0, %v2531_v0, 0.0  ;;  %v2540_v8 = vmul.f32 6.0, %v2944_v17  ;;  %vm2544_vm15 = vweird.f32 %v2944_v17 }
 0x54f   : > { %v2534_v61 = vsel %vm4820_vm14, %v2533_v10, 0.0 }
 0x550   : > { %2535 = vadd.xlane.f32.xlu2 %v2534_v61  ;;  %v2541_v59 = vsub.f32 1.0, %v2540_v8 }
 0x552   : > { %v2542_v31 = vmul.f32 %v2944_v17, %v2541_v59 }
 0x554   : > { %v2543_v36 = vadd.f32 %v2944_v17, %v2542_v31 }
 0x556   : > { %v2545_v41 = vsel %vm2544_vm15, %v2944_v17, %v2543_v36 }
 0x5c3   : > { %v2536_v9 = vpop.xlane.xlu2 %2535 }
 0x5c4   : > { %2945 = vlog2.f32 %v2536_v9 }
 0x5ca   : > { %v2946_v4 = vpop.eup %2945 }
 0x5cb   : > { %v2538_v37 = vmul.f32 0.6931472, %v2946_v4 }
 0x5cd   : > { %v2546_v39 = vmul.f32 %v2545_v41, %v2538_v37 }
 0x5cf   : > { %2548 = vst.msk [vmem:[%s195_s19] sm:$0xff] %vm2547_vm12, %v2546_v39 }
 0x5d0 PF: > { %s21_s18 = sadd.s32 1, %s2987_s18   ;;  %s4821_s16 = smov %s2983_s17 }
 0x5d1   : > { %p18_p5 = scmp.ge.s32.totalorder %s21_s18, 10   ;;  %s4822_s17 = smov %s4824_s0 }
 0x5d3   :  { %20 = sbr.rel (!%p18_p5) target bundleno = 8 (0x8), region = 61 }

</bundles_post_ra>
